<compile_context>
chip_gen: v5e
topology: v5e:2x2
jax: 0.10.0
libtpu: 0.0.40
codegen_flags: <defaults>
</compile_context>

<pallas_src>
import functools

import jax
import jax.numpy as jnp
from jax.experimental import pallas as pl
from jax.experimental.pallas import tpu as pltpu


def _round_up(x, m):
    return (x + m - 1) // m * m


def _gather_kernel(idx_ref, w_hbm, o_ref, buf, sem, *, block_n):
    """Gather `block_n` embedding rows via per-row DMA.

    idx_ref: (N_pad,) int32 in SMEM (scalar-prefetched token ids)
    w_hbm  : (V, D_pad) float32, left in HBM (memory_space=pl.ANY)
    o_ref  : (block_n, D_pad) float32 output block (VMEM, lane-dense)
    buf    : (block_n, D_pad) float32 VMEM scratch gather target
    sem    : single DMA semaphore shared by all row copies
    """
    base = pl.program_id(0) * block_n

    # Issue all row DMAs first (they queue and run concurrently) ...
    for r in range(block_n):
        row = idx_ref[base + r]
        pltpu.make_async_copy(
            w_hbm.at[pl.ds(row, 1)], buf.at[pl.ds(r, 1)], sem
        ).start()

    # ... then wait for all of them (equal-sized copies on one semaphore).
    for r in range(block_n):
        pltpu.make_async_copy(
            w_hbm.at[pl.ds(0, 1)], buf.at[pl.ds(r, 1)], sem
        ).wait()

    # Single lane-dense store of the whole block.
    o_ref[...] = buf[...]


def embedding_gather(indices, table_padded, *, max_block_n=128):
    """Pallas gather: returns table_padded[indices] with shape indices.shape + (D_pad,)."""
    orig_shape = indices.shape
    idx_flat = indices.reshape(-1).astype(jnp.int32)
    n = idx_flat.shape[0]
    v, d = table_padded.shape

    # Pick a block size: big enough to amortize ~0.35us/step overhead, but no
    # larger than the (8-aligned) problem so tiny inputs do not over-gather.
    block_n = min(max_block_n, _round_up(n, 8))
    n_pad = _round_up(n, block_n)
    if n_pad != n:
        # Padded slots gather row 0; they are sliced off below.
        idx_flat = jnp.pad(idx_flat, (0, n_pad - n))

    kernel = functools.partial(_gather_kernel, block_n=block_n)

    out = pl.pallas_call(
        kernel,
        out_shape=jax.ShapeDtypeStruct((n_pad, d), table_padded.dtype),
        grid_spec=pltpu.PrefetchScalarGridSpec(
            num_scalar_prefetch=1,                      # idx_flat -> SMEM
            grid=(n_pad // block_n,),
            in_specs=[
                pl.BlockSpec(memory_space=pl.ANY),      # table stays in HBM
            ],
            out_specs=pl.BlockSpec((block_n, d), lambda i, idx: (i, 0)),
            scratch_shapes=[
                pltpu.VMEM((block_n, d), table_padded.dtype),
                pltpu.SemaphoreType.DMA,
            ],
        ),
        compiler_params=pltpu.CompilerParams(
            dimension_semantics=("parallel",),          # shard across TCs on v7x
        ),
    )(idx_flat, table_padded)

    return out[:n].reshape(*orig_shape, d)


class LanguageModelPallas:
    """Mirror of the PyTorch LanguageModel (embedding lookup only)."""

    def __init__(self, w2i, i2w, w2v):
        self.w2i = w2i
        self.i2w = i2w
        w = jnp.asarray(w2v, dtype=jnp.float32)          # (V, 300)
        self.embedding_weight = w
        self._d = w.shape[1]
        d_pad = _round_up(self._d, 128)                  # 300 -> 384 lane-dense
        self._table_padded = jnp.pad(w, ((0, 0), (0, d_pad - self._d)))

    def forward_once(self, x):
        out = embedding_gather(jnp.asarray(x, jnp.int32), self._table_padded)
        return out[..., : self._d]

    def predict(self, w_batched):
        return self.forward_once(w_batched)

    def forward(self, x):
        target_word, synonym, antonym = x
        # Fuse all three lookups into ONE pallas_call over [3, B, S] indices.
        stacked = jnp.stack(
            [jnp.asarray(t, jnp.int32) for t in (target_word, synonym, antonym)],
            axis=0,
        )
        out = embedding_gather(stacked, self._table_padded)[..., : self._d]
        return (out[0], out[1], out[2])


if __name__ == "__main__":
    key = jax.random.PRNGKey(0)

    # Deterministic synthetic vocabulary + w2v matrix (no checkpoint load).
    VOCAB = 64
    EMBED_DIM = 300  # matches nn.Embedding(len(w2i), 300)
    words = [f"w{i}" for i in range(VOCAB)]
    w2i = {w: i for i, w in enumerate(words)}
    i2w = {i: w for i, w in enumerate(words)}
    k_w2v, k_t, k_s, k_a = jax.random.split(key, 4)
    w2v = jax.random.normal(k_w2v, (VOCAB, EMBED_DIM), dtype=jnp.float32)

    model = LanguageModelPallas(w2i, i2w, w2v)

    # Small index batches: batch=2, seq=8 -> each embedded output (2, 8, 300)
    B, S = 2, 8
    target_word = jax.random.randint(k_t, (B, S), 0, VOCAB, dtype=jnp.int32)
    synonym = jax.random.randint(k_s, (B, S), 0, VOCAB, dtype=jnp.int32)
    antonym = jax.random.randint(k_a, (B, S), 0, VOCAB, dtype=jnp.int32)

    out_t, out_s, out_a = model.forward((target_word, synonym, antonym))
    jax.block_until_ready((out_t, out_s, out_a))

    # Sanity-check against the plain-JAX gather reference.  DMA gather is
    # exact, so require bitwise equality.
    ref_t = jnp.take(model.embedding_weight, target_word, axis=0)
    ref_s = jnp.take(model.embedding_weight, synonym, axis=0)
    ref_a = jnp.take(model.embedding_weight, antonym, axis=0)
    assert out_t.shape == (B, S, EMBED_DIM)
    assert jnp.array_equal(out_t, ref_t)
    assert jnp.array_equal(out_s, ref_s)
    assert jnp.array_equal(out_a, ref_a)

    print("KERNEL_OK")
</pallas_src>

<mosaic_0001>
module attributes {stable_mosaic.version = 11 : i64} {
  func.func @_gather_kernel(%arg0: i32, %arg1: memref<48xi32, #tpu.memory_space<smem>>, %arg2: memref<64x384xf32, #tpu.memory_space<any>>, %arg3: memref<48x384xf32, #tpu.memory_space<vmem>>, %arg4: memref<48x384xf32, #tpu.memory_space<vmem>>, %arg5: memref<!tpu.dma_semaphore, #tpu.memory_space<semaphore_mem>>) attributes {dimension_semantics = [#tpu.dimension_semantics<parallel>], iteration_bounds = array<i64: 1>, scalar_prefetch = 1 : i64, scratch_operands = 2 : i64, tpu.core_type = #tpu.core_type<tc>, window_params = [{}, {transform_indices = @transform_1, window_bounds = array<i64: 48, 384>}]} {
    %c48_i32 = arith.constant 48 : i32
    %0 = arith.muli %arg0, %c48_i32 : i32
    %c0_i32 = arith.constant 0 : i32
    %1 = arith.addi %0, %c0_i32 : i32
    %2 = arith.index_cast %1 : i32 to index
    %3 = memref.load %arg1[%2] : memref<48xi32, #tpu.memory_space<smem>>
    %c0_i32_0 = arith.constant 0 : i32
    %4 = tpu.memref_slice %arg2[%3, %c0_i32_0] : memref<64x384xf32, #tpu.memory_space<any>> -> memref<1x384xf32, #tpu.memory_space<any>>
    %c0_i32_1 = arith.constant 0 : i32
    %c0_i32_2 = arith.constant 0 : i32
    %5 = tpu.memref_slice %arg4[%c0_i32_1, %c0_i32_2] : memref<48x384xf32, #tpu.memory_space<vmem>> -> memref<1x384xf32, #tpu.memory_space<vmem>>
    tpu.enqueue_dma source(%4 : memref<1x384xf32, #tpu.memory_space<any>>) target(%5 : memref<1x384xf32, #tpu.memory_space<vmem>>) target_semaphore(%arg5 : memref<!tpu.dma_semaphore, #tpu.memory_space<semaphore_mem>>)
    %c1_i32 = arith.constant 1 : i32
    %6 = arith.addi %0, %c1_i32 : i32
    %7 = arith.index_cast %6 : i32 to index
    %8 = memref.load %arg1[%7] : memref<48xi32, #tpu.memory_space<smem>>
    %c0_i32_3 = arith.constant 0 : i32
    %9 = tpu.memref_slice %arg2[%8, %c0_i32_3] : memref<64x384xf32, #tpu.memory_space<any>> -> memref<1x384xf32, #tpu.memory_space<any>>
    %c1_i32_4 = arith.constant 1 : i32
    %c0_i32_5 = arith.constant 0 : i32
    %10 = tpu.memref_slice %arg4[%c1_i32_4, %c0_i32_5] : memref<48x384xf32, #tpu.memory_space<vmem>> -> memref<1x384xf32, #tpu.memory_space<vmem>>
    tpu.enqueue_dma source(%9 : memref<1x384xf32, #tpu.memory_space<any>>) target(%10 : memref<1x384xf32, #tpu.memory_space<vmem>>) target_semaphore(%arg5 : memref<!tpu.dma_semaphore, #tpu.memory_space<semaphore_mem>>)
    %c2_i32 = arith.constant 2 : i32
    %11 = arith.addi %0, %c2_i32 : i32
    %12 = arith.index_cast %11 : i32 to index
    %13 = memref.load %arg1[%12] : memref<48xi32, #tpu.memory_space<smem>>
    %c0_i32_6 = arith.constant 0 : i32
    %14 = tpu.memref_slice %arg2[%13, %c0_i32_6] : memref<64x384xf32, #tpu.memory_space<any>> -> memref<1x384xf32, #tpu.memory_space<any>>
    %c2_i32_7 = arith.constant 2 : i32
    %c0_i32_8 = arith.constant 0 : i32
    %15 = tpu.memref_slice %arg4[%c2_i32_7, %c0_i32_8] : memref<48x384xf32, #tpu.memory_space<vmem>> -> memref<1x384xf32, #tpu.memory_space<vmem>>
    tpu.enqueue_dma source(%14 : memref<1x384xf32, #tpu.memory_space<any>>) target(%15 : memref<1x384xf32, #tpu.memory_space<vmem>>) target_semaphore(%arg5 : memref<!tpu.dma_semaphore, #tpu.memory_space<semaphore_mem>>)
    %c3_i32 = arith.constant 3 : i32
    %16 = arith.addi %0, %c3_i32 : i32
    %17 = arith.index_cast %16 : i32 to index
    %18 = memref.load %arg1[%17] : memref<48xi32, #tpu.memory_space<smem>>
    %c0_i32_9 = arith.constant 0 : i32
    %19 = tpu.memref_slice %arg2[%18, %c0_i32_9] : memref<64x384xf32, #tpu.memory_space<any>> -> memref<1x384xf32, #tpu.memory_space<any>>
    %c3_i32_10 = arith.constant 3 : i32
    %c0_i32_11 = arith.constant 0 : i32
    %20 = tpu.memref_slice %arg4[%c3_i32_10, %c0_i32_11] : memref<48x384xf32, #tpu.memory_space<vmem>> -> memref<1x384xf32, #tpu.memory_space<vmem>>
    tpu.enqueue_dma source(%19 : memref<1x384xf32, #tpu.memory_space<any>>) target(%20 : memref<1x384xf32, #tpu.memory_space<vmem>>) target_semaphore(%arg5 : memref<!tpu.dma_semaphore, #tpu.memory_space<semaphore_mem>>)
    %c4_i32 = arith.constant 4 : i32
    %21 = arith.addi %0, %c4_i32 : i32
    %22 = arith.index_cast %21 : i32 to index
    %23 = memref.load %arg1[%22] : memref<48xi32, #tpu.memory_space<smem>>
    %c0_i32_12 = arith.constant 0 : i32
    %24 = tpu.memref_slice %arg2[%23, %c0_i32_12] : memref<64x384xf32, #tpu.memory_space<any>> -> memref<1x384xf32, #tpu.memory_space<any>>
    %c4_i32_13 = arith.constant 4 : i32
    %c0_i32_14 = arith.constant 0 : i32
    %25 = tpu.memref_slice %arg4[%c4_i32_13, %c0_i32_14] : memref<48x384xf32, #tpu.memory_space<vmem>> -> memref<1x384xf32, #tpu.memory_space<vmem>>
    tpu.enqueue_dma source(%24 : memref<1x384xf32, #tpu.memory_space<any>>) target(%25 : memref<1x384xf32, #tpu.memory_space<vmem>>) target_semaphore(%arg5 : memref<!tpu.dma_semaphore, #tpu.memory_space<semaphore_mem>>)
    %c5_i32 = arith.constant 5 : i32
    %26 = arith.addi %0, %c5_i32 : i32
    %27 = arith.index_cast %26 : i32 to index
    %28 = memref.load %arg1[%27] : memref<48xi32, #tpu.memory_space<smem>>
    %c0_i32_15 = arith.constant 0 : i32
    %29 = tpu.memref_slice %arg2[%28, %c0_i32_15] : memref<64x384xf32, #tpu.memory_space<any>> -> memref<1x384xf32, #tpu.memory_space<any>>
    %c5_i32_16 = arith.constant 5 : i32
    %c0_i32_17 = arith.constant 0 : i32
    %30 = tpu.memref_slice %arg4[%c5_i32_16, %c0_i32_17] : memref<48x384xf32, #tpu.memory_space<vmem>> -> memref<1x384xf32, #tpu.memory_space<vmem>>
    tpu.enqueue_dma source(%29 : memref<1x384xf32, #tpu.memory_space<any>>) target(%30 : memref<1x384xf32, #tpu.memory_space<vmem>>) target_semaphore(%arg5 : memref<!tpu.dma_semaphore, #tpu.memory_space<semaphore_mem>>)
    %c6_i32 = arith.constant 6 : i32
    %31 = arith.addi %0, %c6_i32 : i32
    %32 = arith.index_cast %31 : i32 to index
    %33 = memref.load %arg1[%32] : memref<48xi32, #tpu.memory_space<smem>>
    %c0_i32_18 = arith.constant 0 : i32
    %34 = tpu.memref_slice %arg2[%33, %c0_i32_18] : memref<64x384xf32, #tpu.memory_space<any>> -> memref<1x384xf32, #tpu.memory_space<any>>
    %c6_i32_19 = arith.constant 6 : i32
    %c0_i32_20 = arith.constant 0 : i32
    %35 = tpu.memref_slice %arg4[%c6_i32_19, %c0_i32_20] : memref<48x384xf32, #tpu.memory_space<vmem>> -> memref<1x384xf32, #tpu.memory_space<vmem>>
    tpu.enqueue_dma source(%34 : memref<1x384xf32, #tpu.memory_space<any>>) target(%35 : memref<1x384xf32, #tpu.memory_space<vmem>>) target_semaphore(%arg5 : memref<!tpu.dma_semaphore, #tpu.memory_space<semaphore_mem>>)
    %c7_i32 = arith.constant 7 : i32
    %36 = arith.addi %0, %c7_i32 : i32
    %37 = arith.index_cast %36 : i32 to index
    %38 = memref.load %arg1[%37] : memref<48xi32, #tpu.memory_space<smem>>
    %c0_i32_21 = arith.constant 0 : i32
    %39 = tpu.memref_slice %arg2[%38, %c0_i32_21] : memref<64x384xf32, #tpu.memory_space<any>> -> memref<1x384xf32, #tpu.memory_space<any>>
    %c7_i32_22 = arith.constant 7 : i32
    %c0_i32_23 = arith.constant 0 : i32
    %40 = tpu.memref_slice %arg4[%c7_i32_22, %c0_i32_23] : memref<48x384xf32, #tpu.memory_space<vmem>> -> memref<1x384xf32, #tpu.memory_space<vmem>>
    tpu.enqueue_dma source(%39 : memref<1x384xf32, #tpu.memory_space<any>>) target(%40 : memref<1x384xf32, #tpu.memory_space<vmem>>) target_semaphore(%arg5 : memref<!tpu.dma_semaphore, #tpu.memory_space<semaphore_mem>>)
    %c8_i32 = arith.constant 8 : i32
    %41 = arith.addi %0, %c8_i32 : i32
    %42 = arith.index_cast %41 : i32 to index
    %43 = memref.load %arg1[%42] : memref<48xi32, #tpu.memory_space<smem>>
    %c0_i32_24 = arith.constant 0 : i32
    %44 = tpu.memref_slice %arg2[%43, %c0_i32_24] : memref<64x384xf32, #tpu.memory_space<any>> -> memref<1x384xf32, #tpu.memory_space<any>>
    %c8_i32_25 = arith.constant 8 : i32
    %c0_i32_26 = arith.constant 0 : i32
    %45 = tpu.memref_slice %arg4[%c8_i32_25, %c0_i32_26] : memref<48x384xf32, #tpu.memory_space<vmem>> -> memref<1x384xf32, #tpu.memory_space<vmem>>
    tpu.enqueue_dma source(%44 : memref<1x384xf32, #tpu.memory_space<any>>) target(%45 : memref<1x384xf32, #tpu.memory_space<vmem>>) target_semaphore(%arg5 : memref<!tpu.dma_semaphore, #tpu.memory_space<semaphore_mem>>)
    %c9_i32 = arith.constant 9 : i32
    %46 = arith.addi %0, %c9_i32 : i32
    %47 = arith.index_cast %46 : i32 to index
    %48 = memref.load %arg1[%47] : memref<48xi32, #tpu.memory_space<smem>>
    %c0_i32_27 = arith.constant 0 : i32
    %49 = tpu.memref_slice %arg2[%48, %c0_i32_27] : memref<64x384xf32, #tpu.memory_space<any>> -> memref<1x384xf32, #tpu.memory_space<any>>
    %c9_i32_28 = arith.constant 9 : i32
    %c0_i32_29 = arith.constant 0 : i32
    %50 = tpu.memref_slice %arg4[%c9_i32_28, %c0_i32_29] : memref<48x384xf32, #tpu.memory_space<vmem>> -> memref<1x384xf32, #tpu.memory_space<vmem>>
    tpu.enqueue_dma source(%49 : memref<1x384xf32, #tpu.memory_space<any>>) target(%50 : memref<1x384xf32, #tpu.memory_space<vmem>>) target_semaphore(%arg5 : memref<!tpu.dma_semaphore, #tpu.memory_space<semaphore_mem>>)
    %c10_i32 = arith.constant 10 : i32
    %51 = arith.addi %0, %c10_i32 : i32
    %52 = arith.index_cast %51 : i32 to index
    %53 = memref.load %arg1[%52] : memref<48xi32, #tpu.memory_space<smem>>
    %c0_i32_30 = arith.constant 0 : i32
    %54 = tpu.memref_slice %arg2[%53, %c0_i32_30] : memref<64x384xf32, #tpu.memory_space<any>> -> memref<1x384xf32, #tpu.memory_space<any>>
    %c10_i32_31 = arith.constant 10 : i32
    %c0_i32_32 = arith.constant 0 : i32
    %55 = tpu.memref_slice %arg4[%c10_i32_31, %c0_i32_32] : memref<48x384xf32, #tpu.memory_space<vmem>> -> memref<1x384xf32, #tpu.memory_space<vmem>>
    tpu.enqueue_dma source(%54 : memref<1x384xf32, #tpu.memory_space<any>>) target(%55 : memref<1x384xf32, #tpu.memory_space<vmem>>) target_semaphore(%arg5 : memref<!tpu.dma_semaphore, #tpu.memory_space<semaphore_mem>>)
    %c11_i32 = arith.constant 11 : i32
    %56 = arith.addi %0, %c11_i32 : i32
    %57 = arith.index_cast %56 : i32 to index
    %58 = memref.load %arg1[%57] : memref<48xi32, #tpu.memory_space<smem>>
    %c0_i32_33 = arith.constant 0 : i32
    %59 = tpu.memref_slice %arg2[%58, %c0_i32_33] : memref<64x384xf32, #tpu.memory_space<any>> -> memref<1x384xf32, #tpu.memory_space<any>>
    %c11_i32_34 = arith.constant 11 : i32
    %c0_i32_35 = arith.constant 0 : i32
    %60 = tpu.memref_slice %arg4[%c11_i32_34, %c0_i32_35] : memref<48x384xf32, #tpu.memory_space<vmem>> -> memref<1x384xf32, #tpu.memory_space<vmem>>
    tpu.enqueue_dma source(%59 : memref<1x384xf32, #tpu.memory_space<any>>) target(%60 : memref<1x384xf32, #tpu.memory_space<vmem>>) target_semaphore(%arg5 : memref<!tpu.dma_semaphore, #tpu.memory_space<semaphore_mem>>)
    %c12_i32 = arith.constant 12 : i32
    %61 = arith.addi %0, %c12_i32 : i32
    %62 = arith.index_cast %61 : i32 to index
    %63 = memref.load %arg1[%62] : memref<48xi32, #tpu.memory_space<smem>>
    %c0_i32_36 = arith.constant 0 : i32
    %64 = tpu.memref_slice %arg2[%63, %c0_i32_36] : memref<64x384xf32, #tpu.memory_space<any>> -> memref<1x384xf32, #tpu.memory_space<any>>
    %c12_i32_37 = arith.constant 12 : i32
    %c0_i32_38 = arith.constant 0 : i32
    %65 = tpu.memref_slice %arg4[%c12_i32_37, %c0_i32_38] : memref<48x384xf32, #tpu.memory_space<vmem>> -> memref<1x384xf32, #tpu.memory_space<vmem>>
    tpu.enqueue_dma source(%64 : memref<1x384xf32, #tpu.memory_space<any>>) target(%65 : memref<1x384xf32, #tpu.memory_space<vmem>>) target_semaphore(%arg5 : memref<!tpu.dma_semaphore, #tpu.memory_space<semaphore_mem>>)
    %c13_i32 = arith.constant 13 : i32
    %66 = arith.addi %0, %c13_i32 : i32
    %67 = arith.index_cast %66 : i32 to index
    %68 = memref.load %arg1[%67] : memref<48xi32, #tpu.memory_space<smem>>
    %c0_i32_39 = arith.constant 0 : i32
    %69 = tpu.memref_slice %arg2[%68, %c0_i32_39] : memref<64x384xf32, #tpu.memory_space<any>> -> memref<1x384xf32, #tpu.memory_space<any>>
    %c13_i32_40 = arith.constant 13 : i32
    %c0_i32_41 = arith.constant 0 : i32
    %70 = tpu.memref_slice %arg4[%c13_i32_40, %c0_i32_41] : memref<48x384xf32, #tpu.memory_space<vmem>> -> memref<1x384xf32, #tpu.memory_space<vmem>>
    tpu.enqueue_dma source(%69 : memref<1x384xf32, #tpu.memory_space<any>>) target(%70 : memref<1x384xf32, #tpu.memory_space<vmem>>) target_semaphore(%arg5 : memref<!tpu.dma_semaphore, #tpu.memory_space<semaphore_mem>>)
    %c14_i32 = arith.constant 14 : i32
    %71 = arith.addi %0, %c14_i32 : i32
    %72 = arith.index_cast %71 : i32 to index
    %73 = memref.load %arg1[%72] : memref<48xi32, #tpu.memory_space<smem>>
    %c0_i32_42 = arith.constant 0 : i32
    %74 = tpu.memref_slice %arg2[%73, %c0_i32_42] : memref<64x384xf32, #tpu.memory_space<any>> -> memref<1x384xf32, #tpu.memory_space<any>>
    %c14_i32_43 = arith.constant 14 : i32
    %c0_i32_44 = arith.constant 0 : i32
    %75 = tpu.memref_slice %arg4[%c14_i32_43, %c0_i32_44] : memref<48x384xf32, #tpu.memory_space<vmem>> -> memref<1x384xf32, #tpu.memory_space<vmem>>
    tpu.enqueue_dma source(%74 : memref<1x384xf32, #tpu.memory_space<any>>) target(%75 : memref<1x384xf32, #tpu.memory_space<vmem>>) target_semaphore(%arg5 : memref<!tpu.dma_semaphore, #tpu.memory_space<semaphore_mem>>)
    %c15_i32 = arith.constant 15 : i32
    %76 = arith.addi %0, %c15_i32 : i32
    %77 = arith.index_cast %76 : i32 to index
    %78 = memref.load %arg1[%77] : memref<48xi32, #tpu.memory_space<smem>>
    %c0_i32_45 = arith.constant 0 : i32
    %79 = tpu.memref_slice %arg2[%78, %c0_i32_45] : memref<64x384xf32, #tpu.memory_space<any>> -> memref<1x384xf32, #tpu.memory_space<any>>
    %c15_i32_46 = arith.constant 15 : i32
    %c0_i32_47 = arith.constant 0 : i32
    %80 = tpu.memref_slice %arg4[%c15_i32_46, %c0_i32_47] : memref<48x384xf32, #tpu.memory_space<vmem>> -> memref<1x384xf32, #tpu.memory_space<vmem>>
    tpu.enqueue_dma source(%79 : memref<1x384xf32, #tpu.memory_space<any>>) target(%80 : memref<1x384xf32, #tpu.memory_space<vmem>>) target_semaphore(%arg5 : memref<!tpu.dma_semaphore, #tpu.memory_space<semaphore_mem>>)
    %c16_i32 = arith.constant 16 : i32
    %81 = arith.addi %0, %c16_i32 : i32
    %82 = arith.index_cast %81 : i32 to index
    %83 = memref.load %arg1[%82] : memref<48xi32, #tpu.memory_space<smem>>
    %c0_i32_48 = arith.constant 0 : i32
    %84 = tpu.memref_slice %arg2[%83, %c0_i32_48] : memref<64x384xf32, #tpu.memory_space<any>> -> memref<1x384xf32, #tpu.memory_space<any>>
    %c16_i32_49 = arith.constant 16 : i32
    %c0_i32_50 = arith.constant 0 : i32
    %85 = tpu.memref_slice %arg4[%c16_i32_49, %c0_i32_50] : memref<48x384xf32, #tpu.memory_space<vmem>> -> memref<1x384xf32, #tpu.memory_space<vmem>>
    tpu.enqueue_dma source(%84 : memref<1x384xf32, #tpu.memory_space<any>>) target(%85 : memref<1x384xf32, #tpu.memory_space<vmem>>) target_semaphore(%arg5 : memref<!tpu.dma_semaphore, #tpu.memory_space<semaphore_mem>>)
    %c17_i32 = arith.constant 17 : i32
    %86 = arith.addi %0, %c17_i32 : i32
    %87 = arith.index_cast %86 : i32 to index
    %88 = memref.load %arg1[%87] : memref<48xi32, #tpu.memory_space<smem>>
    %c0_i32_51 = arith.constant 0 : i32
    %89 = tpu.memref_slice %arg2[%88, %c0_i32_51] : memref<64x384xf32, #tpu.memory_space<any>> -> memref<1x384xf32, #tpu.memory_space<any>>
    %c17_i32_52 = arith.constant 17 : i32
    %c0_i32_53 = arith.constant 0 : i32
    %90 = tpu.memref_slice %arg4[%c17_i32_52, %c0_i32_53] : memref<48x384xf32, #tpu.memory_space<vmem>> -> memref<1x384xf32, #tpu.memory_space<vmem>>
    tpu.enqueue_dma source(%89 : memref<1x384xf32, #tpu.memory_space<any>>) target(%90 : memref<1x384xf32, #tpu.memory_space<vmem>>) target_semaphore(%arg5 : memref<!tpu.dma_semaphore, #tpu.memory_space<semaphore_mem>>)
    %c18_i32 = arith.constant 18 : i32
    %91 = arith.addi %0, %c18_i32 : i32
    %92 = arith.index_cast %91 : i32 to index
    %93 = memref.load %arg1[%92] : memref<48xi32, #tpu.memory_space<smem>>
    %c0_i32_54 = arith.constant 0 : i32
    %94 = tpu.memref_slice %arg2[%93, %c0_i32_54] : memref<64x384xf32, #tpu.memory_space<any>> -> memref<1x384xf32, #tpu.memory_space<any>>
    %c18_i32_55 = arith.constant 18 : i32
    %c0_i32_56 = arith.constant 0 : i32
    %95 = tpu.memref_slice %arg4[%c18_i32_55, %c0_i32_56] : memref<48x384xf32, #tpu.memory_space<vmem>> -> memref<1x384xf32, #tpu.memory_space<vmem>>
    tpu.enqueue_dma source(%94 : memref<1x384xf32, #tpu.memory_space<any>>) target(%95 : memref<1x384xf32, #tpu.memory_space<vmem>>) target_semaphore(%arg5 : memref<!tpu.dma_semaphore, #tpu.memory_space<semaphore_mem>>)
    %c19_i32 = arith.constant 19 : i32
    %96 = arith.addi %0, %c19_i32 : i32
    %97 = arith.index_cast %96 : i32 to index
    %98 = memref.load %arg1[%97] : memref<48xi32, #tpu.memory_space<smem>>
    %c0_i32_57 = arith.constant 0 : i32
    %99 = tpu.memref_slice %arg2[%98, %c0_i32_57] : memref<64x384xf32, #tpu.memory_space<any>> -> memref<1x384xf32, #tpu.memory_space<any>>
    %c19_i32_58 = arith.constant 19 : i32
    %c0_i32_59 = arith.constant 0 : i32
    %100 = tpu.memref_slice %arg4[%c19_i32_58, %c0_i32_59] : memref<48x384xf32, #tpu.memory_space<vmem>> -> memref<1x384xf32, #tpu.memory_space<vmem>>
    tpu.enqueue_dma source(%99 : memref<1x384xf32, #tpu.memory_space<any>>) target(%100 : memref<1x384xf32, #tpu.memory_space<vmem>>) target_semaphore(%arg5 : memref<!tpu.dma_semaphore, #tpu.memory_space<semaphore_mem>>)
    %c20_i32 = arith.constant 20 : i32
    %101 = arith.addi %0, %c20_i32 : i32
    %102 = arith.index_cast %101 : i32 to index
    %103 = memref.load %arg1[%102] : memref<48xi32, #tpu.memory_space<smem>>
    %c0_i32_60 = arith.constant 0 : i32
    %104 = tpu.memref_slice %arg2[%103, %c0_i32_60] : memref<64x384xf32, #tpu.memory_space<any>> -> memref<1x384xf32, #tpu.memory_space<any>>
    %c20_i32_61 = arith.constant 20 : i32
    %c0_i32_62 = arith.constant 0 : i32
    %105 = tpu.memref_slice %arg4[%c20_i32_61, %c0_i32_62] : memref<48x384xf32, #tpu.memory_space<vmem>> -> memref<1x384xf32, #tpu.memory_space<vmem>>
    tpu.enqueue_dma source(%104 : memref<1x384xf32, #tpu.memory_space<any>>) target(%105 : memref<1x384xf32, #tpu.memory_space<vmem>>) target_semaphore(%arg5 : memref<!tpu.dma_semaphore, #tpu.memory_space<semaphore_mem>>)
    %c21_i32 = arith.constant 21 : i32
    %106 = arith.addi %0, %c21_i32 : i32
    %107 = arith.index_cast %106 : i32 to index
    %108 = memref.load %arg1[%107] : memref<48xi32, #tpu.memory_space<smem>>
    %c0_i32_63 = arith.constant 0 : i32
    %109 = tpu.memref_slice %arg2[%108, %c0_i32_63] : memref<64x384xf32, #tpu.memory_space<any>> -> memref<1x384xf32, #tpu.memory_space<any>>
    %c21_i32_64 = arith.constant 21 : i32
    %c0_i32_65 = arith.constant 0 : i32
    %110 = tpu.memref_slice %arg4[%c21_i32_64, %c0_i32_65] : memref<48x384xf32, #tpu.memory_space<vmem>> -> memref<1x384xf32, #tpu.memory_space<vmem>>
    tpu.enqueue_dma source(%109 : memref<1x384xf32, #tpu.memory_space<any>>) target(%110 : memref<1x384xf32, #tpu.memory_space<vmem>>) target_semaphore(%arg5 : memref<!tpu.dma_semaphore, #tpu.memory_space<semaphore_mem>>)
    %c22_i32 = arith.constant 22 : i32
    %111 = arith.addi %0, %c22_i32 : i32
    %112 = arith.index_cast %111 : i32 to index
    %113 = memref.load %arg1[%112] : memref<48xi32, #tpu.memory_space<smem>>
    %c0_i32_66 = arith.constant 0 : i32
    %114 = tpu.memref_slice %arg2[%113, %c0_i32_66] : memref<64x384xf32, #tpu.memory_space<any>> -> memref<1x384xf32, #tpu.memory_space<any>>
    %c22_i32_67 = arith.constant 22 : i32
    %c0_i32_68 = arith.constant 0 : i32
    %115 = tpu.memref_slice %arg4[%c22_i32_67, %c0_i32_68] : memref<48x384xf32, #tpu.memory_space<vmem>> -> memref<1x384xf32, #tpu.memory_space<vmem>>
    tpu.enqueue_dma source(%114 : memref<1x384xf32, #tpu.memory_space<any>>) target(%115 : memref<1x384xf32, #tpu.memory_space<vmem>>) target_semaphore(%arg5 : memref<!tpu.dma_semaphore, #tpu.memory_space<semaphore_mem>>)
    %c23_i32 = arith.constant 23 : i32
    %116 = arith.addi %0, %c23_i32 : i32
    %117 = arith.index_cast %116 : i32 to index
    %118 = memref.load %arg1[%117] : memref<48xi32, #tpu.memory_space<smem>>
    %c0_i32_69 = arith.constant 0 : i32
    %119 = tpu.memref_slice %arg2[%118, %c0_i32_69] : memref<64x384xf32, #tpu.memory_space<any>> -> memref<1x384xf32, #tpu.memory_space<any>>
    %c23_i32_70 = arith.constant 23 : i32
    %c0_i32_71 = arith.constant 0 : i32
    %120 = tpu.memref_slice %arg4[%c23_i32_70, %c0_i32_71] : memref<48x384xf32, #tpu.memory_space<vmem>> -> memref<1x384xf32, #tpu.memory_space<vmem>>
    tpu.enqueue_dma source(%119 : memref<1x384xf32, #tpu.memory_space<any>>) target(%120 : memref<1x384xf32, #tpu.memory_space<vmem>>) target_semaphore(%arg5 : memref<!tpu.dma_semaphore, #tpu.memory_space<semaphore_mem>>)
    %c24_i32 = arith.constant 24 : i32
    %121 = arith.addi %0, %c24_i32 : i32
    %122 = arith.index_cast %121 : i32 to index
    %123 = memref.load %arg1[%122] : memref<48xi32, #tpu.memory_space<smem>>
    %c0_i32_72 = arith.constant 0 : i32
    %124 = tpu.memref_slice %arg2[%123, %c0_i32_72] : memref<64x384xf32, #tpu.memory_space<any>> -> memref<1x384xf32, #tpu.memory_space<any>>
    %c24_i32_73 = arith.constant 24 : i32
    %c0_i32_74 = arith.constant 0 : i32
    %125 = tpu.memref_slice %arg4[%c24_i32_73, %c0_i32_74] : memref<48x384xf32, #tpu.memory_space<vmem>> -> memref<1x384xf32, #tpu.memory_space<vmem>>
    tpu.enqueue_dma source(%124 : memref<1x384xf32, #tpu.memory_space<any>>) target(%125 : memref<1x384xf32, #tpu.memory_space<vmem>>) target_semaphore(%arg5 : memref<!tpu.dma_semaphore, #tpu.memory_space<semaphore_mem>>)
    %c25_i32 = arith.constant 25 : i32
    %126 = arith.addi %0, %c25_i32 : i32
    %127 = arith.index_cast %126 : i32 to index
    %128 = memref.load %arg1[%127] : memref<48xi32, #tpu.memory_space<smem>>
    %c0_i32_75 = arith.constant 0 : i32
    %129 = tpu.memref_slice %arg2[%128, %c0_i32_75] : memref<64x384xf32, #tpu.memory_space<any>> -> memref<1x384xf32, #tpu.memory_space<any>>
    %c25_i32_76 = arith.constant 25 : i32
    %c0_i32_77 = arith.constant 0 : i32
    %130 = tpu.memref_slice %arg4[%c25_i32_76, %c0_i32_77] : memref<48x384xf32, #tpu.memory_space<vmem>> -> memref<1x384xf32, #tpu.memory_space<vmem>>
    tpu.enqueue_dma source(%129 : memref<1x384xf32, #tpu.memory_space<any>>) target(%130 : memref<1x384xf32, #tpu.memory_space<vmem>>) target_semaphore(%arg5 : memref<!tpu.dma_semaphore, #tpu.memory_space<semaphore_mem>>)
    %c26_i32 = arith.constant 26 : i32
    %131 = arith.addi %0, %c26_i32 : i32
    %132 = arith.index_cast %131 : i32 to index
    %133 = memref.load %arg1[%132] : memref<48xi32, #tpu.memory_space<smem>>
    %c0_i32_78 = arith.constant 0 : i32
    %134 = tpu.memref_slice %arg2[%133, %c0_i32_78] : memref<64x384xf32, #tpu.memory_space<any>> -> memref<1x384xf32, #tpu.memory_space<any>>
    %c26_i32_79 = arith.constant 26 : i32
    %c0_i32_80 = arith.constant 0 : i32
    %135 = tpu.memref_slice %arg4[%c26_i32_79, %c0_i32_80] : memref<48x384xf32, #tpu.memory_space<vmem>> -> memref<1x384xf32, #tpu.memory_space<vmem>>
    tpu.enqueue_dma source(%134 : memref<1x384xf32, #tpu.memory_space<any>>) target(%135 : memref<1x384xf32, #tpu.memory_space<vmem>>) target_semaphore(%arg5 : memref<!tpu.dma_semaphore, #tpu.memory_space<semaphore_mem>>)
    %c27_i32 = arith.constant 27 : i32
    %136 = arith.addi %0, %c27_i32 : i32
    %137 = arith.index_cast %136 : i32 to index
    %138 = memref.load %arg1[%137] : memref<48xi32, #tpu.memory_space<smem>>
    %c0_i32_81 = arith.constant 0 : i32
    %139 = tpu.memref_slice %arg2[%138, %c0_i32_81] : memref<64x384xf32, #tpu.memory_space<any>> -> memref<1x384xf32, #tpu.memory_space<any>>
    %c27_i32_82 = arith.constant 27 : i32
    %c0_i32_83 = arith.constant 0 : i32
    %140 = tpu.memref_slice %arg4[%c27_i32_82, %c0_i32_83] : memref<48x384xf32, #tpu.memory_space<vmem>> -> memref<1x384xf32, #tpu.memory_space<vmem>>
    tpu.enqueue_dma source(%139 : memref<1x384xf32, #tpu.memory_space<any>>) target(%140 : memref<1x384xf32, #tpu.memory_space<vmem>>) target_semaphore(%arg5 : memref<!tpu.dma_semaphore, #tpu.memory_space<semaphore_mem>>)
    %c28_i32 = arith.constant 28 : i32
    %141 = arith.addi %0, %c28_i32 : i32
    %142 = arith.index_cast %141 : i32 to index
    %143 = memref.load %arg1[%142] : memref<48xi32, #tpu.memory_space<smem>>
    %c0_i32_84 = arith.constant 0 : i32
    %144 = tpu.memref_slice %arg2[%143, %c0_i32_84] : memref<64x384xf32, #tpu.memory_space<any>> -> memref<1x384xf32, #tpu.memory_space<any>>
    %c28_i32_85 = arith.constant 28 : i32
    %c0_i32_86 = arith.constant 0 : i32
    %145 = tpu.memref_slice %arg4[%c28_i32_85, %c0_i32_86] : memref<48x384xf32, #tpu.memory_space<vmem>> -> memref<1x384xf32, #tpu.memory_space<vmem>>
    tpu.enqueue_dma source(%144 : memref<1x384xf32, #tpu.memory_space<any>>) target(%145 : memref<1x384xf32, #tpu.memory_space<vmem>>) target_semaphore(%arg5 : memref<!tpu.dma_semaphore, #tpu.memory_space<semaphore_mem>>)
    %c29_i32 = arith.constant 29 : i32
    %146 = arith.addi %0, %c29_i32 : i32
    %147 = arith.index_cast %146 : i32 to index
    %148 = memref.load %arg1[%147] : memref<48xi32, #tpu.memory_space<smem>>
    %c0_i32_87 = arith.constant 0 : i32
    %149 = tpu.memref_slice %arg2[%148, %c0_i32_87] : memref<64x384xf32, #tpu.memory_space<any>> -> memref<1x384xf32, #tpu.memory_space<any>>
    %c29_i32_88 = arith.constant 29 : i32
    %c0_i32_89 = arith.constant 0 : i32
    %150 = tpu.memref_slice %arg4[%c29_i32_88, %c0_i32_89] : memref<48x384xf32, #tpu.memory_space<vmem>> -> memref<1x384xf32, #tpu.memory_space<vmem>>
    tpu.enqueue_dma source(%149 : memref<1x384xf32, #tpu.memory_space<any>>) target(%150 : memref<1x384xf32, #tpu.memory_space<vmem>>) target_semaphore(%arg5 : memref<!tpu.dma_semaphore, #tpu.memory_space<semaphore_mem>>)
    %c30_i32 = arith.constant 30 : i32
    %151 = arith.addi %0, %c30_i32 : i32
    %152 = arith.index_cast %151 : i32 to index
    %153 = memref.load %arg1[%152] : memref<48xi32, #tpu.memory_space<smem>>
    %c0_i32_90 = arith.constant 0 : i32
    %154 = tpu.memref_slice %arg2[%153, %c0_i32_90] : memref<64x384xf32, #tpu.memory_space<any>> -> memref<1x384xf32, #tpu.memory_space<any>>
    %c30_i32_91 = arith.constant 30 : i32
    %c0_i32_92 = arith.constant 0 : i32
    %155 = tpu.memref_slice %arg4[%c30_i32_91, %c0_i32_92] : memref<48x384xf32, #tpu.memory_space<vmem>> -> memref<1x384xf32, #tpu.memory_space<vmem>>
    tpu.enqueue_dma source(%154 : memref<1x384xf32, #tpu.memory_space<any>>) target(%155 : memref<1x384xf32, #tpu.memory_space<vmem>>) target_semaphore(%arg5 : memref<!tpu.dma_semaphore, #tpu.memory_space<semaphore_mem>>)
    %c31_i32 = arith.constant 31 : i32
    %156 = arith.addi %0, %c31_i32 : i32
    %157 = arith.index_cast %156 : i32 to index
    %158 = memref.load %arg1[%157] : memref<48xi32, #tpu.memory_space<smem>>
    %c0_i32_93 = arith.constant 0 : i32
    %159 = tpu.memref_slice %arg2[%158, %c0_i32_93] : memref<64x384xf32, #tpu.memory_space<any>> -> memref<1x384xf32, #tpu.memory_space<any>>
    %c31_i32_94 = arith.constant 31 : i32
    %c0_i32_95 = arith.constant 0 : i32
    %160 = tpu.memref_slice %arg4[%c31_i32_94, %c0_i32_95] : memref<48x384xf32, #tpu.memory_space<vmem>> -> memref<1x384xf32, #tpu.memory_space<vmem>>
    tpu.enqueue_dma source(%159 : memref<1x384xf32, #tpu.memory_space<any>>) target(%160 : memref<1x384xf32, #tpu.memory_space<vmem>>) target_semaphore(%arg5 : memref<!tpu.dma_semaphore, #tpu.memory_space<semaphore_mem>>)
    %c32_i32 = arith.constant 32 : i32
    %161 = arith.addi %0, %c32_i32 : i32
    %162 = arith.index_cast %161 : i32 to index
    %163 = memref.load %arg1[%162] : memref<48xi32, #tpu.memory_space<smem>>
    %c0_i32_96 = arith.constant 0 : i32
    %164 = tpu.memref_slice %arg2[%163, %c0_i32_96] : memref<64x384xf32, #tpu.memory_space<any>> -> memref<1x384xf32, #tpu.memory_space<any>>
    %c32_i32_97 = arith.constant 32 : i32
    %c0_i32_98 = arith.constant 0 : i32
    %165 = tpu.memref_slice %arg4[%c32_i32_97, %c0_i32_98] : memref<48x384xf32, #tpu.memory_space<vmem>> -> memref<1x384xf32, #tpu.memory_space<vmem>>
    tpu.enqueue_dma source(%164 : memref<1x384xf32, #tpu.memory_space<any>>) target(%165 : memref<1x384xf32, #tpu.memory_space<vmem>>) target_semaphore(%arg5 : memref<!tpu.dma_semaphore, #tpu.memory_space<semaphore_mem>>)
    %c33_i32 = arith.constant 33 : i32
    %166 = arith.addi %0, %c33_i32 : i32
    %167 = arith.index_cast %166 : i32 to index
    %168 = memref.load %arg1[%167] : memref<48xi32, #tpu.memory_space<smem>>
    %c0_i32_99 = arith.constant 0 : i32
    %169 = tpu.memref_slice %arg2[%168, %c0_i32_99] : memref<64x384xf32, #tpu.memory_space<any>> -> memref<1x384xf32, #tpu.memory_space<any>>
    %c33_i32_100 = arith.constant 33 : i32
    %c0_i32_101 = arith.constant 0 : i32
    %170 = tpu.memref_slice %arg4[%c33_i32_100, %c0_i32_101] : memref<48x384xf32, #tpu.memory_space<vmem>> -> memref<1x384xf32, #tpu.memory_space<vmem>>
    tpu.enqueue_dma source(%169 : memref<1x384xf32, #tpu.memory_space<any>>) target(%170 : memref<1x384xf32, #tpu.memory_space<vmem>>) target_semaphore(%arg5 : memref<!tpu.dma_semaphore, #tpu.memory_space<semaphore_mem>>)
    %c34_i32 = arith.constant 34 : i32
    %171 = arith.addi %0, %c34_i32 : i32
    %172 = arith.index_cast %171 : i32 to index
    %173 = memref.load %arg1[%172] : memref<48xi32, #tpu.memory_space<smem>>
    %c0_i32_102 = arith.constant 0 : i32
    %174 = tpu.memref_slice %arg2[%173, %c0_i32_102] : memref<64x384xf32, #tpu.memory_space<any>> -> memref<1x384xf32, #tpu.memory_space<any>>
    %c34_i32_103 = arith.constant 34 : i32
    %c0_i32_104 = arith.constant 0 : i32
    %175 = tpu.memref_slice %arg4[%c34_i32_103, %c0_i32_104] : memref<48x384xf32, #tpu.memory_space<vmem>> -> memref<1x384xf32, #tpu.memory_space<vmem>>
    tpu.enqueue_dma source(%174 : memref<1x384xf32, #tpu.memory_space<any>>) target(%175 : memref<1x384xf32, #tpu.memory_space<vmem>>) target_semaphore(%arg5 : memref<!tpu.dma_semaphore, #tpu.memory_space<semaphore_mem>>)
    %c35_i32 = arith.constant 35 : i32
    %176 = arith.addi %0, %c35_i32 : i32
    %177 = arith.index_cast %176 : i32 to index
    %178 = memref.load %arg1[%177] : memref<48xi32, #tpu.memory_space<smem>>
    %c0_i32_105 = arith.constant 0 : i32
    %179 = tpu.memref_slice %arg2[%178, %c0_i32_105] : memref<64x384xf32, #tpu.memory_space<any>> -> memref<1x384xf32, #tpu.memory_space<any>>
    %c35_i32_106 = arith.constant 35 : i32
    %c0_i32_107 = arith.constant 0 : i32
    %180 = tpu.memref_slice %arg4[%c35_i32_106, %c0_i32_107] : memref<48x384xf32, #tpu.memory_space<vmem>> -> memref<1x384xf32, #tpu.memory_space<vmem>>
    tpu.enqueue_dma source(%179 : memref<1x384xf32, #tpu.memory_space<any>>) target(%180 : memref<1x384xf32, #tpu.memory_space<vmem>>) target_semaphore(%arg5 : memref<!tpu.dma_semaphore, #tpu.memory_space<semaphore_mem>>)
    %c36_i32 = arith.constant 36 : i32
    %181 = arith.addi %0, %c36_i32 : i32
    %182 = arith.index_cast %181 : i32 to index
    %183 = memref.load %arg1[%182] : memref<48xi32, #tpu.memory_space<smem>>
    %c0_i32_108 = arith.constant 0 : i32
    %184 = tpu.memref_slice %arg2[%183, %c0_i32_108] : memref<64x384xf32, #tpu.memory_space<any>> -> memref<1x384xf32, #tpu.memory_space<any>>
    %c36_i32_109 = arith.constant 36 : i32
    %c0_i32_110 = arith.constant 0 : i32
    %185 = tpu.memref_slice %arg4[%c36_i32_109, %c0_i32_110] : memref<48x384xf32, #tpu.memory_space<vmem>> -> memref<1x384xf32, #tpu.memory_space<vmem>>
    tpu.enqueue_dma source(%184 : memref<1x384xf32, #tpu.memory_space<any>>) target(%185 : memref<1x384xf32, #tpu.memory_space<vmem>>) target_semaphore(%arg5 : memref<!tpu.dma_semaphore, #tpu.memory_space<semaphore_mem>>)
    %c37_i32 = arith.constant 37 : i32
    %186 = arith.addi %0, %c37_i32 : i32
    %187 = arith.index_cast %186 : i32 to index
    %188 = memref.load %arg1[%187] : memref<48xi32, #tpu.memory_space<smem>>
    %c0_i32_111 = arith.constant 0 : i32
    %189 = tpu.memref_slice %arg2[%188, %c0_i32_111] : memref<64x384xf32, #tpu.memory_space<any>> -> memref<1x384xf32, #tpu.memory_space<any>>
    %c37_i32_112 = arith.constant 37 : i32
    %c0_i32_113 = arith.constant 0 : i32
    %190 = tpu.memref_slice %arg4[%c37_i32_112, %c0_i32_113] : memref<48x384xf32, #tpu.memory_space<vmem>> -> memref<1x384xf32, #tpu.memory_space<vmem>>
    tpu.enqueue_dma source(%189 : memref<1x384xf32, #tpu.memory_space<any>>) target(%190 : memref<1x384xf32, #tpu.memory_space<vmem>>) target_semaphore(%arg5 : memref<!tpu.dma_semaphore, #tpu.memory_space<semaphore_mem>>)
    %c38_i32 = arith.constant 38 : i32
    %191 = arith.addi %0, %c38_i32 : i32
    %192 = arith.index_cast %191 : i32 to index
    %193 = memref.load %arg1[%192] : memref<48xi32, #tpu.memory_space<smem>>
    %c0_i32_114 = arith.constant 0 : i32
    %194 = tpu.memref_slice %arg2[%193, %c0_i32_114] : memref<64x384xf32, #tpu.memory_space<any>> -> memref<1x384xf32, #tpu.memory_space<any>>
    %c38_i32_115 = arith.constant 38 : i32
    %c0_i32_116 = arith.constant 0 : i32
    %195 = tpu.memref_slice %arg4[%c38_i32_115, %c0_i32_116] : memref<48x384xf32, #tpu.memory_space<vmem>> -> memref<1x384xf32, #tpu.memory_space<vmem>>
    tpu.enqueue_dma source(%194 : memref<1x384xf32, #tpu.memory_space<any>>) target(%195 : memref<1x384xf32, #tpu.memory_space<vmem>>) target_semaphore(%arg5 : memref<!tpu.dma_semaphore, #tpu.memory_space<semaphore_mem>>)
    %c39_i32 = arith.constant 39 : i32
    %196 = arith.addi %0, %c39_i32 : i32
    %197 = arith.index_cast %196 : i32 to index
    %198 = memref.load %arg1[%197] : memref<48xi32, #tpu.memory_space<smem>>
    %c0_i32_117 = arith.constant 0 : i32
    %199 = tpu.memref_slice %arg2[%198, %c0_i32_117] : memref<64x384xf32, #tpu.memory_space<any>> -> memref<1x384xf32, #tpu.memory_space<any>>
    %c39_i32_118 = arith.constant 39 : i32
    %c0_i32_119 = arith.constant 0 : i32
    %200 = tpu.memref_slice %arg4[%c39_i32_118, %c0_i32_119] : memref<48x384xf32, #tpu.memory_space<vmem>> -> memref<1x384xf32, #tpu.memory_space<vmem>>
    tpu.enqueue_dma source(%199 : memref<1x384xf32, #tpu.memory_space<any>>) target(%200 : memref<1x384xf32, #tpu.memory_space<vmem>>) target_semaphore(%arg5 : memref<!tpu.dma_semaphore, #tpu.memory_space<semaphore_mem>>)
    %c40_i32 = arith.constant 40 : i32
    %201 = arith.addi %0, %c40_i32 : i32
    %202 = arith.index_cast %201 : i32 to index
    %203 = memref.load %arg1[%202] : memref<48xi32, #tpu.memory_space<smem>>
    %c0_i32_120 = arith.constant 0 : i32
    %204 = tpu.memref_slice %arg2[%203, %c0_i32_120] : memref<64x384xf32, #tpu.memory_space<any>> -> memref<1x384xf32, #tpu.memory_space<any>>
    %c40_i32_121 = arith.constant 40 : i32
    %c0_i32_122 = arith.constant 0 : i32
    %205 = tpu.memref_slice %arg4[%c40_i32_121, %c0_i32_122] : memref<48x384xf32, #tpu.memory_space<vmem>> -> memref<1x384xf32, #tpu.memory_space<vmem>>
    tpu.enqueue_dma source(%204 : memref<1x384xf32, #tpu.memory_space<any>>) target(%205 : memref<1x384xf32, #tpu.memory_space<vmem>>) target_semaphore(%arg5 : memref<!tpu.dma_semaphore, #tpu.memory_space<semaphore_mem>>)
    %c41_i32 = arith.constant 41 : i32
    %206 = arith.addi %0, %c41_i32 : i32
    %207 = arith.index_cast %206 : i32 to index
    %208 = memref.load %arg1[%207] : memref<48xi32, #tpu.memory_space<smem>>
    %c0_i32_123 = arith.constant 0 : i32
    %209 = tpu.memref_slice %arg2[%208, %c0_i32_123] : memref<64x384xf32, #tpu.memory_space<any>> -> memref<1x384xf32, #tpu.memory_space<any>>
    %c41_i32_124 = arith.constant 41 : i32
    %c0_i32_125 = arith.constant 0 : i32
    %210 = tpu.memref_slice %arg4[%c41_i32_124, %c0_i32_125] : memref<48x384xf32, #tpu.memory_space<vmem>> -> memref<1x384xf32, #tpu.memory_space<vmem>>
    tpu.enqueue_dma source(%209 : memref<1x384xf32, #tpu.memory_space<any>>) target(%210 : memref<1x384xf32, #tpu.memory_space<vmem>>) target_semaphore(%arg5 : memref<!tpu.dma_semaphore, #tpu.memory_space<semaphore_mem>>)
    %c42_i32 = arith.constant 42 : i32
    %211 = arith.addi %0, %c42_i32 : i32
    %212 = arith.index_cast %211 : i32 to index
    %213 = memref.load %arg1[%212] : memref<48xi32, #tpu.memory_space<smem>>
    %c0_i32_126 = arith.constant 0 : i32
    %214 = tpu.memref_slice %arg2[%213, %c0_i32_126] : memref<64x384xf32, #tpu.memory_space<any>> -> memref<1x384xf32, #tpu.memory_space<any>>
    %c42_i32_127 = arith.constant 42 : i32
    %c0_i32_128 = arith.constant 0 : i32
    %215 = tpu.memref_slice %arg4[%c42_i32_127, %c0_i32_128] : memref<48x384xf32, #tpu.memory_space<vmem>> -> memref<1x384xf32, #tpu.memory_space<vmem>>
    tpu.enqueue_dma source(%214 : memref<1x384xf32, #tpu.memory_space<any>>) target(%215 : memref<1x384xf32, #tpu.memory_space<vmem>>) target_semaphore(%arg5 : memref<!tpu.dma_semaphore, #tpu.memory_space<semaphore_mem>>)
    %c43_i32 = arith.constant 43 : i32
    %216 = arith.addi %0, %c43_i32 : i32
    %217 = arith.index_cast %216 : i32 to index
    %218 = memref.load %arg1[%217] : memref<48xi32, #tpu.memory_space<smem>>
    %c0_i32_129 = arith.constant 0 : i32
    %219 = tpu.memref_slice %arg2[%218, %c0_i32_129] : memref<64x384xf32, #tpu.memory_space<any>> -> memref<1x384xf32, #tpu.memory_space<any>>
    %c43_i32_130 = arith.constant 43 : i32
    %c0_i32_131 = arith.constant 0 : i32
    %220 = tpu.memref_slice %arg4[%c43_i32_130, %c0_i32_131] : memref<48x384xf32, #tpu.memory_space<vmem>> -> memref<1x384xf32, #tpu.memory_space<vmem>>
    tpu.enqueue_dma source(%219 : memref<1x384xf32, #tpu.memory_space<any>>) target(%220 : memref<1x384xf32, #tpu.memory_space<vmem>>) target_semaphore(%arg5 : memref<!tpu.dma_semaphore, #tpu.memory_space<semaphore_mem>>)
    %c44_i32 = arith.constant 44 : i32
    %221 = arith.addi %0, %c44_i32 : i32
    %222 = arith.index_cast %221 : i32 to index
    %223 = memref.load %arg1[%222] : memref<48xi32, #tpu.memory_space<smem>>
    %c0_i32_132 = arith.constant 0 : i32
    %224 = tpu.memref_slice %arg2[%223, %c0_i32_132] : memref<64x384xf32, #tpu.memory_space<any>> -> memref<1x384xf32, #tpu.memory_space<any>>
    %c44_i32_133 = arith.constant 44 : i32
    %c0_i32_134 = arith.constant 0 : i32
    %225 = tpu.memref_slice %arg4[%c44_i32_133, %c0_i32_134] : memref<48x384xf32, #tpu.memory_space<vmem>> -> memref<1x384xf32, #tpu.memory_space<vmem>>
    tpu.enqueue_dma source(%224 : memref<1x384xf32, #tpu.memory_space<any>>) target(%225 : memref<1x384xf32, #tpu.memory_space<vmem>>) target_semaphore(%arg5 : memref<!tpu.dma_semaphore, #tpu.memory_space<semaphore_mem>>)
    %c45_i32 = arith.constant 45 : i32
    %226 = arith.addi %0, %c45_i32 : i32
    %227 = arith.index_cast %226 : i32 to index
    %228 = memref.load %arg1[%227] : memref<48xi32, #tpu.memory_space<smem>>
    %c0_i32_135 = arith.constant 0 : i32
    %229 = tpu.memref_slice %arg2[%228, %c0_i32_135] : memref<64x384xf32, #tpu.memory_space<any>> -> memref<1x384xf32, #tpu.memory_space<any>>
    %c45_i32_136 = arith.constant 45 : i32
    %c0_i32_137 = arith.constant 0 : i32
    %230 = tpu.memref_slice %arg4[%c45_i32_136, %c0_i32_137] : memref<48x384xf32, #tpu.memory_space<vmem>> -> memref<1x384xf32, #tpu.memory_space<vmem>>
    tpu.enqueue_dma source(%229 : memref<1x384xf32, #tpu.memory_space<any>>) target(%230 : memref<1x384xf32, #tpu.memory_space<vmem>>) target_semaphore(%arg5 : memref<!tpu.dma_semaphore, #tpu.memory_space<semaphore_mem>>)
    %c46_i32 = arith.constant 46 : i32
    %231 = arith.addi %0, %c46_i32 : i32
    %232 = arith.index_cast %231 : i32 to index
    %233 = memref.load %arg1[%232] : memref<48xi32, #tpu.memory_space<smem>>
    %c0_i32_138 = arith.constant 0 : i32
    %234 = tpu.memref_slice %arg2[%233, %c0_i32_138] : memref<64x384xf32, #tpu.memory_space<any>> -> memref<1x384xf32, #tpu.memory_space<any>>
    %c46_i32_139 = arith.constant 46 : i32
    %c0_i32_140 = arith.constant 0 : i32
    %235 = tpu.memref_slice %arg4[%c46_i32_139, %c0_i32_140] : memref<48x384xf32, #tpu.memory_space<vmem>> -> memref<1x384xf32, #tpu.memory_space<vmem>>
    tpu.enqueue_dma source(%234 : memref<1x384xf32, #tpu.memory_space<any>>) target(%235 : memref<1x384xf32, #tpu.memory_space<vmem>>) target_semaphore(%arg5 : memref<!tpu.dma_semaphore, #tpu.memory_space<semaphore_mem>>)
    %c47_i32 = arith.constant 47 : i32
    %236 = arith.addi %0, %c47_i32 : i32
    %237 = arith.index_cast %236 : i32 to index
    %238 = memref.load %arg1[%237] : memref<48xi32, #tpu.memory_space<smem>>
    %c0_i32_141 = arith.constant 0 : i32
    %239 = tpu.memref_slice %arg2[%238, %c0_i32_141] : memref<64x384xf32, #tpu.memory_space<any>> -> memref<1x384xf32, #tpu.memory_space<any>>
    %c47_i32_142 = arith.constant 47 : i32
    %c0_i32_143 = arith.constant 0 : i32
    %240 = tpu.memref_slice %arg4[%c47_i32_142, %c0_i32_143] : memref<48x384xf32, #tpu.memory_space<vmem>> -> memref<1x384xf32, #tpu.memory_space<vmem>>
    tpu.enqueue_dma source(%239 : memref<1x384xf32, #tpu.memory_space<any>>) target(%240 : memref<1x384xf32, #tpu.memory_space<vmem>>) target_semaphore(%arg5 : memref<!tpu.dma_semaphore, #tpu.memory_space<semaphore_mem>>)
    %c0_i32_144 = arith.constant 0 : i32
    %c0_i32_145 = arith.constant 0 : i32
    %241 = tpu.memref_slice %arg2[%c0_i32_144, %c0_i32_145] : memref<64x384xf32, #tpu.memory_space<any>> -> memref<1x384xf32, #tpu.memory_space<any>>
    %c0_i32_146 = arith.constant 0 : i32
    %c0_i32_147 = arith.constant 0 : i32
    %242 = tpu.memref_slice %arg4[%c0_i32_146, %c0_i32_147] : memref<48x384xf32, #tpu.memory_space<vmem>> -> memref<1x384xf32, #tpu.memory_space<vmem>>
    tpu.wait_dma2 semaphore(%arg5 : memref<!tpu.dma_semaphore, #tpu.memory_space<semaphore_mem>>) src(%241 : memref<1x384xf32, #tpu.memory_space<any>>) dst(%242 : memref<1x384xf32, #tpu.memory_space<vmem>>)
    %c0_i32_148 = arith.constant 0 : i32
    %c0_i32_149 = arith.constant 0 : i32
    %243 = tpu.memref_slice %arg2[%c0_i32_148, %c0_i32_149] : memref<64x384xf32, #tpu.memory_space<any>> -> memref<1x384xf32, #tpu.memory_space<any>>
    %c1_i32_150 = arith.constant 1 : i32
    %c0_i32_151 = arith.constant 0 : i32
    %244 = tpu.memref_slice %arg4[%c1_i32_150, %c0_i32_151] : memref<48x384xf32, #tpu.memory_space<vmem>> -> memref<1x384xf32, #tpu.memory_space<vmem>>
    tpu.wait_dma2 semaphore(%arg5 : memref<!tpu.dma_semaphore, #tpu.memory_space<semaphore_mem>>) src(%243 : memref<1x384xf32, #tpu.memory_space<any>>) dst(%244 : memref<1x384xf32, #tpu.memory_space<vmem>>)
    %c0_i32_152 = arith.constant 0 : i32
    %c0_i32_153 = arith.constant 0 : i32
    %245 = tpu.memref_slice %arg2[%c0_i32_152, %c0_i32_153] : memref<64x384xf32, #tpu.memory_space<any>> -> memref<1x384xf32, #tpu.memory_space<any>>
    %c2_i32_154 = arith.constant 2 : i32
    %c0_i32_155 = arith.constant 0 : i32
    %246 = tpu.memref_slice %arg4[%c2_i32_154, %c0_i32_155] : memref<48x384xf32, #tpu.memory_space<vmem>> -> memref<1x384xf32, #tpu.memory_space<vmem>>
    tpu.wait_dma2 semaphore(%arg5 : memref<!tpu.dma_semaphore, #tpu.memory_space<semaphore_mem>>) src(%245 : memref<1x384xf32, #tpu.memory_space<any>>) dst(%246 : memref<1x384xf32, #tpu.memory_space<vmem>>)
    %c0_i32_156 = arith.constant 0 : i32
    %c0_i32_157 = arith.constant 0 : i32
    %247 = tpu.memref_slice %arg2[%c0_i32_156, %c0_i32_157] : memref<64x384xf32, #tpu.memory_space<any>> -> memref<1x384xf32, #tpu.memory_space<any>>
    %c3_i32_158 = arith.constant 3 : i32
    %c0_i32_159 = arith.constant 0 : i32
    %248 = tpu.memref_slice %arg4[%c3_i32_158, %c0_i32_159] : memref<48x384xf32, #tpu.memory_space<vmem>> -> memref<1x384xf32, #tpu.memory_space<vmem>>
    tpu.wait_dma2 semaphore(%arg5 : memref<!tpu.dma_semaphore, #tpu.memory_space<semaphore_mem>>) src(%247 : memref<1x384xf32, #tpu.memory_space<any>>) dst(%248 : memref<1x384xf32, #tpu.memory_space<vmem>>)
    %c0_i32_160 = arith.constant 0 : i32
    %c0_i32_161 = arith.constant 0 : i32
    %249 = tpu.memref_slice %arg2[%c0_i32_160, %c0_i32_161] : memref<64x384xf32, #tpu.memory_space<any>> -> memref<1x384xf32, #tpu.memory_space<any>>
    %c4_i32_162 = arith.constant 4 : i32
    %c0_i32_163 = arith.constant 0 : i32
    %250 = tpu.memref_slice %arg4[%c4_i32_162, %c0_i32_163] : memref<48x384xf32, #tpu.memory_space<vmem>> -> memref<1x384xf32, #tpu.memory_space<vmem>>
    tpu.wait_dma2 semaphore(%arg5 : memref<!tpu.dma_semaphore, #tpu.memory_space<semaphore_mem>>) src(%249 : memref<1x384xf32, #tpu.memory_space<any>>) dst(%250 : memref<1x384xf32, #tpu.memory_space<vmem>>)
    %c0_i32_164 = arith.constant 0 : i32
    %c0_i32_165 = arith.constant 0 : i32
    %251 = tpu.memref_slice %arg2[%c0_i32_164, %c0_i32_165] : memref<64x384xf32, #tpu.memory_space<any>> -> memref<1x384xf32, #tpu.memory_space<any>>
    %c5_i32_166 = arith.constant 5 : i32
    %c0_i32_167 = arith.constant 0 : i32
    %252 = tpu.memref_slice %arg4[%c5_i32_166, %c0_i32_167] : memref<48x384xf32, #tpu.memory_space<vmem>> -> memref<1x384xf32, #tpu.memory_space<vmem>>
    tpu.wait_dma2 semaphore(%arg5 : memref<!tpu.dma_semaphore, #tpu.memory_space<semaphore_mem>>) src(%251 : memref<1x384xf32, #tpu.memory_space<any>>) dst(%252 : memref<1x384xf32, #tpu.memory_space<vmem>>)
    %c0_i32_168 = arith.constant 0 : i32
    %c0_i32_169 = arith.constant 0 : i32
    %253 = tpu.memref_slice %arg2[%c0_i32_168, %c0_i32_169] : memref<64x384xf32, #tpu.memory_space<any>> -> memref<1x384xf32, #tpu.memory_space<any>>
    %c6_i32_170 = arith.constant 6 : i32
    %c0_i32_171 = arith.constant 0 : i32
    %254 = tpu.memref_slice %arg4[%c6_i32_170, %c0_i32_171] : memref<48x384xf32, #tpu.memory_space<vmem>> -> memref<1x384xf32, #tpu.memory_space<vmem>>
    tpu.wait_dma2 semaphore(%arg5 : memref<!tpu.dma_semaphore, #tpu.memory_space<semaphore_mem>>) src(%253 : memref<1x384xf32, #tpu.memory_space<any>>) dst(%254 : memref<1x384xf32, #tpu.memory_space<vmem>>)
    %c0_i32_172 = arith.constant 0 : i32
    %c0_i32_173 = arith.constant 0 : i32
    %255 = tpu.memref_slice %arg2[%c0_i32_172, %c0_i32_173] : memref<64x384xf32, #tpu.memory_space<any>> -> memref<1x384xf32, #tpu.memory_space<any>>
    %c7_i32_174 = arith.constant 7 : i32
    %c0_i32_175 = arith.constant 0 : i32
    %256 = tpu.memref_slice %arg4[%c7_i32_174, %c0_i32_175] : memref<48x384xf32, #tpu.memory_space<vmem>> -> memref<1x384xf32, #tpu.memory_space<vmem>>
    tpu.wait_dma2 semaphore(%arg5 : memref<!tpu.dma_semaphore, #tpu.memory_space<semaphore_mem>>) src(%255 : memref<1x384xf32, #tpu.memory_space<any>>) dst(%256 : memref<1x384xf32, #tpu.memory_space<vmem>>)
    %c0_i32_176 = arith.constant 0 : i32
    %c0_i32_177 = arith.constant 0 : i32
    %257 = tpu.memref_slice %arg2[%c0_i32_176, %c0_i32_177] : memref<64x384xf32, #tpu.memory_space<any>> -> memref<1x384xf32, #tpu.memory_space<any>>
    %c8_i32_178 = arith.constant 8 : i32
    %c0_i32_179 = arith.constant 0 : i32
    %258 = tpu.memref_slice %arg4[%c8_i32_178, %c0_i32_179] : memref<48x384xf32, #tpu.memory_space<vmem>> -> memref<1x384xf32, #tpu.memory_space<vmem>>
    tpu.wait_dma2 semaphore(%arg5 : memref<!tpu.dma_semaphore, #tpu.memory_space<semaphore_mem>>) src(%257 : memref<1x384xf32, #tpu.memory_space<any>>) dst(%258 : memref<1x384xf32, #tpu.memory_space<vmem>>)
    %c0_i32_180 = arith.constant 0 : i32
    %c0_i32_181 = arith.constant 0 : i32
    %259 = tpu.memref_slice %arg2[%c0_i32_180, %c0_i32_181] : memref<64x384xf32, #tpu.memory_space<any>> -> memref<1x384xf32, #tpu.memory_space<any>>
    %c9_i32_182 = arith.constant 9 : i32
    %c0_i32_183 = arith.constant 0 : i32
    %260 = tpu.memref_slice %arg4[%c9_i32_182, %c0_i32_183] : memref<48x384xf32, #tpu.memory_space<vmem>> -> memref<1x384xf32, #tpu.memory_space<vmem>>
    tpu.wait_dma2 semaphore(%arg5 : memref<!tpu.dma_semaphore, #tpu.memory_space<semaphore_mem>>) src(%259 : memref<1x384xf32, #tpu.memory_space<any>>) dst(%260 : memref<1x384xf32, #tpu.memory_space<vmem>>)
    %c0_i32_184 = arith.constant 0 : i32
    %c0_i32_185 = arith.constant 0 : i32
    %261 = tpu.memref_slice %arg2[%c0_i32_184, %c0_i32_185] : memref<64x384xf32, #tpu.memory_space<any>> -> memref<1x384xf32, #tpu.memory_space<any>>
    %c10_i32_186 = arith.constant 10 : i32
    %c0_i32_187 = arith.constant 0 : i32
    %262 = tpu.memref_slice %arg4[%c10_i32_186, %c0_i32_187] : memref<48x384xf32, #tpu.memory_space<vmem>> -> memref<1x384xf32, #tpu.memory_space<vmem>>
    tpu.wait_dma2 semaphore(%arg5 : memref<!tpu.dma_semaphore, #tpu.memory_space<semaphore_mem>>) src(%261 : memref<1x384xf32, #tpu.memory_space<any>>) dst(%262 : memref<1x384xf32, #tpu.memory_space<vmem>>)
    %c0_i32_188 = arith.constant 0 : i32
    %c0_i32_189 = arith.constant 0 : i32
    %263 = tpu.memref_slice %arg2[%c0_i32_188, %c0_i32_189] : memref<64x384xf32, #tpu.memory_space<any>> -> memref<1x384xf32, #tpu.memory_space<any>>
    %c11_i32_190 = arith.constant 11 : i32
    %c0_i32_191 = arith.constant 0 : i32
    %264 = tpu.memref_slice %arg4[%c11_i32_190, %c0_i32_191] : memref<48x384xf32, #tpu.memory_space<vmem>> -> memref<1x384xf32, #tpu.memory_space<vmem>>
    tpu.wait_dma2 semaphore(%arg5 : memref<!tpu.dma_semaphore, #tpu.memory_space<semaphore_mem>>) src(%263 : memref<1x384xf32, #tpu.memory_space<any>>) dst(%264 : memref<1x384xf32, #tpu.memory_space<vmem>>)
    %c0_i32_192 = arith.constant 0 : i32
    %c0_i32_193 = arith.constant 0 : i32
    %265 = tpu.memref_slice %arg2[%c0_i32_192, %c0_i32_193] : memref<64x384xf32, #tpu.memory_space<any>> -> memref<1x384xf32, #tpu.memory_space<any>>
    %c12_i32_194 = arith.constant 12 : i32
    %c0_i32_195 = arith.constant 0 : i32
    %266 = tpu.memref_slice %arg4[%c12_i32_194, %c0_i32_195] : memref<48x384xf32, #tpu.memory_space<vmem>> -> memref<1x384xf32, #tpu.memory_space<vmem>>
    tpu.wait_dma2 semaphore(%arg5 : memref<!tpu.dma_semaphore, #tpu.memory_space<semaphore_mem>>) src(%265 : memref<1x384xf32, #tpu.memory_space<any>>) dst(%266 : memref<1x384xf32, #tpu.memory_space<vmem>>)
    %c0_i32_196 = arith.constant 0 : i32
    %c0_i32_197 = arith.constant 0 : i32
    %267 = tpu.memref_slice %arg2[%c0_i32_196, %c0_i32_197] : memref<64x384xf32, #tpu.memory_space<any>> -> memref<1x384xf32, #tpu.memory_space<any>>
    %c13_i32_198 = arith.constant 13 : i32
    %c0_i32_199 = arith.constant 0 : i32
    %268 = tpu.memref_slice %arg4[%c13_i32_198, %c0_i32_199] : memref<48x384xf32, #tpu.memory_space<vmem>> -> memref<1x384xf32, #tpu.memory_space<vmem>>
    tpu.wait_dma2 semaphore(%arg5 : memref<!tpu.dma_semaphore, #tpu.memory_space<semaphore_mem>>) src(%267 : memref<1x384xf32, #tpu.memory_space<any>>) dst(%268 : memref<1x384xf32, #tpu.memory_space<vmem>>)
    %c0_i32_200 = arith.constant 0 : i32
    %c0_i32_201 = arith.constant 0 : i32
    %269 = tpu.memref_slice %arg2[%c0_i32_200, %c0_i32_201] : memref<64x384xf32, #tpu.memory_space<any>> -> memref<1x384xf32, #tpu.memory_space<any>>
    %c14_i32_202 = arith.constant 14 : i32
    %c0_i32_203 = arith.constant 0 : i32
    %270 = tpu.memref_slice %arg4[%c14_i32_202, %c0_i32_203] : memref<48x384xf32, #tpu.memory_space<vmem>> -> memref<1x384xf32, #tpu.memory_space<vmem>>
    tpu.wait_dma2 semaphore(%arg5 : memref<!tpu.dma_semaphore, #tpu.memory_space<semaphore_mem>>) src(%269 : memref<1x384xf32, #tpu.memory_space<any>>) dst(%270 : memref<1x384xf32, #tpu.memory_space<vmem>>)
    %c0_i32_204 = arith.constant 0 : i32
    %c0_i32_205 = arith.constant 0 : i32
    %271 = tpu.memref_slice %arg2[%c0_i32_204, %c0_i32_205] : memref<64x384xf32, #tpu.memory_space<any>> -> memref<1x384xf32, #tpu.memory_space<any>>
    %c15_i32_206 = arith.constant 15 : i32
    %c0_i32_207 = arith.constant 0 : i32
    %272 = tpu.memref_slice %arg4[%c15_i32_206, %c0_i32_207] : memref<48x384xf32, #tpu.memory_space<vmem>> -> memref<1x384xf32, #tpu.memory_space<vmem>>
    tpu.wait_dma2 semaphore(%arg5 : memref<!tpu.dma_semaphore, #tpu.memory_space<semaphore_mem>>) src(%271 : memref<1x384xf32, #tpu.memory_space<any>>) dst(%272 : memref<1x384xf32, #tpu.memory_space<vmem>>)
    %c0_i32_208 = arith.constant 0 : i32
    %c0_i32_209 = arith.constant 0 : i32
    %273 = tpu.memref_slice %arg2[%c0_i32_208, %c0_i32_209] : memref<64x384xf32, #tpu.memory_space<any>> -> memref<1x384xf32, #tpu.memory_space<any>>
    %c16_i32_210 = arith.constant 16 : i32
    %c0_i32_211 = arith.constant 0 : i32
    %274 = tpu.memref_slice %arg4[%c16_i32_210, %c0_i32_211] : memref<48x384xf32, #tpu.memory_space<vmem>> -> memref<1x384xf32, #tpu.memory_space<vmem>>
    tpu.wait_dma2 semaphore(%arg5 : memref<!tpu.dma_semaphore, #tpu.memory_space<semaphore_mem>>) src(%273 : memref<1x384xf32, #tpu.memory_space<any>>) dst(%274 : memref<1x384xf32, #tpu.memory_space<vmem>>)
    %c0_i32_212 = arith.constant 0 : i32
    %c0_i32_213 = arith.constant 0 : i32
    %275 = tpu.memref_slice %arg2[%c0_i32_212, %c0_i32_213] : memref<64x384xf32, #tpu.memory_space<any>> -> memref<1x384xf32, #tpu.memory_space<any>>
    %c17_i32_214 = arith.constant 17 : i32
    %c0_i32_215 = arith.constant 0 : i32
    %276 = tpu.memref_slice %arg4[%c17_i32_214, %c0_i32_215] : memref<48x384xf32, #tpu.memory_space<vmem>> -> memref<1x384xf32, #tpu.memory_space<vmem>>
    tpu.wait_dma2 semaphore(%arg5 : memref<!tpu.dma_semaphore, #tpu.memory_space<semaphore_mem>>) src(%275 : memref<1x384xf32, #tpu.memory_space<any>>) dst(%276 : memref<1x384xf32, #tpu.memory_space<vmem>>)
    %c0_i32_216 = arith.constant 0 : i32
    %c0_i32_217 = arith.constant 0 : i32
    %277 = tpu.memref_slice %arg2[%c0_i32_216, %c0_i32_217] : memref<64x384xf32, #tpu.memory_space<any>> -> memref<1x384xf32, #tpu.memory_space<any>>
    %c18_i32_218 = arith.constant 18 : i32
    %c0_i32_219 = arith.constant 0 : i32
    %278 = tpu.memref_slice %arg4[%c18_i32_218, %c0_i32_219] : memref<48x384xf32, #tpu.memory_space<vmem>> -> memref<1x384xf32, #tpu.memory_space<vmem>>
    tpu.wait_dma2 semaphore(%arg5 : memref<!tpu.dma_semaphore, #tpu.memory_space<semaphore_mem>>) src(%277 : memref<1x384xf32, #tpu.memory_space<any>>) dst(%278 : memref<1x384xf32, #tpu.memory_space<vmem>>)
    %c0_i32_220 = arith.constant 0 : i32
    %c0_i32_221 = arith.constant 0 : i32
    %279 = tpu.memref_slice %arg2[%c0_i32_220, %c0_i32_221] : memref<64x384xf32, #tpu.memory_space<any>> -> memref<1x384xf32, #tpu.memory_space<any>>
    %c19_i32_222 = arith.constant 19 : i32
    %c0_i32_223 = arith.constant 0 : i32
    %280 = tpu.memref_slice %arg4[%c19_i32_222, %c0_i32_223] : memref<48x384xf32, #tpu.memory_space<vmem>> -> memref<1x384xf32, #tpu.memory_space<vmem>>
    tpu.wait_dma2 semaphore(%arg5 : memref<!tpu.dma_semaphore, #tpu.memory_space<semaphore_mem>>) src(%279 : memref<1x384xf32, #tpu.memory_space<any>>) dst(%280 : memref<1x384xf32, #tpu.memory_space<vmem>>)
    %c0_i32_224 = arith.constant 0 : i32
    %c0_i32_225 = arith.constant 0 : i32
    %281 = tpu.memref_slice %arg2[%c0_i32_224, %c0_i32_225] : memref<64x384xf32, #tpu.memory_space<any>> -> memref<1x384xf32, #tpu.memory_space<any>>
    %c20_i32_226 = arith.constant 20 : i32
    %c0_i32_227 = arith.constant 0 : i32
    %282 = tpu.memref_slice %arg4[%c20_i32_226, %c0_i32_227] : memref<48x384xf32, #tpu.memory_space<vmem>> -> memref<1x384xf32, #tpu.memory_space<vmem>>
    tpu.wait_dma2 semaphore(%arg5 : memref<!tpu.dma_semaphore, #tpu.memory_space<semaphore_mem>>) src(%281 : memref<1x384xf32, #tpu.memory_space<any>>) dst(%282 : memref<1x384xf32, #tpu.memory_space<vmem>>)
    %c0_i32_228 = arith.constant 0 : i32
    %c0_i32_229 = arith.constant 0 : i32
    %283 = tpu.memref_slice %arg2[%c0_i32_228, %c0_i32_229] : memref<64x384xf32, #tpu.memory_space<any>> -> memref<1x384xf32, #tpu.memory_space<any>>
    %c21_i32_230 = arith.constant 21 : i32
    %c0_i32_231 = arith.constant 0 : i32
    %284 = tpu.memref_slice %arg4[%c21_i32_230, %c0_i32_231] : memref<48x384xf32, #tpu.memory_space<vmem>> -> memref<1x384xf32, #tpu.memory_space<vmem>>
    tpu.wait_dma2 semaphore(%arg5 : memref<!tpu.dma_semaphore, #tpu.memory_space<semaphore_mem>>) src(%283 : memref<1x384xf32, #tpu.memory_space<any>>) dst(%284 : memref<1x384xf32, #tpu.memory_space<vmem>>)
    %c0_i32_232 = arith.constant 0 : i32
    %c0_i32_233 = arith.constant 0 : i32
    %285 = tpu.memref_slice %arg2[%c0_i32_232, %c0_i32_233] : memref<64x384xf32, #tpu.memory_space<any>> -> memref<1x384xf32, #tpu.memory_space<any>>
    %c22_i32_234 = arith.constant 22 : i32
    %c0_i32_235 = arith.constant 0 : i32
    %286 = tpu.memref_slice %arg4[%c22_i32_234, %c0_i32_235] : memref<48x384xf32, #tpu.memory_space<vmem>> -> memref<1x384xf32, #tpu.memory_space<vmem>>
    tpu.wait_dma2 semaphore(%arg5 : memref<!tpu.dma_semaphore, #tpu.memory_space<semaphore_mem>>) src(%285 : memref<1x384xf32, #tpu.memory_space<any>>) dst(%286 : memref<1x384xf32, #tpu.memory_space<vmem>>)
    %c0_i32_236 = arith.constant 0 : i32
    %c0_i32_237 = arith.constant 0 : i32
    %287 = tpu.memref_slice %arg2[%c0_i32_236, %c0_i32_237] : memref<64x384xf32, #tpu.memory_space<any>> -> memref<1x384xf32, #tpu.memory_space<any>>
    %c23_i32_238 = arith.constant 23 : i32
    %c0_i32_239 = arith.constant 0 : i32
    %288 = tpu.memref_slice %arg4[%c23_i32_238, %c0_i32_239] : memref<48x384xf32, #tpu.memory_space<vmem>> -> memref<1x384xf32, #tpu.memory_space<vmem>>
    tpu.wait_dma2 semaphore(%arg5 : memref<!tpu.dma_semaphore, #tpu.memory_space<semaphore_mem>>) src(%287 : memref<1x384xf32, #tpu.memory_space<any>>) dst(%288 : memref<1x384xf32, #tpu.memory_space<vmem>>)
    %c0_i32_240 = arith.constant 0 : i32
    %c0_i32_241 = arith.constant 0 : i32
    %289 = tpu.memref_slice %arg2[%c0_i32_240, %c0_i32_241] : memref<64x384xf32, #tpu.memory_space<any>> -> memref<1x384xf32, #tpu.memory_space<any>>
    %c24_i32_242 = arith.constant 24 : i32
    %c0_i32_243 = arith.constant 0 : i32
    %290 = tpu.memref_slice %arg4[%c24_i32_242, %c0_i32_243] : memref<48x384xf32, #tpu.memory_space<vmem>> -> memref<1x384xf32, #tpu.memory_space<vmem>>
    tpu.wait_dma2 semaphore(%arg5 : memref<!tpu.dma_semaphore, #tpu.memory_space<semaphore_mem>>) src(%289 : memref<1x384xf32, #tpu.memory_space<any>>) dst(%290 : memref<1x384xf32, #tpu.memory_space<vmem>>)
    %c0_i32_244 = arith.constant 0 : i32
    %c0_i32_245 = arith.constant 0 : i32
    %291 = tpu.memref_slice %arg2[%c0_i32_244, %c0_i32_245] : memref<64x384xf32, #tpu.memory_space<any>> -> memref<1x384xf32, #tpu.memory_space<any>>
    %c25_i32_246 = arith.constant 25 : i32
    %c0_i32_247 = arith.constant 0 : i32
    %292 = tpu.memref_slice %arg4[%c25_i32_246, %c0_i32_247] : memref<48x384xf32, #tpu.memory_space<vmem>> -> memref<1x384xf32, #tpu.memory_space<vmem>>
    tpu.wait_dma2 semaphore(%arg5 : memref<!tpu.dma_semaphore, #tpu.memory_space<semaphore_mem>>) src(%291 : memref<1x384xf32, #tpu.memory_space<any>>) dst(%292 : memref<1x384xf32, #tpu.memory_space<vmem>>)
    %c0_i32_248 = arith.constant 0 : i32
    %c0_i32_249 = arith.constant 0 : i32
    %293 = tpu.memref_slice %arg2[%c0_i32_248, %c0_i32_249] : memref<64x384xf32, #tpu.memory_space<any>> -> memref<1x384xf32, #tpu.memory_space<any>>
    %c26_i32_250 = arith.constant 26 : i32
    %c0_i32_251 = arith.constant 0 : i32
    %294 = tpu.memref_slice %arg4[%c26_i32_250, %c0_i32_251] : memref<48x384xf32, #tpu.memory_space<vmem>> -> memref<1x384xf32, #tpu.memory_space<vmem>>
    tpu.wait_dma2 semaphore(%arg5 : memref<!tpu.dma_semaphore, #tpu.memory_space<semaphore_mem>>) src(%293 : memref<1x384xf32, #tpu.memory_space<any>>) dst(%294 : memref<1x384xf32, #tpu.memory_space<vmem>>)
    %c0_i32_252 = arith.constant 0 : i32
    %c0_i32_253 = arith.constant 0 : i32
    %295 = tpu.memref_slice %arg2[%c0_i32_252, %c0_i32_253] : memref<64x384xf32, #tpu.memory_space<any>> -> memref<1x384xf32, #tpu.memory_space<any>>
    %c27_i32_254 = arith.constant 27 : i32
    %c0_i32_255 = arith.constant 0 : i32
    %296 = tpu.memref_slice %arg4[%c27_i32_254, %c0_i32_255] : memref<48x384xf32, #tpu.memory_space<vmem>> -> memref<1x384xf32, #tpu.memory_space<vmem>>
    tpu.wait_dma2 semaphore(%arg5 : memref<!tpu.dma_semaphore, #tpu.memory_space<semaphore_mem>>) src(%295 : memref<1x384xf32, #tpu.memory_space<any>>) dst(%296 : memref<1x384xf32, #tpu.memory_space<vmem>>)
    %c0_i32_256 = arith.constant 0 : i32
    %c0_i32_257 = arith.constant 0 : i32
    %297 = tpu.memref_slice %arg2[%c0_i32_256, %c0_i32_257] : memref<64x384xf32, #tpu.memory_space<any>> -> memref<1x384xf32, #tpu.memory_space<any>>
    %c28_i32_258 = arith.constant 28 : i32
    %c0_i32_259 = arith.constant 0 : i32
    %298 = tpu.memref_slice %arg4[%c28_i32_258, %c0_i32_259] : memref<48x384xf32, #tpu.memory_space<vmem>> -> memref<1x384xf32, #tpu.memory_space<vmem>>
    tpu.wait_dma2 semaphore(%arg5 : memref<!tpu.dma_semaphore, #tpu.memory_space<semaphore_mem>>) src(%297 : memref<1x384xf32, #tpu.memory_space<any>>) dst(%298 : memref<1x384xf32, #tpu.memory_space<vmem>>)
    %c0_i32_260 = arith.constant 0 : i32
    %c0_i32_261 = arith.constant 0 : i32
    %299 = tpu.memref_slice %arg2[%c0_i32_260, %c0_i32_261] : memref<64x384xf32, #tpu.memory_space<any>> -> memref<1x384xf32, #tpu.memory_space<any>>
    %c29_i32_262 = arith.constant 29 : i32
    %c0_i32_263 = arith.constant 0 : i32
    %300 = tpu.memref_slice %arg4[%c29_i32_262, %c0_i32_263] : memref<48x384xf32, #tpu.memory_space<vmem>> -> memref<1x384xf32, #tpu.memory_space<vmem>>
    tpu.wait_dma2 semaphore(%arg5 : memref<!tpu.dma_semaphore, #tpu.memory_space<semaphore_mem>>) src(%299 : memref<1x384xf32, #tpu.memory_space<any>>) dst(%300 : memref<1x384xf32, #tpu.memory_space<vmem>>)
    %c0_i32_264 = arith.constant 0 : i32
    %c0_i32_265 = arith.constant 0 : i32
    %301 = tpu.memref_slice %arg2[%c0_i32_264, %c0_i32_265] : memref<64x384xf32, #tpu.memory_space<any>> -> memref<1x384xf32, #tpu.memory_space<any>>
    %c30_i32_266 = arith.constant 30 : i32
    %c0_i32_267 = arith.constant 0 : i32
    %302 = tpu.memref_slice %arg4[%c30_i32_266, %c0_i32_267] : memref<48x384xf32, #tpu.memory_space<vmem>> -> memref<1x384xf32, #tpu.memory_space<vmem>>
    tpu.wait_dma2 semaphore(%arg5 : memref<!tpu.dma_semaphore, #tpu.memory_space<semaphore_mem>>) src(%301 : memref<1x384xf32, #tpu.memory_space<any>>) dst(%302 : memref<1x384xf32, #tpu.memory_space<vmem>>)
    %c0_i32_268 = arith.constant 0 : i32
    %c0_i32_269 = arith.constant 0 : i32
    %303 = tpu.memref_slice %arg2[%c0_i32_268, %c0_i32_269] : memref<64x384xf32, #tpu.memory_space<any>> -> memref<1x384xf32, #tpu.memory_space<any>>
    %c31_i32_270 = arith.constant 31 : i32
    %c0_i32_271 = arith.constant 0 : i32
    %304 = tpu.memref_slice %arg4[%c31_i32_270, %c0_i32_271] : memref<48x384xf32, #tpu.memory_space<vmem>> -> memref<1x384xf32, #tpu.memory_space<vmem>>
    tpu.wait_dma2 semaphore(%arg5 : memref<!tpu.dma_semaphore, #tpu.memory_space<semaphore_mem>>) src(%303 : memref<1x384xf32, #tpu.memory_space<any>>) dst(%304 : memref<1x384xf32, #tpu.memory_space<vmem>>)
    %c0_i32_272 = arith.constant 0 : i32
    %c0_i32_273 = arith.constant 0 : i32
    %305 = tpu.memref_slice %arg2[%c0_i32_272, %c0_i32_273] : memref<64x384xf32, #tpu.memory_space<any>> -> memref<1x384xf32, #tpu.memory_space<any>>
    %c32_i32_274 = arith.constant 32 : i32
    %c0_i32_275 = arith.constant 0 : i32
    %306 = tpu.memref_slice %arg4[%c32_i32_274, %c0_i32_275] : memref<48x384xf32, #tpu.memory_space<vmem>> -> memref<1x384xf32, #tpu.memory_space<vmem>>
    tpu.wait_dma2 semaphore(%arg5 : memref<!tpu.dma_semaphore, #tpu.memory_space<semaphore_mem>>) src(%305 : memref<1x384xf32, #tpu.memory_space<any>>) dst(%306 : memref<1x384xf32, #tpu.memory_space<vmem>>)
    %c0_i32_276 = arith.constant 0 : i32
    %c0_i32_277 = arith.constant 0 : i32
    %307 = tpu.memref_slice %arg2[%c0_i32_276, %c0_i32_277] : memref<64x384xf32, #tpu.memory_space<any>> -> memref<1x384xf32, #tpu.memory_space<any>>
    %c33_i32_278 = arith.constant 33 : i32
    %c0_i32_279 = arith.constant 0 : i32
    %308 = tpu.memref_slice %arg4[%c33_i32_278, %c0_i32_279] : memref<48x384xf32, #tpu.memory_space<vmem>> -> memref<1x384xf32, #tpu.memory_space<vmem>>
    tpu.wait_dma2 semaphore(%arg5 : memref<!tpu.dma_semaphore, #tpu.memory_space<semaphore_mem>>) src(%307 : memref<1x384xf32, #tpu.memory_space<any>>) dst(%308 : memref<1x384xf32, #tpu.memory_space<vmem>>)
    %c0_i32_280 = arith.constant 0 : i32
    %c0_i32_281 = arith.constant 0 : i32
    %309 = tpu.memref_slice %arg2[%c0_i32_280, %c0_i32_281] : memref<64x384xf32, #tpu.memory_space<any>> -> memref<1x384xf32, #tpu.memory_space<any>>
    %c34_i32_282 = arith.constant 34 : i32
    %c0_i32_283 = arith.constant 0 : i32
    %310 = tpu.memref_slice %arg4[%c34_i32_282, %c0_i32_283] : memref<48x384xf32, #tpu.memory_space<vmem>> -> memref<1x384xf32, #tpu.memory_space<vmem>>
    tpu.wait_dma2 semaphore(%arg5 : memref<!tpu.dma_semaphore, #tpu.memory_space<semaphore_mem>>) src(%309 : memref<1x384xf32, #tpu.memory_space<any>>) dst(%310 : memref<1x384xf32, #tpu.memory_space<vmem>>)
    %c0_i32_284 = arith.constant 0 : i32
    %c0_i32_285 = arith.constant 0 : i32
    %311 = tpu.memref_slice %arg2[%c0_i32_284, %c0_i32_285] : memref<64x384xf32, #tpu.memory_space<any>> -> memref<1x384xf32, #tpu.memory_space<any>>
    %c35_i32_286 = arith.constant 35 : i32
    %c0_i32_287 = arith.constant 0 : i32
    %312 = tpu.memref_slice %arg4[%c35_i32_286, %c0_i32_287] : memref<48x384xf32, #tpu.memory_space<vmem>> -> memref<1x384xf32, #tpu.memory_space<vmem>>
    tpu.wait_dma2 semaphore(%arg5 : memref<!tpu.dma_semaphore, #tpu.memory_space<semaphore_mem>>) src(%311 : memref<1x384xf32, #tpu.memory_space<any>>) dst(%312 : memref<1x384xf32, #tpu.memory_space<vmem>>)
    %c0_i32_288 = arith.constant 0 : i32
    %c0_i32_289 = arith.constant 0 : i32
    %313 = tpu.memref_slice %arg2[%c0_i32_288, %c0_i32_289] : memref<64x384xf32, #tpu.memory_space<any>> -> memref<1x384xf32, #tpu.memory_space<any>>
    %c36_i32_290 = arith.constant 36 : i32
    %c0_i32_291 = arith.constant 0 : i32
    %314 = tpu.memref_slice %arg4[%c36_i32_290, %c0_i32_291] : memref<48x384xf32, #tpu.memory_space<vmem>> -> memref<1x384xf32, #tpu.memory_space<vmem>>
    tpu.wait_dma2 semaphore(%arg5 : memref<!tpu.dma_semaphore, #tpu.memory_space<semaphore_mem>>) src(%313 : memref<1x384xf32, #tpu.memory_space<any>>) dst(%314 : memref<1x384xf32, #tpu.memory_space<vmem>>)
    %c0_i32_292 = arith.constant 0 : i32
    %c0_i32_293 = arith.constant 0 : i32
    %315 = tpu.memref_slice %arg2[%c0_i32_292, %c0_i32_293] : memref<64x384xf32, #tpu.memory_space<any>> -> memref<1x384xf32, #tpu.memory_space<any>>
    %c37_i32_294 = arith.constant 37 : i32
    %c0_i32_295 = arith.constant 0 : i32
    %316 = tpu.memref_slice %arg4[%c37_i32_294, %c0_i32_295] : memref<48x384xf32, #tpu.memory_space<vmem>> -> memref<1x384xf32, #tpu.memory_space<vmem>>
    tpu.wait_dma2 semaphore(%arg5 : memref<!tpu.dma_semaphore, #tpu.memory_space<semaphore_mem>>) src(%315 : memref<1x384xf32, #tpu.memory_space<any>>) dst(%316 : memref<1x384xf32, #tpu.memory_space<vmem>>)
    %c0_i32_296 = arith.constant 0 : i32
    %c0_i32_297 = arith.constant 0 : i32
    %317 = tpu.memref_slice %arg2[%c0_i32_296, %c0_i32_297] : memref<64x384xf32, #tpu.memory_space<any>> -> memref<1x384xf32, #tpu.memory_space<any>>
    %c38_i32_298 = arith.constant 38 : i32
    %c0_i32_299 = arith.constant 0 : i32
    %318 = tpu.memref_slice %arg4[%c38_i32_298, %c0_i32_299] : memref<48x384xf32, #tpu.memory_space<vmem>> -> memref<1x384xf32, #tpu.memory_space<vmem>>
    tpu.wait_dma2 semaphore(%arg5 : memref<!tpu.dma_semaphore, #tpu.memory_space<semaphore_mem>>) src(%317 : memref<1x384xf32, #tpu.memory_space<any>>) dst(%318 : memref<1x384xf32, #tpu.memory_space<vmem>>)
    %c0_i32_300 = arith.constant 0 : i32
    %c0_i32_301 = arith.constant 0 : i32
    %319 = tpu.memref_slice %arg2[%c0_i32_300, %c0_i32_301] : memref<64x384xf32, #tpu.memory_space<any>> -> memref<1x384xf32, #tpu.memory_space<any>>
    %c39_i32_302 = arith.constant 39 : i32
    %c0_i32_303 = arith.constant 0 : i32
    %320 = tpu.memref_slice %arg4[%c39_i32_302, %c0_i32_303] : memref<48x384xf32, #tpu.memory_space<vmem>> -> memref<1x384xf32, #tpu.memory_space<vmem>>
    tpu.wait_dma2 semaphore(%arg5 : memref<!tpu.dma_semaphore, #tpu.memory_space<semaphore_mem>>) src(%319 : memref<1x384xf32, #tpu.memory_space<any>>) dst(%320 : memref<1x384xf32, #tpu.memory_space<vmem>>)
    %c0_i32_304 = arith.constant 0 : i32
    %c0_i32_305 = arith.constant 0 : i32
    %321 = tpu.memref_slice %arg2[%c0_i32_304, %c0_i32_305] : memref<64x384xf32, #tpu.memory_space<any>> -> memref<1x384xf32, #tpu.memory_space<any>>
    %c40_i32_306 = arith.constant 40 : i32
    %c0_i32_307 = arith.constant 0 : i32
    %322 = tpu.memref_slice %arg4[%c40_i32_306, %c0_i32_307] : memref<48x384xf32, #tpu.memory_space<vmem>> -> memref<1x384xf32, #tpu.memory_space<vmem>>
    tpu.wait_dma2 semaphore(%arg5 : memref<!tpu.dma_semaphore, #tpu.memory_space<semaphore_mem>>) src(%321 : memref<1x384xf32, #tpu.memory_space<any>>) dst(%322 : memref<1x384xf32, #tpu.memory_space<vmem>>)
    %c0_i32_308 = arith.constant 0 : i32
    %c0_i32_309 = arith.constant 0 : i32
    %323 = tpu.memref_slice %arg2[%c0_i32_308, %c0_i32_309] : memref<64x384xf32, #tpu.memory_space<any>> -> memref<1x384xf32, #tpu.memory_space<any>>
    %c41_i32_310 = arith.constant 41 : i32
    %c0_i32_311 = arith.constant 0 : i32
    %324 = tpu.memref_slice %arg4[%c41_i32_310, %c0_i32_311] : memref<48x384xf32, #tpu.memory_space<vmem>> -> memref<1x384xf32, #tpu.memory_space<vmem>>
    tpu.wait_dma2 semaphore(%arg5 : memref<!tpu.dma_semaphore, #tpu.memory_space<semaphore_mem>>) src(%323 : memref<1x384xf32, #tpu.memory_space<any>>) dst(%324 : memref<1x384xf32, #tpu.memory_space<vmem>>)
    %c0_i32_312 = arith.constant 0 : i32
    %c0_i32_313 = arith.constant 0 : i32
    %325 = tpu.memref_slice %arg2[%c0_i32_312, %c0_i32_313] : memref<64x384xf32, #tpu.memory_space<any>> -> memref<1x384xf32, #tpu.memory_space<any>>
    %c42_i32_314 = arith.constant 42 : i32
    %c0_i32_315 = arith.constant 0 : i32
    %326 = tpu.memref_slice %arg4[%c42_i32_314, %c0_i32_315] : memref<48x384xf32, #tpu.memory_space<vmem>> -> memref<1x384xf32, #tpu.memory_space<vmem>>
    tpu.wait_dma2 semaphore(%arg5 : memref<!tpu.dma_semaphore, #tpu.memory_space<semaphore_mem>>) src(%325 : memref<1x384xf32, #tpu.memory_space<any>>) dst(%326 : memref<1x384xf32, #tpu.memory_space<vmem>>)
    %c0_i32_316 = arith.constant 0 : i32
    %c0_i32_317 = arith.constant 0 : i32
    %327 = tpu.memref_slice %arg2[%c0_i32_316, %c0_i32_317] : memref<64x384xf32, #tpu.memory_space<any>> -> memref<1x384xf32, #tpu.memory_space<any>>
    %c43_i32_318 = arith.constant 43 : i32
    %c0_i32_319 = arith.constant 0 : i32
    %328 = tpu.memref_slice %arg4[%c43_i32_318, %c0_i32_319] : memref<48x384xf32, #tpu.memory_space<vmem>> -> memref<1x384xf32, #tpu.memory_space<vmem>>
    tpu.wait_dma2 semaphore(%arg5 : memref<!tpu.dma_semaphore, #tpu.memory_space<semaphore_mem>>) src(%327 : memref<1x384xf32, #tpu.memory_space<any>>) dst(%328 : memref<1x384xf32, #tpu.memory_space<vmem>>)
    %c0_i32_320 = arith.constant 0 : i32
    %c0_i32_321 = arith.constant 0 : i32
    %329 = tpu.memref_slice %arg2[%c0_i32_320, %c0_i32_321] : memref<64x384xf32, #tpu.memory_space<any>> -> memref<1x384xf32, #tpu.memory_space<any>>
    %c44_i32_322 = arith.constant 44 : i32
    %c0_i32_323 = arith.constant 0 : i32
    %330 = tpu.memref_slice %arg4[%c44_i32_322, %c0_i32_323] : memref<48x384xf32, #tpu.memory_space<vmem>> -> memref<1x384xf32, #tpu.memory_space<vmem>>
    tpu.wait_dma2 semaphore(%arg5 : memref<!tpu.dma_semaphore, #tpu.memory_space<semaphore_mem>>) src(%329 : memref<1x384xf32, #tpu.memory_space<any>>) dst(%330 : memref<1x384xf32, #tpu.memory_space<vmem>>)
    %c0_i32_324 = arith.constant 0 : i32
    %c0_i32_325 = arith.constant 0 : i32
    %331 = tpu.memref_slice %arg2[%c0_i32_324, %c0_i32_325] : memref<64x384xf32, #tpu.memory_space<any>> -> memref<1x384xf32, #tpu.memory_space<any>>
    %c45_i32_326 = arith.constant 45 : i32
    %c0_i32_327 = arith.constant 0 : i32
    %332 = tpu.memref_slice %arg4[%c45_i32_326, %c0_i32_327] : memref<48x384xf32, #tpu.memory_space<vmem>> -> memref<1x384xf32, #tpu.memory_space<vmem>>
    tpu.wait_dma2 semaphore(%arg5 : memref<!tpu.dma_semaphore, #tpu.memory_space<semaphore_mem>>) src(%331 : memref<1x384xf32, #tpu.memory_space<any>>) dst(%332 : memref<1x384xf32, #tpu.memory_space<vmem>>)
    %c0_i32_328 = arith.constant 0 : i32
    %c0_i32_329 = arith.constant 0 : i32
    %333 = tpu.memref_slice %arg2[%c0_i32_328, %c0_i32_329] : memref<64x384xf32, #tpu.memory_space<any>> -> memref<1x384xf32, #tpu.memory_space<any>>
    %c46_i32_330 = arith.constant 46 : i32
    %c0_i32_331 = arith.constant 0 : i32
    %334 = tpu.memref_slice %arg4[%c46_i32_330, %c0_i32_331] : memref<48x384xf32, #tpu.memory_space<vmem>> -> memref<1x384xf32, #tpu.memory_space<vmem>>
    tpu.wait_dma2 semaphore(%arg5 : memref<!tpu.dma_semaphore, #tpu.memory_space<semaphore_mem>>) src(%333 : memref<1x384xf32, #tpu.memory_space<any>>) dst(%334 : memref<1x384xf32, #tpu.memory_space<vmem>>)
    %c0_i32_332 = arith.constant 0 : i32
    %c0_i32_333 = arith.constant 0 : i32
    %335 = tpu.memref_slice %arg2[%c0_i32_332, %c0_i32_333] : memref<64x384xf32, #tpu.memory_space<any>> -> memref<1x384xf32, #tpu.memory_space<any>>
    %c47_i32_334 = arith.constant 47 : i32
    %c0_i32_335 = arith.constant 0 : i32
    %336 = tpu.memref_slice %arg4[%c47_i32_334, %c0_i32_335] : memref<48x384xf32, #tpu.memory_space<vmem>> -> memref<1x384xf32, #tpu.memory_space<vmem>>
    tpu.wait_dma2 semaphore(%arg5 : memref<!tpu.dma_semaphore, #tpu.memory_space<semaphore_mem>>) src(%335 : memref<1x384xf32, #tpu.memory_space<any>>) dst(%336 : memref<1x384xf32, #tpu.memory_space<vmem>>)
    %c0 = arith.constant 0 : index
    %c0_336 = arith.constant 0 : index
    %337 = vector.load %arg4[%c0, %c0_336] : memref<48x384xf32, #tpu.memory_space<vmem>>, vector<48x384xf32>
    %c0_337 = arith.constant 0 : index
    %c0_338 = arith.constant 0 : index
    %338 = vector.load %arg3[%c0_337, %c0_338] : memref<48x384xf32, #tpu.memory_space<vmem>>, vector<48x384xf32>
    tpu.vector_store %arg3[%c0_337, %c0_338], %337 {strides = array<i32>} : memref<48x384xf32, #tpu.memory_space<vmem>>, vector<48x384xf32>,
    return
  }
  func.func @transform_1(%arg0: i32, %arg1: memref<48xi32, #tpu.memory_space<smem>>) -> (i32, i32) {
    %c0_i32 = arith.constant 0 : i32
    %c0_i32_0 = arith.constant 0 : i32
    return %arg0, %c0_i32 : i32, i32
  }
}

</mosaic_0001>

<bundles_post_ra>
// kernel: tpu_custom_call.1
= control target key start
LH: loop header
LB: loop body
LE: loop exit
PB: predicated region body
PF: predicated region fallthrough
CT: control target
= control target key end

     0   :  { %s2380_s12 = smov [#allocation5]   ;;  %s3251_s0 = inlined_call_operand.hbm [shape: s32[48], index: 0, kind: input, shape index: {}]   ;;  %s3252_s1 = inlined_call_operand.hbm [shape: f32[64,384], index: 1, kind: input, shape index: {}]   ;;  %s3253_s2 = inlined_call_operand.hbm [shape: f32[48,384], index: 2, kind: output, shape index: {}]  }
   0x1   :  { %s8_s11 = sshll.u32 %s3251_s0, 4  ;;  %s9_s11 = int_to_ptr.hbm [resolvable:$true] %s8_s11 }
   0x2   :  { %11 = dma.hbm_to_smem %s9_s11, 16, %s2380_s12, [#allocation4] }
   0x3   :  { %2374 = dma.done.wait [#allocation4], 16 }
   0x4   :  { %2375 = vsyncadd [#allocation4], 4294967280 }
   0x5   :  { %14 = sfence }
   0x6   :  { %15 = vsyncpa [#allocation7], 0  ;;  %s17_s13 = sld [smem:[#allocation5]]  ;;  %s2381_s14 = smov [#allocation2]  }
   0x7   :  { %s2452_s15 = sshll.u32 %s2381_s14, 4  ;;  %s2455_s16 = sld [smem:[#allocation5 + $0x1]]  ;;  %s26_s15 = int_to_ptr.vmem [resolvable:$true] %s2452_s15 }
   0x8   :  { %s2382_s17 = smov [#allocation2 + $0x1]   ;;  %s2459_s0 = sld [smem:[#allocation5 + $0x2]] }
   0x9   :  { %s2457_s18 = sshll.u32 %s2382_s17, 4  ;;  %s2383_s22 = smov [#allocation2 + $0x2]   ;;  %s42_s18 = int_to_ptr.vmem [resolvable:$true] %s2457_s18 }
   0xa   :  { %s2462_s23 = sshll.u32 %s2383_s22, 4  ;;  %s2465_s24 = sld [smem:[#allocation5 + $0x3]]  ;;  %s58_s23 = int_to_ptr.vmem [resolvable:$true] %s2462_s23 }
   0xb   :  { %s2476_s10 = scalar_lea.hbm %s3252_s1, 192 }
   0xc   :  { %s18_s19 = sshrl.u32 %s17_s13, 3  ;;  %s19_s20 = sand.u32 7, %s17_s13  }
   0xd   :  { %s20_s21 = smul.u32 24, %s18_s19  ;;  %s33_s26 = sshrl.u32 %s2455_s16, 3 }
   0xe   :  { %s34_s30 = sand.u32 7, %s2455_s16   ;;  %s35_s4 = smul.u32 24, %s33_s26 }
   0xf   :  { %s21_s25 = sadd.s32 %s20_s21, %s19_s20  ;;  %s49_s5 = sshrl.u32 %s2459_s0, 3 }
  0x10   :  { %s22_s29 = scalar_lea.hbm %s3252_s1, %s21_s25 }
  0x11   :  { %s23_s3 = sshll.u32 %s22_s29, 4  ;;  %s24_s3 = int_to_ptr.hbm [resolvable:$true] %s23_s3 }
  0x12   :  { %s1198_s6 = sshra.s32 %s24_s3, 4  ;;  %s1199_s6 = int_to_ptr.hbm [resolvable:$true] %s1198_s6 }
  0x13   :  { %s1200_s7 = scalar_lea.hbm %s1199_s6, 3  ;;  %p1203_p1 = scmp.lt.s32.totalorder %s1199_s6, %s3252_s1 }
  0x14   :  { %p1201_p0 = scmp.ne.s32.totalorder %s1199_s6, %s1200_s7  ;;  %p1204_p2 = scmp.lt.s32.totalorder %s2476_s10, %s1200_s7 }
  0x16   :  { %p1205_p3 = por %p1204_p2, %p1203_p1 }
  0x18   :  { %p1206_p4 = pnand %p1205_p3, %p1201_p0 }
  0x1a   :  { %1209 = shalt.err (!%p1206_p4)  }
  0x1b   :  { %s2384_s13 = smov 128   ;;  %s2385_s14 = smov 1  }
  0x1c   :  { %30 = dma.hbm_to_vmem [thread:$0]  %s24_s3, 48, %s26_s15, [#allocation3], %s2384_s13, %s2384_s13, %s2385_s14 }
  0x1d   :  { %s36_s16 = sadd.s32 %s35_s4, %s34_s30  ;;  %s50_s17 = sand.u32 7, %s2459_s0  }
  0x1e   :  { %s37_s21 = scalar_lea.hbm %s3252_s1, %s36_s16  ;;  %s51_s22 = smul.u32 24, %s49_s5 }
  0x1f   :  { %s39_s25 = sshll.u32 %s37_s21, 4  ;;  %s65_s26 = sshrl.u32 %s2465_s24, 3  ;;  %s40_s25 = int_to_ptr.hbm [resolvable:$true] %s39_s25 }
  0x20   :  { %s52_s27 = sadd.s32 %s51_s22, %s50_s17  ;;  %s1222_s28 = sshra.s32 %s40_s25, 4  ;;  %s1223_s28 = int_to_ptr.hbm [resolvable:$true] %s1222_s28 }
  0x21   :  { %s1224_s29 = scalar_lea.hbm %s1223_s28, 3  ;;  %p1227_p6 = scmp.lt.s32.totalorder %s1223_s28, %s3252_s1 }
  0x22   :  { %p1225_p5 = scmp.ne.s32.totalorder %s1223_s28, %s1224_s29  ;;  %p1228_p7 = scmp.lt.s32.totalorder %s2476_s10, %s1224_s29 }
  0x24   :  { %p1229_p8 = por %p1228_p7, %p1227_p6 }
  0x26   :  { %p1230_p9 = pnand %p1229_p8, %p1225_p5 }
  0x28   :  { %1233 = shalt.err (!%p1230_p9)  }
  0x29   :  { %46 = dma.hbm_to_vmem [thread:$0]  %s40_s25, 48, %s42_s18, [#allocation3], %s2384_s13, %s2384_s13, %s2385_s14 }
  0x2a   :  { %s53_s30 = scalar_lea.hbm %s3252_s1, %s52_s27  ;;  %s66_s3 = sand.u32 7, %s2465_s24  }
  0x2b   :  { %s55_s4 = sshll.u32 %s53_s30, 4  ;;  %s67_s5 = smul.u32 24, %s65_s26  ;;  %s56_s4 = int_to_ptr.hbm [resolvable:$true] %s55_s4 }
  0x2c   :  { %s1246_s8 = sshra.s32 %s56_s4, 4  ;;  %s1247_s8 = int_to_ptr.hbm [resolvable:$true] %s1246_s8 }
  0x2d   :  { %s1248_s9 = scalar_lea.hbm %s1247_s8, 3  ;;  %p1251_p11 = scmp.lt.s32.totalorder %s1247_s8, %s3252_s1 }
  0x2e   :  { %p1249_p10 = scmp.ne.s32.totalorder %s1247_s8, %s1248_s9  ;;  %p1252_p12 = scmp.lt.s32.totalorder %s2476_s10, %s1248_s9 }
  0x30   :  { %p1253_p13 = por %p1252_p12, %p1251_p11 }
  0x32   :  { %p1254_p0 = pnand %p1253_p13, %p1249_p10 }
  0x34   :  { %1257 = shalt.err (!%p1254_p0)  }
  0x35   :  { %62 = dma.hbm_to_vmem [thread:$0]  %s56_s4, 48, %s58_s23, [#allocation3], %s2384_s13, %s2384_s13, %s2385_s14 }
  0x36   :  { %s68_s18 = sadd.s32 %s67_s5, %s66_s3  ;;  %s2386_s24 = smov [#allocation2 + $0x3]  }
  0x37   :  { %s73_s16 = sshll.u32 %s2386_s24, 4  ;;  %s69_s20 = scalar_lea.hbm %s3252_s1, %s68_s18  ;;  %s74_s16 = int_to_ptr.vmem [resolvable:$true] %s73_s16 }
  0x38   :  { %s71_s21 = sshll.u32 %s69_s20, 4  ;;  %s1087_s22 = sld [smem:[#allocation5 + $0x4]]  ;;  %s72_s21 = int_to_ptr.hbm [resolvable:$true] %s71_s21 }
  0x39   :  { %s1270_s25 = sshra.s32 %s72_s21, 4  ;;  %s1271_s25 = int_to_ptr.hbm [resolvable:$true] %s1270_s25 }
  0x3a   :  { %s1272_s26 = scalar_lea.hbm %s1271_s25, 3  ;;  %p1275_p2 = scmp.lt.s32.totalorder %s1271_s25, %s3252_s1 }
  0x3b   :  { %p1273_p1 = scmp.ne.s32.totalorder %s1271_s25, %s1272_s26  ;;  %p1276_p3 = scmp.lt.s32.totalorder %s2476_s10, %s1272_s26 }
  0x3d   :  { %p1277_p4 = por %p1276_p3, %p1275_p2 }
  0x3f   :  { %p1278_p5 = pnand %p1277_p4, %p1273_p1 }
  0x41   :  { %1281 = shalt.err (!%p1278_p5)  }
  0x42   :  { %78 = dma.hbm_to_vmem [thread:$0]  %s72_s21, 48, %s74_s16, [#allocation3], %s2384_s13, %s2384_s13, %s2385_s14 }
  0x43   :  { %s2387_s23 = smov [#allocation2 + $0x4]   ;;  %s2526_s6 = sld [smem:[#allocation5 + $0x5]] }
  0x44   :  { %s2524_s29 = sshll.u32 %s2387_s23, 4  ;;  %s2388_s7 = smov [#allocation2 + $0x5]   ;;  %s90_s29 = int_to_ptr.vmem [resolvable:$true] %s2524_s29 }
  0x45   :  { %s2529_s15 = sshll.u32 %s2388_s7, 4  ;;  %s2531_s0 = sld [smem:[#allocation5 + $0x6]]  ;;  %s106_s15 = int_to_ptr.vmem [resolvable:$true] %s2529_s15 }
  0x46   :  { %s81_s30 = sshrl.u32 %s1087_s22, 3  ;;  %s82_s3 = sand.u32 7, %s1087_s22  }
  0x47   :  { %s83_s4 = smul.u32 24, %s81_s30  ;;  %s2534_s5 = sld [smem:[#allocation5 + $0x7]] }
  0x49   :  { %s84_s8 = sadd.s32 %s83_s4, %s82_s3  ;;  %s97_s9 = sshrl.u32 %s2526_s6, 3 }
  0x4a   :  { %s85_s18 = scalar_lea.hbm %s3252_s1, %s84_s8  ;;  %s98_s24 = sand.u32 7, %s2526_s6  }
  0x4b   :  { %s87_s16 = sshll.u32 %s85_s18, 4  ;;  %s99_s17 = smul.u32 24, %s97_s9  ;;  %s88_s16 = int_to_ptr.hbm [resolvable:$true] %s87_s16 }
  0x4c   :  { %s113_s19 = sshrl.u32 %s2531_s0, 3  ;;  %s1294_s20 = sshra.s32 %s88_s16, 4  ;;  %s1295_s20 = int_to_ptr.hbm [resolvable:$true] %s1294_s20 }
  0x4d   :  { %s1296_s21 = scalar_lea.hbm %s1295_s20, 3  ;;  %p1299_p7 = scmp.lt.s32.totalorder %s1295_s20, %s3252_s1 }
  0x4e   :  { %p1297_p6 = scmp.ne.s32.totalorder %s1295_s20, %s1296_s21  ;;  %p1300_p8 = scmp.lt.s32.totalorder %s2476_s10, %s1296_s21 }
  0x50   :  { %p1301_p9 = por %p1300_p8, %p1299_p7 }
  0x52   :  { %p1302_p10 = pnand %p1301_p9, %p1297_p6 }
  0x54   :  { %1305 = shalt.err (!%p1302_p10)  }
  0x55   :  { %94 = dma.hbm_to_vmem [thread:$0]  %s88_s16, 48, %s90_s29, [#allocation3], %s2384_s13, %s2384_s13, %s2385_s14 }
  0x56   :  { %s100_s26 = sadd.s32 %s99_s17, %s98_s24  ;;  %s114_s27 = sand.u32 7, %s2531_s0  }
  0x57   :  { %s101_s6 = scalar_lea.hbm %s3252_s1, %s100_s26  ;;  %s115_s7 = smul.u32 24, %s113_s19 }
  0x58   :  { %s103_s30 = sshll.u32 %s101_s6, 4  ;;  %s2389_s3 = smov [#allocation2 + $0x6]   ;;  %s104_s30 = int_to_ptr.hbm [resolvable:$true] %s103_s30 }
  0x59   :  { %s2555_s4 = sshll.u32 %s2389_s3, 4  ;;  %s116_s8 = sadd.s32 %s115_s7, %s114_s27  ;;  %s122_s4 = int_to_ptr.vmem [resolvable:$true] %s2555_s4 }
  0x5a   :  { %s1318_s9 = sshra.s32 %s104_s30, 4  ;;  %s1319_s9 = int_to_ptr.hbm [resolvable:$true] %s1318_s9 }
  0x5b   :  { %s1320_s11 = scalar_lea.hbm %s1319_s9, 3  ;;  %p1323_p12 = scmp.lt.s32.totalorder %s1319_s9, %s3252_s1 }
  0x5c   :  { %p1321_p11 = scmp.ne.s32.totalorder %s1319_s9, %s1320_s11  ;;  %p1324_p13 = scmp.lt.s32.totalorder %s2476_s10, %s1320_s11 }
  0x5e   :  { %p1325_p0 = por %p1324_p13, %p1323_p12 }
  0x60   :  { %p1326_p1 = pnand %p1325_p0, %p1321_p11 }
  0x62   :  { %1329 = shalt.err (!%p1326_p1)  }
  0x63   :  { %110 = dma.hbm_to_vmem [thread:$0]  %s104_s30, 48, %s106_s15, [#allocation3], %s2384_s13, %s2384_s13, %s2385_s14 }
  0x64   :  { %s117_s24 = scalar_lea.hbm %s3252_s1, %s116_s8  ;;  %s129_s17 = sshrl.u32 %s2534_s5, 3 }
  0x65   :  { %s119_s16 = sshll.u32 %s117_s24, 4  ;;  %s130_s19 = sand.u32 7, %s2534_s5   ;;  %s120_s16 = int_to_ptr.hbm [resolvable:$true] %s119_s16 }
  0x66   :  { %s1342_s20 = sshra.s32 %s120_s16, 4  ;;  %s1343_s20 = int_to_ptr.hbm [resolvable:$true] %s1342_s20 }
  0x67   :  { %s1344_s21 = scalar_lea.hbm %s1343_s20, 3  ;;  %p1347_p3 = scmp.lt.s32.totalorder %s1343_s20, %s3252_s1 }
  0x68   :  { %p1345_p2 = scmp.ne.s32.totalorder %s1343_s20, %s1344_s21  ;;  %p1348_p4 = scmp.lt.s32.totalorder %s2476_s10, %s1344_s21 }
  0x6a   :  { %p1349_p5 = por %p1348_p4, %p1347_p3 }
  0x6c   :  { %p1350_p6 = pnand %p1349_p5, %p1345_p2 }
  0x6e   :  { %1353 = shalt.err (!%p1350_p6)  }
  0x6f   :  { %126 = dma.hbm_to_vmem [thread:$0]  %s120_s16, 48, %s122_s4, [#allocation3], %s2384_s13, %s2384_s13, %s2385_s14 }
  0x70   :  { %s131_s15 = smul.u32 24, %s129_s17  ;;  %s2390_s26 = smov [#allocation2 + $0x7]  }
  0x71   :  { %s137_s5 = sshll.u32 %s2390_s26, 4  ;;  %s1091_s27 = sld [smem:[#allocation5 + $0x8]]  ;;  %s138_s5 = int_to_ptr.vmem [resolvable:$true] %s137_s5 }
  0x72   :  { %s132_s28 = sadd.s32 %s131_s15, %s130_s19  ;;  %s2391_s3 = smov [#allocation2 + $0x18]  }
  0x73   :  { %s133_s7 = scalar_lea.hbm %s3252_s1, %s132_s28  ;;  %s2582_s8 = sshll.u32 %s2391_s3, 4  ;;  %s154_s8 = int_to_ptr.vmem [resolvable:$true] %s2582_s8 }
  0x74   :  { %s135_s30 = sshll.u32 %s133_s7, 4  ;;  %s136_s30 = int_to_ptr.hbm [resolvable:$true] %s135_s30 }
  0x75   :  { %s1366_s9 = sshra.s32 %s136_s30, 4  ;;  %s1367_s9 = int_to_ptr.hbm [resolvable:$true] %s1366_s9 }
  0x76   :  { %s1368_s4 = scalar_lea.hbm %s1367_s9, 3  ;;  %p1371_p8 = scmp.lt.s32.totalorder %s1367_s9, %s3252_s1 }
  0x77   :  { %p1369_p7 = scmp.ne.s32.totalorder %s1367_s9, %s1368_s4  ;;  %p1372_p9 = scmp.lt.s32.totalorder %s2476_s10, %s1368_s4 }
  0x79   :  { %p1373_p10 = por %p1372_p9, %p1371_p8 }
  0x7b   :  { %p1374_p11 = pnand %p1373_p10, %p1369_p7 }
  0x7d   :  { %1377 = shalt.err (!%p1374_p11)  }
  0x7e   :  { %142 = dma.hbm_to_vmem [thread:$0]  %s136_s30, 48, %s138_s5, [#allocation3], %s2384_s13, %s2384_s13, %s2385_s14 }
  0x7f   :  { %s145_s18 = sshrl.u32 %s1091_s27, 3  ;;  %s146_s29 = sand.u32 7, %s1091_s27  }
  0x80   :  { %s147_s0 = smul.u32 24, %s145_s18  ;;  %s1092_s24 = sld [smem:[#allocation5 + $0x9]] }
  0x81   :  { %s2592_s16 = sld [smem:[#allocation5 + $0xa]]  ;;  %s2392_s19 = smov [#allocation2 + $0x19]  }
  0x82   :  { %s148_s17 = sadd.s32 %s147_s0, %s146_s29  ;;  %s2594_s20 = sshll.u32 %s2392_s19, 4  ;;  %s170_s20 = int_to_ptr.vmem [resolvable:$true] %s2594_s20 }
  0x83   :  { %s149_s25 = scalar_lea.hbm %s3252_s1, %s148_s17  ;;  %s2393_s26 = smov [#allocation2 + $0x1a]  }
  0x84   :  { %s151_s15 = sshll.u32 %s149_s25, 4  ;;  %s2600_s5 = sshll.u32 %s2393_s26, 4  ;;  %s152_s15 = int_to_ptr.hbm [resolvable:$true] %s151_s15  ;;  %s186_s5 = int_to_ptr.vmem [resolvable:$true] %s2600_s5 }
  0x85   :  { %s1390_s27 = sshra.s32 %s152_s15, 4  ;;  %s1391_s27 = int_to_ptr.hbm [resolvable:$true] %s1390_s27 }
  0x86   :  { %s1392_s28 = scalar_lea.hbm %s1391_s27, 3  ;;  %p1395_p13 = scmp.lt.s32.totalorder %s1391_s27, %s3252_s1 }
  0x87   :  { %p1393_p12 = scmp.ne.s32.totalorder %s1391_s27, %s1392_s28  ;;  %p1396_p0 = scmp.lt.s32.totalorder %s2476_s10, %s1392_s28 }
  0x89   :  { %p1397_p1 = por %p1396_p0, %p1395_p13 }
  0x8b   :  { %p1398_p2 = pnand %p1397_p1, %p1393_p12 }
  0x8d   :  { %1401 = shalt.err (!%p1398_p2)  }
  0x8e   :  { %158 = dma.hbm_to_vmem [thread:$0]  %s152_s15, 48, %s154_s8, [#allocation3], %s2384_s13, %s2384_s13, %s2385_s14 }
  0x8f   :  { %s161_s7 = sshrl.u32 %s1092_s24, 3  ;;  %s162_s30 = sand.u32 7, %s1092_s24  }
  0x90   :  { %s163_s3 = smul.u32 24, %s161_s7  ;;  %s177_s9 = sshrl.u32 %s2592_s16, 3 }
  0x91   :  { %s178_s4 = sand.u32 7, %s2592_s16   ;;  %s179_s11 = smul.u32 24, %s177_s9 }
  0x92   :  { %s164_s12 = sadd.s32 %s163_s3, %s162_s30 }
  0x93   :  { %s165_s0 = scalar_lea.hbm %s3252_s1, %s164_s12  ;;  %s180_s17 = sadd.s32 %s179_s11, %s178_s4 }
  0x94   :  { %s167_s19 = sshll.u32 %s165_s0, 4  ;;  %s181_s25 = scalar_lea.hbm %s3252_s1, %s180_s17  ;;  %s168_s19 = int_to_ptr.hbm [resolvable:$true] %s167_s19 }
  0x95   :  { %s183_s8 = sshll.u32 %s181_s25, 4  ;;  %s1414_s24 = sshra.s32 %s168_s19, 4  ;;  %s1415_s24 = int_to_ptr.hbm [resolvable:$true] %s1414_s24  ;;  %s184_s8 = int_to_ptr.hbm [resolvable:$true] %s183_s8 }
  0x96   :  { %s1416_s15 = scalar_lea.hbm %s1415_s24, 3  ;;  %p1419_p4 = scmp.lt.s32.totalorder %s1415_s24, %s3252_s1 }
  0x97   :  { %p1417_p3 = scmp.ne.s32.totalorder %s1415_s24, %s1416_s15  ;;  %p1420_p5 = scmp.lt.s32.totalorder %s2476_s10, %s1416_s15 }
  0x99   :  { %p1421_p6 = por %p1420_p5, %p1419_p4 }
  0x9b   :  { %p1422_p7 = pnand %p1421_p6, %p1417_p3 }
  0x9d   :  { %1425 = shalt.err (!%p1422_p7)  }
  0x9e   :  { %174 = dma.hbm_to_vmem [thread:$0]  %s168_s19, 48, %s170_s20, [#allocation3], %s2384_s13, %s2384_s13, %s2385_s14 }
  0x9f   :  { %s1094_s27 = sld [smem:[#allocation5 + $0xb]]  ;;  %s1438_s28 = sshra.s32 %s184_s8, 4  ;;  %s1439_s28 = int_to_ptr.hbm [resolvable:$true] %s1438_s28 }
  0xa0   :  { %s1440_s23 = scalar_lea.hbm %s1439_s28, 3  ;;  %p1443_p9 = scmp.lt.s32.totalorder %s1439_s28, %s3252_s1 }
  0xa1   :  { %p1441_p8 = scmp.ne.s32.totalorder %s1439_s28, %s1440_s23  ;;  %p1444_p10 = scmp.lt.s32.totalorder %s2476_s10, %s1440_s23 }
  0xa3   :  { %p1445_p11 = por %p1444_p10, %p1443_p9 }
  0xa5   :  { %p1446_p12 = pnand %p1445_p11, %p1441_p8 }
  0xa7   :  { %1449 = shalt.err (!%p1446_p12)  }
  0xa8   :  { %190 = dma.hbm_to_vmem [thread:$0]  %s184_s8, 48, %s186_s5, [#allocation3], %s2384_s13, %s2384_s13, %s2385_s14 }
  0xa9   :  { %s1095_s20 = sld [smem:[#allocation5 + $0xc]]  ;;  %s2394_s30 = smov [#allocation2 + $0x1b]  }
  0xaa   :  { %s2638_s3 = sshll.u32 %s2394_s30, 4  ;;  %s2395_s9 = smov [#allocation2 + $0x1c]   ;;  %s202_s3 = int_to_ptr.vmem [resolvable:$true] %s2638_s3 }
  0xab   :  { %s2641_s4 = sshll.u32 %s2395_s9, 4  ;;  %s2644_s11 = sld [smem:[#allocation5 + $0xd]]  ;;  %s218_s4 = int_to_ptr.vmem [resolvable:$true] %s2641_s4 }
  0xac   :  { %s193_s12 = sshrl.u32 %s1094_s27, 3  ;;  %s194_s18 = sand.u32 7, %s1094_s27  }
  0xad   :  { %s195_s29 = smul.u32 24, %s193_s12  ;;  %s2396_s8 = smov [#allocation2 + $0x1d]  }
  0xae   :  { %s2649_s24 = sshll.u32 %s2396_s8, 4  ;;  %s234_s24 = int_to_ptr.vmem [resolvable:$true] %s2649_s24 }
  0xaf   :  { %s209_s0 = sshrl.u32 %s1095_s20, 3  ;;  %s210_s17 = sand.u32 7, %s1095_s20  }
  0xb0   :  { %s196_s5 = sadd.s32 %s195_s29, %s194_s18  ;;  %s211_s19 = smul.u32 24, %s209_s0 }
  0xb1   :  { %s197_s25 = scalar_lea.hbm %s3252_s1, %s196_s5 }
  0xb2   :  { %s199_s15 = sshll.u32 %s197_s25, 4  ;;  %s212_s16 = sadd.s32 %s211_s19, %s210_s17  ;;  %s200_s15 = int_to_ptr.hbm [resolvable:$true] %s199_s15 }
  0xb3   :  { %s213_s27 = scalar_lea.hbm %s3252_s1, %s212_s16  ;;  %s1462_s23 = sshra.s32 %s200_s15, 4  ;;  %s1463_s23 = int_to_ptr.hbm [resolvable:$true] %s1462_s23 }
  0xb4   :  { %s1464_s6 = scalar_lea.hbm %s1463_s23, 3  ;;  %p1467_p0 = scmp.lt.s32.totalorder %s1463_s23, %s3252_s1 }
  0xb5   :  { %p1465_p13 = scmp.ne.s32.totalorder %s1463_s23, %s1464_s6  ;;  %p1468_p1 = scmp.lt.s32.totalorder %s2476_s10, %s1464_s6 }
  0xb7   :  { %p1469_p2 = por %p1468_p1, %p1467_p0 }
  0xb9   :  { %p1470_p3 = pnand %p1469_p2, %p1465_p13 }
  0xbb   :  { %1473 = shalt.err (!%p1470_p3)  }
  0xbc   :  { %206 = dma.hbm_to_vmem [thread:$0]  %s200_s15, 48, %s202_s3, [#allocation3], %s2384_s13, %s2384_s13, %s2385_s14 }
  0xbd   :  { %s215_s30 = sshll.u32 %s213_s27, 4  ;;  %s225_s9 = sshrl.u32 %s2644_s11, 3  ;;  %s216_s30 = int_to_ptr.hbm [resolvable:$true] %s215_s30 }
  0xbe   :  { %s226_s12 = sand.u32 7, %s2644_s11   ;;  %s1486_s18 = sshra.s32 %s216_s30, 4  ;;  %s1487_s18 = int_to_ptr.hbm [resolvable:$true] %s1486_s18 }
  0xbf   :  { %s1488_s29 = scalar_lea.hbm %s1487_s18, 3  ;;  %p1491_p5 = scmp.lt.s32.totalorder %s1487_s18, %s3252_s1 }
  0xc0   :  { %p1489_p4 = scmp.ne.s32.totalorder %s1487_s18, %s1488_s29  ;;  %p1492_p6 = scmp.lt.s32.totalorder %s2476_s10, %s1488_s29 }
  0xc2   :  { %p1493_p7 = por %p1492_p6, %p1491_p5 }
  0xc4   :  { %p1494_p8 = pnand %p1493_p7, %p1489_p4 }
  0xc6   :  { %1497 = shalt.err (!%p1494_p8)  }
  0xc7   :  { %222 = dma.hbm_to_vmem [thread:$0]  %s216_s30, 48, %s218_s4, [#allocation3], %s2384_s13, %s2384_s13, %s2385_s14 }
  0xc8   :  { %s227_s3 = smul.u32 24, %s225_s9  ;;  %s1097_s11 = sld [smem:[#allocation5 + $0xe]] }
  0xc9   :  { %s2397_s19 = smov [#allocation2 + $0x1e]   ;;  %s2681_s16 = sld [smem:[#allocation5 + $0xf]] }
  0xca   :  { %s228_s5 = sadd.s32 %s227_s3, %s226_s12  ;;  %s2675_s21 = sshll.u32 %s2397_s19, 4  ;;  %s250_s21 = int_to_ptr.vmem [resolvable:$true] %s2675_s21 }
  0xcb   :  { %s229_s8 = scalar_lea.hbm %s3252_s1, %s228_s5 }
  0xcc   :  { %s231_s15 = sshll.u32 %s229_s8, 4  ;;  %s232_s15 = int_to_ptr.hbm [resolvable:$true] %s231_s15 }
  0xcd   :  { %s1510_s26 = sshra.s32 %s232_s15, 4  ;;  %s1511_s26 = int_to_ptr.hbm [resolvable:$true] %s1510_s26 }
  0xce   :  { %s1512_s4 = scalar_lea.hbm %s1511_s26, 3  ;;  %p1515_p10 = scmp.lt.s32.totalorder %s1511_s26, %s3252_s1 }
  0xcf   :  { %p1513_p9 = scmp.ne.s32.totalorder %s1511_s26, %s1512_s4  ;;  %p1516_p11 = scmp.lt.s32.totalorder %s2476_s10, %s1512_s4 }
  0xd1   :  { %p1517_p12 = por %p1516_p11, %p1515_p10 }
  0xd3   :  { %p1518_p13 = pnand %p1517_p12, %p1513_p9 }
  0xd5   :  { %1521 = shalt.err (!%p1518_p13)  }
  0xd6   :  { %238 = dma.hbm_to_vmem [thread:$0]  %s232_s15, 48, %s234_s24, [#allocation3], %s2384_s13, %s2384_s13, %s2385_s14 }
  0xd7   :  { %s241_s23 = sshrl.u32 %s1097_s11, 3  ;;  %s242_s6 = sand.u32 7, %s1097_s11  }
  0xd8   :  { %s243_s7 = smul.u32 24, %s241_s23  ;;  %s2398_s20 = smov [#allocation2 + $0x1f]  }
  0xd9   :  { %s2690_s30 = sshll.u32 %s2398_s20, 4  ;;  %s2693_s9 = sld [smem:[#allocation5 + $0x10]]  ;;  %s266_s30 = int_to_ptr.vmem [resolvable:$true] %s2690_s30 }
  0xda   :  { %s244_s12 = sadd.s32 %s243_s7, %s242_s6  ;;  %s257_s18 = sshrl.u32 %s2681_s16, 3 }
  0xdb   :  { %s245_s17 = scalar_lea.hbm %s3252_s1, %s244_s12  ;;  %s258_s3 = sand.u32 7, %s2681_s16  }
  0xdc   :  { %s247_s5 = sshll.u32 %s245_s17, 4  ;;  %s259_s24 = smul.u32 24, %s257_s18  ;;  %s248_s5 = int_to_ptr.hbm [resolvable:$true] %s247_s5 }
  0xdd   :  { %s1534_s11 = sshra.s32 %s248_s5, 4  ;;  %s1535_s11 = int_to_ptr.hbm [resolvable:$true] %s1534_s11 }
  0xde   :  { %s1536_s19 = scalar_lea.hbm %s1535_s11, 3  ;;  %p1539_p1 = scmp.lt.s32.totalorder %s1535_s11, %s3252_s1 }
  0xdf   :  { %p1537_p0 = scmp.ne.s32.totalorder %s1535_s11, %s1536_s19  ;;  %p1540_p2 = scmp.lt.s32.totalorder %s2476_s10, %s1536_s19 }
  0xe1   :  { %p1541_p3 = por %p1540_p2, %p1539_p1 }
  0xe3   :  { %p1542_p4 = pnand %p1541_p3, %p1537_p0 }
  0xe5   :  { %1545 = shalt.err (!%p1542_p4)  }
  0xe6   :  { %254 = dma.hbm_to_vmem [thread:$0]  %s248_s5, 48, %s250_s21, [#allocation3], %s2384_s13, %s2384_s13, %s2385_s14 }
  0xe7   :  { %s260_s8 = sadd.s32 %s259_s24, %s258_s3  ;;  %s273_s15 = sshrl.u32 %s2693_s9, 3 }
  0xe8   :  { %s261_s4 = scalar_lea.hbm %s3252_s1, %s260_s8  ;;  %s274_s28 = sand.u32 7, %s2693_s9  }
  0xe9   :  { %s263_s27 = sshll.u32 %s261_s4, 4  ;;  %s275_s23 = smul.u32 24, %s273_s15  ;;  %s264_s27 = int_to_ptr.hbm [resolvable:$true] %s263_s27 }
  0xea   :  { %s2399_s6 = smov [#allocation2 + $0x30]   ;;  %s1558_s20 = sshra.s32 %s264_s27, 4  ;;  %s1559_s20 = int_to_ptr.hbm [resolvable:$true] %s1558_s20 }
  0xeb   :  { %s2714_s7 = sshll.u32 %s2399_s6, 4  ;;  %s1560_s12 = scalar_lea.hbm %s1559_s20, 3  ;;  %s282_s7 = int_to_ptr.vmem [resolvable:$true] %s2714_s7 }
  0xec   :  { %p1561_p5 = scmp.ne.s32.totalorder %s1559_s20, %s1560_s12  ;;  %p1563_p6 = scmp.lt.s32.totalorder %s1559_s20, %s3252_s1 }
  0xed   :  { %p1564_p7 = scmp.lt.s32.totalorder %s2476_s10, %s1560_s12 }
  0xef   :  { %p1565_p8 = por %p1564_p7, %p1563_p6 }
  0xf1   :  { %p1566_p9 = pnand %p1565_p8, %p1561_p5 }
  0xf3   :  { %1569 = shalt.err (!%p1566_p9)  }
  0xf4   :  { %270 = dma.hbm_to_vmem [thread:$0]  %s264_s27, 48, %s266_s30, [#allocation3], %s2384_s13, %s2384_s13, %s2385_s14 }
  0xf5   :  { %s276_s21 = sadd.s32 %s275_s23, %s274_s28  ;;  %s1100_s3 = sld [smem:[#allocation5 + $0x11]] }
  0xf6   :  { %s277_s17 = scalar_lea.hbm %s3252_s1, %s276_s21  ;;  %s2400_s24 = smov [#allocation2 + $0x31]  }
  0xf7   :  { %s279_s5 = sshll.u32 %s277_s17, 4  ;;  %s2729_s11 = sshll.u32 %s2400_s24, 4  ;;  %s280_s5 = int_to_ptr.hbm [resolvable:$true] %s279_s5  ;;  %s298_s11 = int_to_ptr.vmem [resolvable:$true] %s2729_s11 }
  0xf8   :  { %s1582_s19 = sshra.s32 %s280_s5, 4  ;;  %s1583_s19 = int_to_ptr.hbm [resolvable:$true] %s1582_s19 }
  0xf9   :  { %s1584_s22 = scalar_lea.hbm %s1583_s19, 3  ;;  %p1587_p11 = scmp.lt.s32.totalorder %s1583_s19, %s3252_s1 }
  0xfa   :  { %p1585_p10 = scmp.ne.s32.totalorder %s1583_s19, %s1584_s22  ;;  %p1588_p12 = scmp.lt.s32.totalorder %s2476_s10, %s1584_s22 }
  0xfc   :  { %p1589_p13 = por %p1588_p12, %p1587_p11 }
  0xfe   :  { %p1590_p0 = pnand %p1589_p13, %p1585_p10 }
 0x100   :  { %1593 = shalt.err (!%p1590_p0)  }
 0x101   :  { %286 = dma.hbm_to_vmem [thread:$0]  %s280_s5, 48, %s282_s7, [#allocation3], %s2384_s13, %s2384_s13, %s2385_s14 }
 0x102   :  { %s2739_s30 = sld [smem:[#allocation5 + $0x12]]  ;;  %s289_s16 = sshrl.u32 %s1100_s3, 3 }
 0x103   :  { %s2741_s15 = sld [smem:[#allocation5 + $0x13]]  ;;  %s290_s26 = sand.u32 7, %s1100_s3  }
 0x104   :  { %s291_s4 = smul.u32 24, %s289_s16  ;;  %s2401_s28 = smov [#allocation2 + $0x32]  }
 0x105   :  { %s2743_s27 = sshll.u32 %s2401_s28, 4  ;;  %s2402_s6 = smov [#allocation2 + $0x33]   ;;  %s314_s27 = int_to_ptr.vmem [resolvable:$true] %s2743_s27 }
 0x106   :  { %s292_s23 = sadd.s32 %s291_s4, %s290_s26  ;;  %s2746_s20 = sshll.u32 %s2402_s6, 4  ;;  %s330_s20 = int_to_ptr.vmem [resolvable:$true] %s2746_s20 }
 0x107   :  { %s293_s18 = scalar_lea.hbm %s3252_s1, %s292_s23 }
 0x108   :  { %s305_s29 = sshrl.u32 %s2739_s30, 3  ;;  %s295_s21 = sshll.u32 %s293_s18, 4  ;;  %s296_s21 = int_to_ptr.hbm [resolvable:$true] %s295_s21 }
 0x109   :  { %s306_s9 = sand.u32 7, %s2739_s30   ;;  %s307_s0 = smul.u32 24, %s305_s29 }
 0x10a   :  { %s1606_s17 = sshra.s32 %s296_s21, 4  ;;  %s1607_s17 = int_to_ptr.hbm [resolvable:$true] %s1606_s17 }
 0x10b   :  { %s1608_s3 = scalar_lea.hbm %s1607_s17, 3  ;;  %p1611_p2 = scmp.lt.s32.totalorder %s1607_s17, %s3252_s1 }
 0x10c   :  { %p1609_p1 = scmp.ne.s32.totalorder %s1607_s17, %s1608_s3  ;;  %p1612_p3 = scmp.lt.s32.totalorder %s2476_s10, %s1608_s3 }
 0x10e   :  { %p1613_p4 = por %p1612_p3, %p1611_p2 }
 0x110   :  { %p1614_p5 = pnand %p1613_p4, %p1609_p1 }
 0x112   :  { %1617 = shalt.err (!%p1614_p5)  }
 0x113   :  { %302 = dma.hbm_to_vmem [thread:$0]  %s296_s21, 48, %s298_s11, [#allocation3], %s2384_s13, %s2384_s13, %s2385_s14 }
 0x114   :  { %s308_s19 = sadd.s32 %s307_s0, %s306_s9  ;;  %s321_s22 = sshrl.u32 %s2741_s15, 3 }
 0x115   :  { %s309_s30 = scalar_lea.hbm %s3252_s1, %s308_s19  ;;  %s322_s16 = sand.u32 7, %s2741_s15  }
 0x116   :  { %s311_s26 = sshll.u32 %s309_s30, 4  ;;  %s323_s4 = smul.u32 24, %s321_s22  ;;  %s312_s26 = int_to_ptr.hbm [resolvable:$true] %s311_s26 }
 0x117   :  { %s1630_s28 = sshra.s32 %s312_s26, 4  ;;  %s1631_s28 = int_to_ptr.hbm [resolvable:$true] %s1630_s28 }
 0x118   :  { %s1632_s23 = scalar_lea.hbm %s1631_s28, 3  ;;  %p1635_p7 = scmp.lt.s32.totalorder %s1631_s28, %s3252_s1 }
 0x119   :  { %p1633_p6 = scmp.ne.s32.totalorder %s1631_s28, %s1632_s23  ;;  %p1636_p8 = scmp.lt.s32.totalorder %s2476_s10, %s1632_s23 }
 0x11b   :  { %p1637_p9 = por %p1636_p8, %p1635_p7 }
 0x11d   :  { %p1638_p10 = pnand %p1637_p9, %p1633_p6 }
 0x11f   :  { %1641 = shalt.err (!%p1638_p10)  }
 0x120   :  { %318 = dma.hbm_to_vmem [thread:$0]  %s312_s26, 48, %s314_s27, [#allocation3], %s2384_s13, %s2384_s13, %s2385_s14 }
 0x121   :  { %s324_s11 = sadd.s32 %s323_s4, %s322_s16  ;;  %s1103_s15 = sld [smem:[#allocation5 + $0x14]] }
 0x122   :  { %s325_s29 = scalar_lea.hbm %s3252_s1, %s324_s11  ;;  %s2403_s9 = smov [#allocation2 + $0x34]  }
 0x123   :  { %s327_s21 = sshll.u32 %s325_s29, 4  ;;  %s2780_s0 = sshll.u32 %s2403_s9, 4  ;;  %s328_s21 = int_to_ptr.hbm [resolvable:$true] %s327_s21  ;;  %s346_s0 = int_to_ptr.vmem [resolvable:$true] %s2780_s0 }
 0x124   :  { %s1654_s17 = sshra.s32 %s328_s21, 4  ;;  %s1655_s17 = int_to_ptr.hbm [resolvable:$true] %s1654_s17 }
 0x125   :  { %s1656_s3 = scalar_lea.hbm %s1655_s17, 3  ;;  %p1659_p12 = scmp.lt.s32.totalorder %s1655_s17, %s3252_s1 }
 0x126   :  { %p1657_p11 = scmp.ne.s32.totalorder %s1655_s17, %s1656_s3  ;;  %p1660_p13 = scmp.lt.s32.totalorder %s2476_s10, %s1656_s3 }
 0x128   :  { %p1661_p0 = por %p1660_p13, %p1659_p12 }
 0x12a   :  { %p1662_p1 = pnand %p1661_p0, %p1657_p11 }
 0x12c   :  { %1665 = shalt.err (!%p1662_p1)  }
 0x12d   :  { %334 = dma.hbm_to_vmem [thread:$0]  %s328_s21, 48, %s330_s20, [#allocation3], %s2384_s13, %s2384_s13, %s2385_s14 }
 0x12e   :  { %s2792_s27 = sld [smem:[#allocation5 + $0x15]]  ;;  %s337_s19 = sshrl.u32 %s1103_s15, 3 }
 0x12f   :  { %s338_s22 = sand.u32 7, %s1103_s15   ;;  %s339_s25 = smul.u32 24, %s337_s19 }
 0x130   :  { %s2404_s8 = smov [#allocation2 + $0x35]   ;;  %s1105_s16 = sld [smem:[#allocation5 + $0x16]] }
 0x131   :  { %s2794_s30 = sshll.u32 %s2404_s8, 4  ;;  %s340_s26 = sadd.s32 %s339_s25, %s338_s22  ;;  %s362_s30 = int_to_ptr.vmem [resolvable:$true] %s2794_s30 }
 0x132   :  { %s341_s23 = scalar_lea.hbm %s3252_s1, %s340_s26  ;;  %s2405_s20 = smov [#allocation2 + $0x36]  }
 0x133   :  { %s2800_s6 = sshll.u32 %s2405_s20, 4  ;;  %s343_s7 = sshll.u32 %s341_s23, 4  ;;  %s344_s7 = int_to_ptr.hbm [resolvable:$true] %s343_s7  ;;  %s378_s6 = int_to_ptr.vmem [resolvable:$true] %s2800_s6 }
 0x134   :  { %s353_s11 = sshrl.u32 %s2792_s27, 3  ;;  %s354_s15 = sand.u32 7, %s2792_s27  }
 0x135   :  { %s1678_s12 = sshra.s32 %s344_s7, 4  ;;  %s1679_s12 = int_to_ptr.hbm [resolvable:$true] %s1678_s12 }
 0x136   :  { %s1680_s18 = scalar_lea.hbm %s1679_s12, 3  ;;  %p1683_p3 = scmp.lt.s32.totalorder %s1679_s12, %s3252_s1 }
 0x137   :  { %p1681_p2 = scmp.ne.s32.totalorder %s1679_s12, %s1680_s18  ;;  %p1684_p4 = scmp.lt.s32.totalorder %s2476_s10, %s1680_s18 }
 0x139   :  { %p1685_p5 = por %p1684_p4, %p1683_p3 }
 0x13b   :  { %p1686_p6 = pnand %p1685_p5, %p1681_p2 }
 0x13d   :  { %1689 = shalt.err (!%p1686_p6)  }
 0x13e   :  { %350 = dma.hbm_to_vmem [thread:$0]  %s344_s7, 48, %s346_s0, [#allocation3], %s2384_s13, %s2384_s13, %s2385_s14 }
 0x13f   :  { %s355_s9 = smul.u32 24, %s353_s11  ;;  %s369_s17 = sshrl.u32 %s1105_s16, 3 }
 0x140   :  { %s370_s3 = sand.u32 7, %s1105_s16   ;;  %s371_s5 = smul.u32 24, %s369_s17 }
 0x141   :  { %s356_s24 = sadd.s32 %s355_s9, %s354_s15 }
 0x142   :  { %s357_s22 = scalar_lea.hbm %s3252_s1, %s356_s24  ;;  %s372_s25 = sadd.s32 %s371_s5, %s370_s3 }
 0x143   :  { %s359_s8 = sshll.u32 %s357_s22, 4  ;;  %s373_s28 = scalar_lea.hbm %s3252_s1, %s372_s25  ;;  %s360_s8 = int_to_ptr.hbm [resolvable:$true] %s359_s8 }
 0x144   :  { %s375_s23 = sshll.u32 %s373_s28, 4  ;;  %s1702_s0 = sshra.s32 %s360_s8, 4  ;;  %s1703_s0 = int_to_ptr.hbm [resolvable:$true] %s1702_s0  ;;  %s376_s23 = int_to_ptr.hbm [resolvable:$true] %s375_s23 }
 0x145   :  { %s1704_s20 = scalar_lea.hbm %s1703_s0, 3  ;;  %p1707_p8 = scmp.lt.s32.totalorder %s1703_s0, %s3252_s1 }
 0x146   :  { %p1705_p7 = scmp.ne.s32.totalorder %s1703_s0, %s1704_s20  ;;  %p1708_p9 = scmp.lt.s32.totalorder %s2476_s10, %s1704_s20 }
 0x148   :  { %p1709_p10 = por %p1708_p9, %p1707_p8 }
 0x14a   :  { %p1710_p11 = pnand %p1709_p10, %p1705_p7 }
 0x14c   :  { %1713 = shalt.err (!%p1710_p11)  }
 0x14d   :  { %366 = dma.hbm_to_vmem [thread:$0]  %s360_s8, 48, %s362_s30, [#allocation3], %s2384_s13, %s2384_s13, %s2385_s14 }
 0x14e   :  { %s1106_s11 = sld [smem:[#allocation5 + $0x17]]  ;;  %s1726_s15 = sshra.s32 %s376_s23, 4  ;;  %s1727_s15 = int_to_ptr.hbm [resolvable:$true] %s1726_s15 }
 0x14f   :  { %s1728_s12 = scalar_lea.hbm %s1727_s15, 3  ;;  %p1731_p13 = scmp.lt.s32.totalorder %s1727_s15, %s3252_s1 }
 0x150   :  { %p1729_p12 = scmp.ne.s32.totalorder %s1727_s15, %s1728_s12  ;;  %p1732_p0 = scmp.lt.s32.totalorder %s2476_s10, %s1728_s12 }
 0x152   :  { %p1733_p1 = por %p1732_p0, %p1731_p13 }
 0x154   :  { %p1734_p2 = pnand %p1733_p1, %p1729_p12 }
 0x156   :  { %1737 = shalt.err (!%p1734_p2)  }
 0x157   :  { %382 = dma.hbm_to_vmem [thread:$0]  %s376_s23, 48, %s378_s6, [#allocation3], %s2384_s13, %s2384_s13, %s2385_s14 }
 0x158   :  { %s1107_s30 = sld [smem:[#allocation5 + $0x18]]  ;;  %s2406_s21 = smov [#allocation2 + $0x37]  }
 0x159   :  { %s2838_s9 = sshll.u32 %s2406_s21, 4  ;;  %s2407_s17 = smov [#allocation2 + $0x48]   ;;  %s394_s9 = int_to_ptr.vmem [resolvable:$true] %s2838_s9 }
 0x15a   :  { %s2841_s3 = sshll.u32 %s2407_s17, 4  ;;  %s2844_s5 = sld [smem:[#allocation5 + $0x19]]  ;;  %s410_s3 = int_to_ptr.vmem [resolvable:$true] %s2841_s3 }
 0x15b   :  { %s385_s24 = sshrl.u32 %s1106_s11, 3  ;;  %s386_s27 = sand.u32 7, %s1106_s11  }
 0x15c   :  { %s387_s19 = smul.u32 24, %s385_s24  ;;  %s2408_s23 = smov [#allocation2 + $0x49]  }
 0x15d   :  { %s2849_s0 = sshll.u32 %s2408_s23, 4  ;;  %s426_s0 = int_to_ptr.vmem [resolvable:$true] %s2849_s0 }
 0x15e   :  { %s401_s22 = sshrl.u32 %s1107_s30, 3  ;;  %s402_s25 = sand.u32 7, %s1107_s30  }
 0x15f   :  { %s388_s6 = sadd.s32 %s387_s19, %s386_s27  ;;  %s403_s8 = smul.u32 24, %s401_s22 }
 0x160   :  { %s389_s28 = scalar_lea.hbm %s3252_s1, %s388_s6 }
 0x161   :  { %s391_s20 = sshll.u32 %s389_s28, 4  ;;  %s404_s16 = sadd.s32 %s403_s8, %s402_s25  ;;  %s392_s20 = int_to_ptr.hbm [resolvable:$true] %s391_s20 }
 0x162   :  { %s405_s11 = scalar_lea.hbm %s3252_s1, %s404_s16  ;;  %s1750_s12 = sshra.s32 %s392_s20, 4  ;;  %s1751_s12 = int_to_ptr.hbm [resolvable:$true] %s1750_s12 }
 0x163   :  { %s1752_s18 = scalar_lea.hbm %s1751_s12, 3  ;;  %p1755_p4 = scmp.lt.s32.totalorder %s1751_s12, %s3252_s1 }
 0x164   :  { %p1753_p3 = scmp.ne.s32.totalorder %s1751_s12, %s1752_s18  ;;  %p1756_p5 = scmp.lt.s32.totalorder %s2476_s10, %s1752_s18 }
 0x166   :  { %p1757_p6 = por %p1756_p5, %p1755_p4 }
 0x168   :  { %p1758_p7 = pnand %p1757_p6, %p1753_p3 }
 0x16a   :  { %1761 = shalt.err (!%p1758_p7)  }
 0x16b   :  { %398 = dma.hbm_to_vmem [thread:$0]  %s392_s20, 48, %s394_s9, [#allocation3], %s2384_s13, %s2384_s13, %s2385_s14 }
 0x16c   :  { %s407_s21 = sshll.u32 %s405_s11, 4  ;;  %s417_s17 = sshrl.u32 %s2844_s5, 3  ;;  %s408_s21 = int_to_ptr.hbm [resolvable:$true] %s407_s21 }
 0x16d   :  { %s418_s24 = sand.u32 7, %s2844_s5   ;;  %s1774_s27 = sshra.s32 %s408_s21, 4  ;;  %s1775_s27 = int_to_ptr.hbm [resolvable:$true] %s1774_s27 }
 0x16e   :  { %s1776_s19 = scalar_lea.hbm %s1775_s27, 3  ;;  %p1779_p9 = scmp.lt.s32.totalorder %s1775_s27, %s3252_s1 }
 0x16f   :  { %p1777_p8 = scmp.ne.s32.totalorder %s1775_s27, %s1776_s19  ;;  %p1780_p10 = scmp.lt.s32.totalorder %s2476_s10, %s1776_s19 }
 0x171   :  { %p1781_p11 = por %p1780_p10, %p1779_p9 }
 0x173   :  { %p1782_p12 = pnand %p1781_p11, %p1777_p8 }
 0x175   :  { %1785 = shalt.err (!%p1782_p12)  }
 0x176   :  { %414 = dma.hbm_to_vmem [thread:$0]  %s408_s21, 48, %s410_s3, [#allocation3], %s2384_s13, %s2384_s13, %s2385_s14 }
 0x177   :  { %s419_s9 = smul.u32 24, %s417_s17  ;;  %s1109_s5 = sld [smem:[#allocation5 + $0x1a]] }
 0x178   :  { %s2409_s8 = smov [#allocation2 + $0x4a]   ;;  %s2881_s16 = sld [smem:[#allocation5 + $0x1b]] }
 0x179   :  { %s420_s6 = sadd.s32 %s419_s9, %s418_s24  ;;  %s2875_s26 = sshll.u32 %s2409_s8, 4  ;;  %s442_s26 = int_to_ptr.vmem [resolvable:$true] %s2875_s26 }
 0x17a   :  { %s421_s23 = scalar_lea.hbm %s3252_s1, %s420_s6 }
 0x17b   :  { %s423_s20 = sshll.u32 %s421_s23, 4  ;;  %s424_s20 = int_to_ptr.hbm [resolvable:$true] %s423_s20 }
 0x17c   :  { %s1798_s7 = sshra.s32 %s424_s20, 4  ;;  %s1799_s7 = int_to_ptr.hbm [resolvable:$true] %s1798_s7 }
 0x17d   :  { %s1800_s3 = scalar_lea.hbm %s1799_s7, 3  ;;  %p1803_p0 = scmp.lt.s32.totalorder %s1799_s7, %s3252_s1 }
 0x17e   :  { %p1801_p13 = scmp.ne.s32.totalorder %s1799_s7, %s1800_s3  ;;  %p1804_p1 = scmp.lt.s32.totalorder %s2476_s10, %s1800_s3 }
 0x180   :  { %p1805_p2 = por %p1804_p1, %p1803_p0 }
 0x182   :  { %p1806_p3 = pnand %p1805_p2, %p1801_p13 }
 0x184   :  { %1809 = shalt.err (!%p1806_p3)  }
 0x185   :  { %430 = dma.hbm_to_vmem [thread:$0]  %s424_s20, 48, %s426_s0, [#allocation3], %s2384_s13, %s2384_s13, %s2385_s14 }
 0x186   :  { %s433_s12 = sshrl.u32 %s1109_s5, 3  ;;  %s434_s18 = sand.u32 7, %s1109_s5  }
 0x187   :  { %s435_s29 = smul.u32 24, %s433_s12  ;;  %s2410_s30 = smov [#allocation2 + $0x4b]  }
 0x188   :  { %s2890_s21 = sshll.u32 %s2410_s30, 4  ;;  %s2893_s17 = sld [smem:[#allocation5 + $0x1c]]  ;;  %s458_s21 = int_to_ptr.vmem [resolvable:$true] %s2890_s21 }
 0x189   :  { %s436_s24 = sadd.s32 %s435_s29, %s434_s18  ;;  %s449_s27 = sshrl.u32 %s2881_s16, 3 }
 0x18a   :  { %s437_s25 = scalar_lea.hbm %s3252_s1, %s436_s24  ;;  %s450_s9 = sand.u32 7, %s2881_s16  }
 0x18b   :  { %s439_s6 = sshll.u32 %s437_s25, 4  ;;  %s451_s0 = smul.u32 24, %s449_s27  ;;  %s440_s6 = int_to_ptr.hbm [resolvable:$true] %s439_s6 }
 0x18c   :  { %s1822_s5 = sshra.s32 %s440_s6, 4  ;;  %s1823_s5 = int_to_ptr.hbm [resolvable:$true] %s1822_s5 }
 0x18d   :  { %s1824_s8 = scalar_lea.hbm %s1823_s5, 3  ;;  %p1827_p5 = scmp.lt.s32.totalorder %s1823_s5, %s3252_s1 }
 0x18e   :  { %p1825_p4 = scmp.ne.s32.totalorder %s1823_s5, %s1824_s8  ;;  %p1828_p6 = scmp.lt.s32.totalorder %s2476_s10, %s1824_s8 }
 0x190   :  { %p1829_p7 = por %p1828_p6, %p1827_p5 }
 0x192   :  { %p1830_p8 = pnand %p1829_p7, %p1825_p4 }
 0x194   :  { %1833 = shalt.err (!%p1830_p8)  }
 0x195   :  { %446 = dma.hbm_to_vmem [thread:$0]  %s440_s6, 48, %s442_s26, [#allocation3], %s2384_s13, %s2384_s13, %s2385_s14 }
 0x196   :  { %s452_s23 = sadd.s32 %s451_s0, %s450_s9  ;;  %s465_s20 = sshrl.u32 %s2893_s17, 3 }
 0x197   :  { %s453_s3 = scalar_lea.hbm %s3252_s1, %s452_s23  ;;  %s466_s15 = sand.u32 7, %s2893_s17  }
 0x198   :  { %s455_s11 = sshll.u32 %s453_s3, 4  ;;  %s467_s12 = smul.u32 24, %s465_s20  ;;  %s456_s11 = int_to_ptr.hbm [resolvable:$true] %s455_s11 }
 0x199   :  { %s2411_s18 = smov [#allocation2 + $0x4c]   ;;  %s1846_s30 = sshra.s32 %s456_s11, 4  ;;  %s1847_s30 = int_to_ptr.hbm [resolvable:$true] %s1846_s30 }
 0x19a   :  { %s2914_s29 = sshll.u32 %s2411_s18, 4  ;;  %s1848_s24 = scalar_lea.hbm %s1847_s30, 3  ;;  %s474_s29 = int_to_ptr.vmem [resolvable:$true] %s2914_s29 }
 0x19b   :  { %p1849_p9 = scmp.ne.s32.totalorder %s1847_s30, %s1848_s24  ;;  %p1851_p10 = scmp.lt.s32.totalorder %s1847_s30, %s3252_s1 }
 0x19c   :  { %p1852_p11 = scmp.lt.s32.totalorder %s2476_s10, %s1848_s24 }
 0x19e   :  { %p1853_p12 = por %p1852_p11, %p1851_p10 }
 0x1a0   :  { %p1854_p13 = pnand %p1853_p12, %p1849_p9 }
 0x1a2   :  { %1857 = shalt.err (!%p1854_p13)  }
 0x1a3   :  { %462 = dma.hbm_to_vmem [thread:$0]  %s456_s11, 48, %s458_s21, [#allocation3], %s2384_s13, %s2384_s13, %s2385_s14 }
 0x1a4   :  { %s468_s26 = sadd.s32 %s467_s12, %s466_s15  ;;  %s1112_s9 = sld [smem:[#allocation5 + $0x1d]] }
 0x1a5   :  { %s469_s25 = scalar_lea.hbm %s3252_s1, %s468_s26  ;;  %s2412_s0 = smov [#allocation2 + $0x4d]  }
 0x1a6   :  { %s471_s6 = sshll.u32 %s469_s25, 4  ;;  %s2929_s5 = sshll.u32 %s2412_s0, 4  ;;  %s472_s6 = int_to_ptr.hbm [resolvable:$true] %s471_s6  ;;  %s490_s5 = int_to_ptr.vmem [resolvable:$true] %s2929_s5 }
 0x1a7   :  { %s1870_s8 = sshra.s32 %s472_s6, 4  ;;  %s1871_s8 = int_to_ptr.hbm [resolvable:$true] %s1870_s8 }
 0x1a8   :  { %s1872_s4 = scalar_lea.hbm %s1871_s8, 3  ;;  %p1875_p1 = scmp.lt.s32.totalorder %s1871_s8, %s3252_s1 }
 0x1a9   :  { %p1873_p0 = scmp.ne.s32.totalorder %s1871_s8, %s1872_s4  ;;  %p1876_p2 = scmp.lt.s32.totalorder %s2476_s10, %s1872_s4 }
 0x1ab   :  { %p1877_p3 = por %p1876_p2, %p1875_p1 }
 0x1ad   :  { %p1878_p4 = pnand %p1877_p3, %p1873_p0 }
 0x1af   :  { %1881 = shalt.err (!%p1878_p4)  }
 0x1b0   :  { %478 = dma.hbm_to_vmem [thread:$0]  %s472_s6, 48, %s474_s29, [#allocation3], %s2384_s13, %s2384_s13, %s2385_s14 }
 0x1b1   :  { %s2939_s21 = sld [smem:[#allocation5 + $0x1e]]  ;;  %s481_s16 = sshrl.u32 %s1112_s9, 3 }
 0x1b2   :  { %s2941_s20 = sld [smem:[#allocation5 + $0x1f]]  ;;  %s482_s7 = sand.u32 7, %s1112_s9  }
 0x1b3   :  { %s483_s3 = smul.u32 24, %s481_s16  ;;  %s2413_s15 = smov [#allocation2 + $0x4e]  }
 0x1b4   :  { %s2943_s11 = sshll.u32 %s2413_s15, 4  ;;  %s2414_s18 = smov [#allocation2 + $0x4f]   ;;  %s506_s11 = int_to_ptr.vmem [resolvable:$true] %s2943_s11 }
 0x1b5   :  { %s484_s12 = sadd.s32 %s483_s3, %s482_s7  ;;  %s2946_s30 = sshll.u32 %s2414_s18, 4  ;;  %s522_s30 = int_to_ptr.vmem [resolvable:$true] %s2946_s30 }
 0x1b6   :  { %s485_s27 = scalar_lea.hbm %s3252_s1, %s484_s12 }
 0x1b7   :  { %s497_s19 = sshrl.u32 %s2939_s21, 3  ;;  %s487_s26 = sshll.u32 %s485_s27, 4  ;;  %s488_s26 = int_to_ptr.hbm [resolvable:$true] %s487_s26 }
 0x1b8   :  { %s498_s17 = sand.u32 7, %s2939_s21   ;;  %s499_s22 = smul.u32 24, %s497_s19 }
 0x1b9   :  { %s1894_s25 = sshra.s32 %s488_s26, 4  ;;  %s1895_s25 = int_to_ptr.hbm [resolvable:$true] %s1894_s25 }
 0x1ba   :  { %s1896_s9 = scalar_lea.hbm %s1895_s25, 3  ;;  %p1899_p6 = scmp.lt.s32.totalorder %s1895_s25, %s3252_s1 }
 0x1bb   :  { %p1897_p5 = scmp.ne.s32.totalorder %s1895_s25, %s1896_s9  ;;  %p1900_p7 = scmp.lt.s32.totalorder %s2476_s10, %s1896_s9 }
 0x1bd   :  { %p1901_p8 = por %p1900_p7, %p1899_p6 }
 0x1bf   :  { %p1902_p9 = pnand %p1901_p8, %p1897_p5 }
 0x1c1   :  { %1905 = shalt.err (!%p1902_p9)  }
 0x1c2   :  { %494 = dma.hbm_to_vmem [thread:$0]  %s488_s26, 48, %s490_s5, [#allocation3], %s2384_s13, %s2384_s13, %s2385_s14 }
 0x1c3   :  { %s500_s8 = sadd.s32 %s499_s22, %s498_s17  ;;  %s513_s4 = sshrl.u32 %s2941_s20, 3 }
 0x1c4   :  { %s501_s21 = scalar_lea.hbm %s3252_s1, %s500_s8  ;;  %s514_s16 = sand.u32 7, %s2941_s20  }
 0x1c5   :  { %s503_s7 = sshll.u32 %s501_s21, 4  ;;  %s515_s3 = smul.u32 24, %s513_s4  ;;  %s504_s7 = int_to_ptr.hbm [resolvable:$true] %s503_s7 }
 0x1c6   :  { %s1918_s15 = sshra.s32 %s504_s7, 4  ;;  %s1919_s15 = int_to_ptr.hbm [resolvable:$true] %s1918_s15 }
 0x1c7   :  { %s1920_s12 = scalar_lea.hbm %s1919_s15, 3  ;;  %p1923_p11 = scmp.lt.s32.totalorder %s1919_s15, %s3252_s1 }
 0x1c8   :  { %p1921_p10 = scmp.ne.s32.totalorder %s1919_s15, %s1920_s12  ;;  %p1924_p12 = scmp.lt.s32.totalorder %s2476_s10, %s1920_s12 }
 0x1ca   :  { %p1925_p13 = por %p1924_p12, %p1923_p11 }
 0x1cc   :  { %p1926_p0 = pnand %p1925_p13, %p1921_p10 }
 0x1ce   :  { %1929 = shalt.err (!%p1926_p0)  }
 0x1cf   :  { %510 = dma.hbm_to_vmem [thread:$0]  %s504_s7, 48, %s506_s11, [#allocation3], %s2384_s13, %s2384_s13, %s2385_s14 }
 0x1d0   :  { %s516_s5 = sadd.s32 %s515_s3, %s514_s16  ;;  %s1115_s20 = sld [smem:[#allocation5 + $0x20]] }
 0x1d1   :  { %s517_s19 = scalar_lea.hbm %s3252_s1, %s516_s5  ;;  %s2415_s17 = smov [#allocation2 + $0x60]  }
 0x1d2   :  { %s519_s26 = sshll.u32 %s517_s19, 4  ;;  %s2980_s22 = sshll.u32 %s2415_s17, 4  ;;  %s520_s26 = int_to_ptr.hbm [resolvable:$true] %s519_s26  ;;  %s538_s22 = int_to_ptr.vmem [resolvable:$true] %s2980_s22 }
 0x1d3   :  { %s1942_s25 = sshra.s32 %s520_s26, 4  ;;  %s1943_s25 = int_to_ptr.hbm [resolvable:$true] %s1942_s25 }
 0x1d4   :  { %s1944_s9 = scalar_lea.hbm %s1943_s25, 3  ;;  %p1947_p2 = scmp.lt.s32.totalorder %s1943_s25, %s3252_s1 }
 0x1d5   :  { %p1945_p1 = scmp.ne.s32.totalorder %s1943_s25, %s1944_s9  ;;  %p1948_p3 = scmp.lt.s32.totalorder %s2476_s10, %s1944_s9 }
 0x1d7   :  { %p1949_p4 = por %p1948_p3, %p1947_p2 }
 0x1d9   :  { %p1950_p5 = pnand %p1949_p4, %p1945_p1 }
 0x1db   :  { %1953 = shalt.err (!%p1950_p5)  }
 0x1dc   :  { %526 = dma.hbm_to_vmem [thread:$0]  %s520_s26, 48, %s522_s30, [#allocation3], %s2384_s13, %s2384_s13, %s2385_s14 }
 0x1dd   :  { %s2992_s11 = sld [smem:[#allocation5 + $0x21]]  ;;  %s529_s8 = sshrl.u32 %s1115_s20, 3 }
 0x1de   :  { %s530_s4 = sand.u32 7, %s1115_s20   ;;  %s531_s28 = smul.u32 24, %s529_s8 }
 0x1df   :  { %s2416_s23 = smov [#allocation2 + $0x61]   ;;  %s1117_s16 = sld [smem:[#allocation5 + $0x22]] }
 0x1e0   :  { %s2994_s21 = sshll.u32 %s2416_s23, 4  ;;  %s532_s7 = sadd.s32 %s531_s28, %s530_s4  ;;  %s554_s21 = int_to_ptr.vmem [resolvable:$true] %s2994_s21 }
 0x1e1   :  { %s533_s12 = scalar_lea.hbm %s3252_s1, %s532_s7  ;;  %s2417_s30 = smov [#allocation2 + $0x62]  }
 0x1e2   :  { %s3000_s18 = sshll.u32 %s2417_s30, 4  ;;  %s535_s29 = sshll.u32 %s533_s12, 4  ;;  %s536_s29 = int_to_ptr.hbm [resolvable:$true] %s535_s29  ;;  %s570_s18 = int_to_ptr.vmem [resolvable:$true] %s3000_s18 }
 0x1e3   :  { %s545_s5 = sshrl.u32 %s2992_s11, 3  ;;  %s546_s20 = sand.u32 7, %s2992_s11  }
 0x1e4   :  { %s1966_s24 = sshra.s32 %s536_s29, 4  ;;  %s1967_s24 = int_to_ptr.hbm [resolvable:$true] %s1966_s24 }
 0x1e5   :  { %s1968_s27 = scalar_lea.hbm %s1967_s24, 3  ;;  %p1971_p7 = scmp.lt.s32.totalorder %s1967_s24, %s3252_s1 }
 0x1e6   :  { %p1969_p6 = scmp.ne.s32.totalorder %s1967_s24, %s1968_s27  ;;  %p1972_p8 = scmp.lt.s32.totalorder %s2476_s10, %s1968_s27 }
 0x1e8   :  { %p1973_p9 = por %p1972_p8, %p1971_p7 }
 0x1ea   :  { %p1974_p10 = pnand %p1973_p9, %p1969_p6 }
 0x1ec   :  { %1977 = shalt.err (!%p1974_p10)  }
 0x1ed   :  { %542 = dma.hbm_to_vmem [thread:$0]  %s536_s29, 48, %s538_s22, [#allocation3], %s2384_s13, %s2384_s13, %s2385_s14 }
 0x1ee   :  { %s547_s17 = smul.u32 24, %s545_s5  ;;  %s561_s25 = sshrl.u32 %s1117_s16, 3 }
 0x1ef   :  { %s562_s9 = sand.u32 7, %s1117_s16   ;;  %s563_s6 = smul.u32 24, %s561_s25 }
 0x1f0   :  { %s548_s0 = sadd.s32 %s547_s17, %s546_s20 }
 0x1f1   :  { %s549_s4 = scalar_lea.hbm %s3252_s1, %s548_s0  ;;  %s564_s28 = sadd.s32 %s563_s6, %s562_s9 }
 0x1f2   :  { %s551_s23 = sshll.u32 %s549_s4, 4  ;;  %s565_s15 = scalar_lea.hbm %s3252_s1, %s564_s28  ;;  %s552_s23 = int_to_ptr.hbm [resolvable:$true] %s551_s23 }
 0x1f3   :  { %s567_s12 = sshll.u32 %s565_s15, 4  ;;  %s1990_s22 = sshra.s32 %s552_s23, 4  ;;  %s1991_s22 = int_to_ptr.hbm [resolvable:$true] %s1990_s22  ;;  %s568_s12 = int_to_ptr.hbm [resolvable:$true] %s567_s12 }
 0x1f4   :  { %s1992_s30 = scalar_lea.hbm %s1991_s22, 3  ;;  %p1995_p12 = scmp.lt.s32.totalorder %s1991_s22, %s3252_s1 }
 0x1f5   :  { %p1993_p11 = scmp.ne.s32.totalorder %s1991_s22, %s1992_s30  ;;  %p1996_p13 = scmp.lt.s32.totalorder %s2476_s10, %s1992_s30 }
 0x1f7   :  { %p1997_p0 = por %p1996_p13, %p1995_p12 }
 0x1f9   :  { %p1998_p1 = pnand %p1997_p0, %p1993_p11 }
 0x1fb   :  { %2001 = shalt.err (!%p1998_p1)  }
 0x1fc   :  { %558 = dma.hbm_to_vmem [thread:$0]  %s552_s23, 48, %s554_s21, [#allocation3], %s2384_s13, %s2384_s13, %s2385_s14 }
 0x1fd   :  { %s1118_s5 = sld [smem:[#allocation5 + $0x23]]  ;;  %s2014_s20 = sshra.s32 %s568_s12, 4  ;;  %s2015_s20 = int_to_ptr.hbm [resolvable:$true] %s2014_s20 }
 0x1fe   :  { %s2016_s24 = scalar_lea.hbm %s2015_s20, 3  ;;  %p2019_p3 = scmp.lt.s32.totalorder %s2015_s20, %s3252_s1 }
 0x1ff   :  { %p2017_p2 = scmp.ne.s32.totalorder %s2015_s20, %s2016_s24  ;;  %p2020_p4 = scmp.lt.s32.totalorder %s2476_s10, %s2016_s24 }
 0x201   :  { %p2021_p5 = por %p2020_p4, %p2019_p3 }
 0x203   :  { %p2022_p6 = pnand %p2021_p5, %p2017_p2 }
 0x205   :  { %2025 = shalt.err (!%p2022_p6)  }
 0x206   :  { %574 = dma.hbm_to_vmem [thread:$0]  %s568_s12, 48, %s570_s18, [#allocation3], %s2384_s13, %s2384_s13, %s2385_s14 }
 0x207   :  { %s1119_s21 = sld [smem:[#allocation5 + $0x24]]  ;;  %s2418_s26 = smov [#allocation2 + $0x63]  }
 0x208   :  { %s3038_s17 = sshll.u32 %s2418_s26, 4  ;;  %s2419_s25 = smov [#allocation2 + $0x64]   ;;  %s586_s17 = int_to_ptr.vmem [resolvable:$true] %s3038_s17 }
 0x209   :  { %s3041_s9 = sshll.u32 %s2419_s25, 4  ;;  %s3044_s6 = sld [smem:[#allocation5 + $0x25]]  ;;  %s602_s9 = int_to_ptr.vmem [resolvable:$true] %s3041_s9 }
 0x20a   :  { %s577_s0 = sshrl.u32 %s1118_s5, 3  ;;  %s578_s11 = sand.u32 7, %s1118_s5  }
 0x20b   :  { %s579_s8 = smul.u32 24, %s577_s0  ;;  %s2420_s12 = smov [#allocation2 + $0x65]  }
 0x20c   :  { %s3049_s22 = sshll.u32 %s2420_s12, 4  ;;  %s618_s22 = int_to_ptr.vmem [resolvable:$true] %s3049_s22 }
 0x20d   :  { %s593_s4 = sshrl.u32 %s1119_s21, 3  ;;  %s594_s28 = sand.u32 7, %s1119_s21  }
 0x20e   :  { %s580_s18 = sadd.s32 %s579_s8, %s578_s11  ;;  %s595_s23 = smul.u32 24, %s593_s4 }
 0x20f   :  { %s581_s15 = scalar_lea.hbm %s3252_s1, %s580_s18 }
 0x210   :  { %s583_s30 = sshll.u32 %s581_s15, 4  ;;  %s596_s16 = sadd.s32 %s595_s23, %s594_s28  ;;  %s584_s30 = int_to_ptr.hbm [resolvable:$true] %s583_s30 }
 0x211   :  { %s597_s5 = scalar_lea.hbm %s3252_s1, %s596_s16  ;;  %s2038_s24 = sshra.s32 %s584_s30, 4  ;;  %s2039_s24 = int_to_ptr.hbm [resolvable:$true] %s2038_s24 }
 0x212   :  { %s2040_s27 = scalar_lea.hbm %s2039_s24, 3  ;;  %p2043_p8 = scmp.lt.s32.totalorder %s2039_s24, %s3252_s1 }
 0x213   :  { %p2041_p7 = scmp.ne.s32.totalorder %s2039_s24, %s2040_s27  ;;  %p2044_p9 = scmp.lt.s32.totalorder %s2476_s10, %s2040_s27 }
 0x215   :  { %p2045_p10 = por %p2044_p9, %p2043_p8 }
 0x217   :  { %p2046_p11 = pnand %p2045_p10, %p2041_p7 }
 0x219   :  { %2049 = shalt.err (!%p2046_p11)  }
 0x21a   :  { %590 = dma.hbm_to_vmem [thread:$0]  %s584_s30, 48, %s586_s17, [#allocation3], %s2384_s13, %s2384_s13, %s2385_s14 }
 0x21b   :  { %s599_s26 = sshll.u32 %s597_s5, 4  ;;  %s609_s25 = sshrl.u32 %s3044_s6, 3  ;;  %s600_s26 = int_to_ptr.hbm [resolvable:$true] %s599_s26 }
 0x21c   :  { %s610_s0 = sand.u32 7, %s3044_s6   ;;  %s2062_s11 = sshra.s32 %s600_s26, 4  ;;  %s2063_s11 = int_to_ptr.hbm [resolvable:$true] %s2062_s11 }
 0x21d   :  { %s2064_s8 = scalar_lea.hbm %s2063_s11, 3  ;;  %p2067_p13 = scmp.lt.s32.totalorder %s2063_s11, %s3252_s1 }
 0x21e   :  { %p2065_p12 = scmp.ne.s32.totalorder %s2063_s11, %s2064_s8  ;;  %p2068_p0 = scmp.lt.s32.totalorder %s2476_s10, %s2064_s8 }
 0x220   :  { %p2069_p1 = por %p2068_p0, %p2067_p13 }
 0x222   :  { %p2070_p2 = pnand %p2069_p1, %p2065_p12 }
 0x224   :  { %2073 = shalt.err (!%p2070_p2)  }
 0x225   :  { %606 = dma.hbm_to_vmem [thread:$0]  %s600_s26, 48, %s602_s9, [#allocation3], %s2384_s13, %s2384_s13, %s2385_s14 }
 0x226   :  { %s611_s17 = smul.u32 24, %s609_s25  ;;  %s1121_s6 = sld [smem:[#allocation5 + $0x26]] }
 0x227   :  { %s2421_s23 = smov [#allocation2 + $0x66]   ;;  %s3081_s16 = sld [smem:[#allocation5 + $0x27]] }
 0x228   :  { %s612_s18 = sadd.s32 %s611_s17, %s610_s0  ;;  %s3075_s7 = sshll.u32 %s2421_s23, 4  ;;  %s634_s7 = int_to_ptr.vmem [resolvable:$true] %s3075_s7 }
 0x229   :  { %s613_s12 = scalar_lea.hbm %s3252_s1, %s612_s18 }
 0x22a   :  { %s615_s30 = sshll.u32 %s613_s12, 4  ;;  %s616_s30 = int_to_ptr.hbm [resolvable:$true] %s615_s30 }
 0x22b   :  { %s2086_s29 = sshra.s32 %s616_s30, 4  ;;  %s2087_s29 = int_to_ptr.hbm [resolvable:$true] %s2086_s29 }
 0x22c   :  { %s2088_s9 = scalar_lea.hbm %s2087_s29, 3  ;;  %p2091_p4 = scmp.lt.s32.totalorder %s2087_s29, %s3252_s1 }
 0x22d   :  { %p2089_p3 = scmp.ne.s32.totalorder %s2087_s29, %s2088_s9  ;;  %p2092_p5 = scmp.lt.s32.totalorder %s2476_s10, %s2088_s9 }
 0x22f   :  { %p2093_p6 = por %p2092_p5, %p2091_p4 }
 0x231   :  { %p2094_p7 = pnand %p2093_p6, %p2089_p3 }
 0x233   :  { %2097 = shalt.err (!%p2094_p7)  }
 0x234   :  { %622 = dma.hbm_to_vmem [thread:$0]  %s616_s30, 48, %s618_s22, [#allocation3], %s2384_s13, %s2384_s13, %s2385_s14 }
 0x235   :  { %s625_s24 = sshrl.u32 %s1121_s6, 3  ;;  %s626_s27 = sand.u32 7, %s1121_s6  }
 0x236   :  { %s627_s19 = smul.u32 24, %s625_s24  ;;  %s2422_s21 = smov [#allocation2 + $0x67]  }
 0x237   :  { %s3090_s26 = sshll.u32 %s2422_s21, 4  ;;  %s3093_s25 = sld [smem:[#allocation5 + $0x28]]  ;;  %s650_s26 = int_to_ptr.vmem [resolvable:$true] %s3090_s26 }
 0x238   :  { %s628_s0 = sadd.s32 %s627_s19, %s626_s27  ;;  %s641_s11 = sshrl.u32 %s3081_s16, 3 }
 0x239   :  { %s629_s28 = scalar_lea.hbm %s3252_s1, %s628_s0  ;;  %s642_s17 = sand.u32 7, %s3081_s16  }
 0x23a   :  { %s631_s18 = sshll.u32 %s629_s28, 4  ;;  %s643_s22 = smul.u32 24, %s641_s11  ;;  %s632_s18 = int_to_ptr.hbm [resolvable:$true] %s631_s18 }
 0x23b   :  { %s2110_s6 = sshra.s32 %s632_s18, 4  ;;  %s2111_s6 = int_to_ptr.hbm [resolvable:$true] %s2110_s6 }
 0x23c   :  { %s2112_s23 = scalar_lea.hbm %s2111_s6, 3  ;;  %p2115_p9 = scmp.lt.s32.totalorder %s2111_s6, %s3252_s1 }
 0x23d   :  { %p2113_p8 = scmp.ne.s32.totalorder %s2111_s6, %s2112_s23  ;;  %p2116_p10 = scmp.lt.s32.totalorder %s2476_s10, %s2112_s23 }
 0x23f   :  { %p2117_p11 = por %p2116_p10, %p2115_p9 }
 0x241   :  { %p2118_p12 = pnand %p2117_p11, %p2113_p8 }
 0x243   :  { %2121 = shalt.err (!%p2118_p12)  }
 0x244   :  { %638 = dma.hbm_to_vmem [thread:$0]  %s632_s18, 48, %s634_s7, [#allocation3], %s2384_s13, %s2384_s13, %s2385_s14 }
 0x245   :  { %s644_s12 = sadd.s32 %s643_s22, %s642_s17  ;;  %s657_s30 = sshrl.u32 %s3093_s25, 3 }
 0x246   :  { %s645_s9 = scalar_lea.hbm %s3252_s1, %s644_s12  ;;  %s658_s20 = sand.u32 7, %s3093_s25  }
 0x247   :  { %s647_s5 = sshll.u32 %s645_s9, 4  ;;  %s659_s24 = smul.u32 24, %s657_s30  ;;  %s648_s5 = int_to_ptr.hbm [resolvable:$true] %s647_s5 }
 0x248   :  { %s2423_s27 = smov [#allocation2 + $0x78]   ;;  %s2134_s21 = sshra.s32 %s648_s5, 4  ;;  %s2135_s21 = int_to_ptr.hbm [resolvable:$true] %s2134_s21 }
 0x249   :  { %s3114_s19 = sshll.u32 %s2423_s27, 4  ;;  %s2136_s0 = scalar_lea.hbm %s2135_s21, 3  ;;  %s666_s19 = int_to_ptr.vmem [resolvable:$true] %s3114_s19 }
 0x24a   :  { %p2137_p13 = scmp.ne.s32.totalorder %s2135_s21, %s2136_s0  ;;  %p2139_p0 = scmp.lt.s32.totalorder %s2135_s21, %s3252_s1 }
 0x24b   :  { %p2140_p1 = scmp.lt.s32.totalorder %s2476_s10, %s2136_s0 }
 0x24d   :  { %p2141_p2 = por %p2140_p1, %p2139_p0 }
 0x24f   :  { %p2142_p3 = pnand %p2141_p2, %p2137_p13 }
 0x251   :  { %2145 = shalt.err (!%p2142_p3)  }
 0x252   :  { %654 = dma.hbm_to_vmem [thread:$0]  %s648_s5, 48, %s650_s26, [#allocation3], %s2384_s13, %s2384_s13, %s2385_s14 }
 0x253   :  { %s660_s7 = sadd.s32 %s659_s24, %s658_s20  ;;  %s1124_s17 = sld [smem:[#allocation5 + $0x29]] }
 0x254   :  { %s661_s28 = scalar_lea.hbm %s3252_s1, %s660_s7  ;;  %s2424_s22 = smov [#allocation2 + $0x79]  }
 0x255   :  { %s663_s18 = sshll.u32 %s661_s28, 4  ;;  %s3129_s6 = sshll.u32 %s2424_s22, 4  ;;  %s664_s18 = int_to_ptr.hbm [resolvable:$true] %s663_s18  ;;  %s682_s6 = int_to_ptr.vmem [resolvable:$true] %s3129_s6 }
 0x256   :  { %s2158_s23 = sshra.s32 %s664_s18, 4  ;;  %s2159_s23 = int_to_ptr.hbm [resolvable:$true] %s2158_s23 }
 0x257   :  { %s2160_s3 = scalar_lea.hbm %s2159_s23, 3  ;;  %p2163_p5 = scmp.lt.s32.totalorder %s2159_s23, %s3252_s1 }
 0x258   :  { %p2161_p4 = scmp.ne.s32.totalorder %s2159_s23, %s2160_s3  ;;  %p2164_p6 = scmp.lt.s32.totalorder %s2476_s10, %s2160_s3 }
 0x25a   :  { %p2165_p7 = por %p2164_p6, %p2163_p5 }
 0x25c   :  { %p2166_p8 = pnand %p2165_p7, %p2161_p4 }
 0x25e   :  { %2169 = shalt.err (!%p2166_p8)  }
 0x25f   :  { %670 = dma.hbm_to_vmem [thread:$0]  %s664_s18, 48, %s666_s19, [#allocation3], %s2384_s13, %s2384_s13, %s2385_s14 }
 0x260   :  { %s3139_s26 = sld [smem:[#allocation5 + $0x2a]]  ;;  %s673_s16 = sshrl.u32 %s1124_s17, 3 }
 0x261   :  { %s3141_s30 = sld [smem:[#allocation5 + $0x2b]]  ;;  %s674_s29 = sand.u32 7, %s1124_s17  }
 0x262   :  { %s675_s9 = smul.u32 24, %s673_s16  ;;  %s2425_s20 = smov [#allocation2 + $0x7a]  }
 0x263   :  { %s3143_s5 = sshll.u32 %s2425_s20, 4  ;;  %s2426_s27 = smov [#allocation2 + $0x7b]   ;;  %s698_s5 = int_to_ptr.vmem [resolvable:$true] %s3143_s5 }
 0x264   :  { %s676_s24 = sadd.s32 %s675_s9, %s674_s29  ;;  %s3146_s21 = sshll.u32 %s2426_s27, 4  ;;  %s714_s21 = int_to_ptr.vmem [resolvable:$true] %s3146_s21 }
 0x265   :  { %s677_s11 = scalar_lea.hbm %s3252_s1, %s676_s24 }
 0x266   :  { %s689_s8 = sshrl.u32 %s3139_s26, 3  ;;  %s679_s7 = sshll.u32 %s677_s11, 4  ;;  %s680_s7 = int_to_ptr.hbm [resolvable:$true] %s679_s7 }
 0x267   :  { %s690_s25 = sand.u32 7, %s3139_s26   ;;  %s691_s4 = smul.u32 24, %s689_s8 }
 0x268   :  { %s2182_s28 = sshra.s32 %s680_s7, 4  ;;  %s2183_s28 = int_to_ptr.hbm [resolvable:$true] %s2182_s28 }
 0x269   :  { %s2184_s17 = scalar_lea.hbm %s2183_s28, 3  ;;  %p2187_p10 = scmp.lt.s32.totalorder %s2183_s28, %s3252_s1 }
 0x26a   :  { %p2185_p9 = scmp.ne.s32.totalorder %s2183_s28, %s2184_s17  ;;  %p2188_p11 = scmp.lt.s32.totalorder %s2476_s10, %s2184_s17 }
 0x26c   :  { %p2189_p12 = por %p2188_p11, %p2187_p10 }
 0x26e   :  { %p2190_p13 = pnand %p2189_p12, %p2185_p9 }
 0x270   :  { %2193 = shalt.err (!%p2190_p13)  }
 0x271   :  { %686 = dma.hbm_to_vmem [thread:$0]  %s680_s7, 48, %s682_s6, [#allocation3], %s2384_s13, %s2384_s13, %s2385_s14 }
 0x272   :  { %s692_s23 = sadd.s32 %s691_s4, %s690_s25  ;;  %s705_s3 = sshrl.u32 %s3141_s30, 3 }
 0x273   :  { %s693_s26 = scalar_lea.hbm %s3252_s1, %s692_s23  ;;  %s706_s16 = sand.u32 7, %s3141_s30  }
 0x274   :  { %s695_s29 = sshll.u32 %s693_s26, 4  ;;  %s707_s9 = smul.u32 24, %s705_s3  ;;  %s696_s29 = int_to_ptr.hbm [resolvable:$true] %s695_s29 }
 0x275   :  { %s2206_s20 = sshra.s32 %s696_s29, 4  ;;  %s2207_s20 = int_to_ptr.hbm [resolvable:$true] %s2206_s20 }
 0x276   :  { %s2208_s24 = scalar_lea.hbm %s2207_s20, 3  ;;  %p2211_p1 = scmp.lt.s32.totalorder %s2207_s20, %s3252_s1 }
 0x277   :  { %p2209_p0 = scmp.ne.s32.totalorder %s2207_s20, %s2208_s24  ;;  %p2212_p2 = scmp.lt.s32.totalorder %s2476_s10, %s2208_s24 }
 0x279   :  { %p2213_p3 = por %p2212_p2, %p2211_p1 }
 0x27b   :  { %p2214_p4 = pnand %p2213_p3, %p2209_p0 }
 0x27d   :  { %2217 = shalt.err (!%p2214_p4)  }
 0x27e   :  { %702 = dma.hbm_to_vmem [thread:$0]  %s696_s29, 48, %s698_s5, [#allocation3], %s2384_s13, %s2384_s13, %s2385_s14 }
 0x27f   :  { %s708_s6 = sadd.s32 %s707_s9, %s706_s16  ;;  %s1127_s30 = sld [smem:[#allocation5 + $0x2c]] }
 0x280   :  { %s709_s8 = scalar_lea.hbm %s3252_s1, %s708_s6  ;;  %s2427_s25 = smov [#allocation2 + $0x7c]  }
 0x281   :  { %s711_s7 = sshll.u32 %s709_s8, 4  ;;  %s3180_s4 = sshll.u32 %s2427_s25, 4  ;;  %s712_s7 = int_to_ptr.hbm [resolvable:$true] %s711_s7  ;;  %s730_s4 = int_to_ptr.vmem [resolvable:$true] %s3180_s4 }
 0x282   :  { %s2230_s28 = sshra.s32 %s712_s7, 4  ;;  %s2231_s28 = int_to_ptr.hbm [resolvable:$true] %s2230_s28 }
 0x283   :  { %s2232_s17 = scalar_lea.hbm %s2231_s28, 3  ;;  %p2235_p6 = scmp.lt.s32.totalorder %s2231_s28, %s3252_s1 }
 0x284   :  { %p2233_p5 = scmp.ne.s32.totalorder %s2231_s28, %s2232_s17  ;;  %p2236_p7 = scmp.lt.s32.totalorder %s2476_s10, %s2232_s17 }
 0x286   :  { %p2237_p8 = por %p2236_p7, %p2235_p6 }
 0x288   :  { %p2238_p9 = pnand %p2237_p8, %p2233_p5 }
 0x28a   :  { %2241 = shalt.err (!%p2238_p9)  }
 0x28b   :  { %718 = dma.hbm_to_vmem [thread:$0]  %s712_s7, 48, %s714_s21, [#allocation3], %s2384_s13, %s2384_s13, %s2385_s14 }
 0x28c   :  { %s3192_s5 = sld [smem:[#allocation5 + $0x2d]]  ;;  %s721_s23 = sshrl.u32 %s1127_s30, 3 }
 0x28d   :  { %s722_s3 = sand.u32 7, %s1127_s30   ;;  %s723_s15 = smul.u32 24, %s721_s23 }
 0x28e   :  { %s2428_s12 = smov [#allocation2 + $0x7d]   ;;  %s1129_s16 = sld [smem:[#allocation5 + $0x2e]] }
 0x28f   :  { %s3194_s26 = sshll.u32 %s2428_s12, 4  ;;  %s724_s29 = sadd.s32 %s723_s15, %s722_s3  ;;  %s746_s26 = int_to_ptr.vmem [resolvable:$true] %s3194_s26 }
 0x290   :  { %s725_s24 = scalar_lea.hbm %s3252_s1, %s724_s29  ;;  %s2429_s21 = smov [#allocation2 + $0x7e]  }
 0x291   :  { %s3200_s27 = sshll.u32 %s2429_s21, 4  ;;  %s727_s19 = sshll.u32 %s725_s24, 4  ;;  %s728_s19 = int_to_ptr.hbm [resolvable:$true] %s727_s19  ;;  %s762_s27 = int_to_ptr.vmem [resolvable:$true] %s3200_s27 }
 0x292   :  { %s737_s6 = sshrl.u32 %s3192_s5, 3  ;;  %s738_s30 = sand.u32 7, %s3192_s5  }
 0x293   :  { %s2254_s0 = sshra.s32 %s728_s19, 4  ;;  %s2255_s0 = int_to_ptr.hbm [resolvable:$true] %s2254_s0 }
 0x294   :  { %s2256_s11 = scalar_lea.hbm %s2255_s0, 3  ;;  %p2259_p11 = scmp.lt.s32.totalorder %s2255_s0, %s3252_s1 }
 0x295   :  { %p2257_p10 = scmp.ne.s32.totalorder %s2255_s0, %s2256_s11  ;;  %p2260_p12 = scmp.lt.s32.totalorder %s2476_s10, %s2256_s11 }
 0x297   :  { %p2261_p13 = por %p2260_p12, %p2259_p11 }
 0x299   :  { %p2262_p0 = pnand %p2261_p13, %p2257_p10 }
 0x29b   :  { %2265 = shalt.err (!%p2262_p0)  }
 0x29c   :  { %734 = dma.hbm_to_vmem [thread:$0]  %s728_s19, 48, %s730_s4, [#allocation3], %s2384_s13, %s2384_s13, %s2385_s14 }
 0x29d   :  { %s739_s25 = smul.u32 24, %s737_s6  ;;  %s753_s28 = sshrl.u32 %s1129_s16, 3 }
 0x29e   :  { %s754_s17 = sand.u32 7, %s1129_s16   ;;  %s755_s18 = smul.u32 24, %s753_s28 }
 0x29f   :  { %s740_s22 = sadd.s32 %s739_s25, %s738_s30 }
 0x2a0   :  { %s741_s3 = scalar_lea.hbm %s3252_s1, %s740_s22  ;;  %s756_s15 = sadd.s32 %s755_s18, %s754_s17 }
 0x2a1   :  { %s743_s12 = sshll.u32 %s741_s3, 4  ;;  %s757_s20 = scalar_lea.hbm %s3252_s1, %s756_s15  ;;  %s744_s12 = int_to_ptr.hbm [resolvable:$true] %s743_s12 }
 0x2a2   :  { %s759_s24 = sshll.u32 %s757_s20, 4  ;;  %s2278_s4 = sshra.s32 %s744_s12, 4  ;;  %s2279_s4 = int_to_ptr.hbm [resolvable:$true] %s2278_s4  ;;  %s760_s24 = int_to_ptr.hbm [resolvable:$true] %s759_s24 }
 0x2a3   :  { %s2280_s21 = scalar_lea.hbm %s2279_s4, 3  ;;  %p2283_p2 = scmp.lt.s32.totalorder %s2279_s4, %s3252_s1 }
 0x2a4   :  { %p2281_p1 = scmp.ne.s32.totalorder %s2279_s4, %s2280_s21  ;;  %p2284_p3 = scmp.lt.s32.totalorder %s2476_s10, %s2280_s21 }
 0x2a6   :  { %p2285_p4 = por %p2284_p3, %p2283_p2 }
 0x2a8   :  { %p2286_p5 = pnand %p2285_p4, %p2281_p1 }
 0x2aa   :  { %2289 = shalt.err (!%p2286_p5)  }
 0x2ab   :  { %750 = dma.hbm_to_vmem [thread:$0]  %s744_s12, 48, %s746_s26, [#allocation3], %s2384_s13, %s2384_s13, %s2385_s14 }
 0x2ac   :  { %s1130_s6 = sld [smem:[#allocation5 + $0x2f]]  ;;  %s2302_s30 = sshra.s32 %s760_s24, 4  ;;  %s2303_s30 = int_to_ptr.hbm [resolvable:$true] %s2302_s30 }
 0x2ad   :  { %s2304_s0 = scalar_lea.hbm %s2303_s30, 3  ;;  %p2307_p7 = scmp.lt.s32.totalorder %s2303_s30, %s3252_s1 }
 0x2ae   :  { %p2305_p6 = scmp.ne.s32.totalorder %s2303_s30, %s2304_s0  ;;  %p2308_p8 = scmp.lt.s32.totalorder %s2476_s10, %s2304_s0 }
 0x2b0   :  { %p2309_p9 = por %p2308_p8, %p2307_p7 }
 0x2b2   :  { %p2310_p10 = pnand %p2309_p9, %p2305_p6 }
 0x2b4   :  { %2313 = shalt.err (!%p2310_p10)  }
 0x2b5   :  { %766 = dma.hbm_to_vmem [thread:$0]  %s760_s24, 48, %s762_s27, [#allocation3], %s2384_s13, %s2384_s13, %s2385_s14 }
 0x2b6   :  { %s769_s26 = sshrl.u32 %s1130_s6, 3  ;;  %s770_s7 = sand.u32 7, %s1130_s6  }
 0x2b7   :  { %s771_s25 = smul.u32 24, %s769_s26  ;;  %s2430_s28 = smov [#allocation2 + $0x7f]  }
 0x2b8   :  { %s777_s17 = sshll.u32 %s2430_s28, 4  ;;  %s778_s17 = int_to_ptr.vmem [resolvable:$true] %s777_s17 }
 0x2b9   :  { %s772_s18 = sadd.s32 %s771_s25, %s770_s7 }
 0x2ba   :  { %s773_s23 = scalar_lea.hbm %s3252_s1, %s772_s18 }
 0x2bb   :  { %s775_s3 = sshll.u32 %s773_s23, 4  ;;  %s776_s3 = int_to_ptr.hbm [resolvable:$true] %s775_s3 }
 0x2bc   :  { %s2326_s15 = sshra.s32 %s776_s3, 4  ;;  %s2327_s15 = int_to_ptr.hbm [resolvable:$true] %s2326_s15 }
 0x2bd   :  { %s2328_s12 = scalar_lea.hbm %s2327_s15, 3  ;;  %p2331_p12 = scmp.lt.s32.totalorder %s2327_s15, %s3252_s1 }
 0x2be   :  { %p2329_p11 = scmp.ne.s32.totalorder %s2327_s15, %s2328_s12  ;;  %p2332_p13 = scmp.lt.s32.totalorder %s2476_s10, %s2328_s12 }
 0x2c0   :  { %p2333_p0 = por %p2332_p13, %p2331_p12 }
 0x2c2   :  { %p2334_p1 = pnand %p2333_p0, %p2329_p11 }
 0x2c4   :  { %2337 = shalt.err (!%p2334_p1)  }
 0x2c5   :  { %782 = dma.hbm_to_vmem [thread:$0]  %s776_s3, 48, %s778_s17, [#allocation3], %s2384_s13, %s2384_s13, %s2385_s14 }
 0x2c6   :  { %2376 = dma.done.wait [#allocation3], 2304 }
 0x2c7   :  { %2377 = vsyncadd [#allocation3], 4294964992  ;;  %v880_v0 = vld [vmem:[#allocation2] sm:$0xff]  ;;  %v881_v1 = vld [vmem:[#allocation2 + $0x8] sm:$0xff]  ;;  %s2431_s1 = smov [#allocation6]   ;;  %s922_s9 = sshll.u32 %s3253_s2, 4  ;;  %s923_s9 = int_to_ptr.hbm [resolvable:$true] %s922_s9 }
 0x2c8   :  { %v882_v2 = vld [vmem:[#allocation2 + $0x10] sm:$0xff]  ;;  %898 = vst [vmem:[#allocation6] sm:$0xff] %v880_v0  ;;  %v883_v3 = vld [vmem:[#allocation2 + $0x18] sm:$0xff]  ;;  %v884_v4 = vld [vmem:[#allocation2 + $0x20] sm:$0xff]  ;;  %s920_s10 = sshll.u32 %s2431_s1, 4  ;;  %s2432_s20 = smov 384   ;;  %s921_s10 = int_to_ptr.vmem [resolvable:$true] %s920_s10 }
 0x2c9   :  { %899 = vst [vmem:[#allocation6 + $0x8] sm:$0xff] %v881_v1  ;;  %v885_v5 = vld [vmem:[#allocation2 + $0x28] sm:$0xff]  ;;  %v886_v6 = vld [vmem:[#allocation2 + $0x30] sm:$0xff]  ;;  %v887_v7 = vld [vmem:[#allocation2 + $0x38] sm:$0xff]  ;;  %s2433_s24 = smov 24  }
 0x2ca   :  { %900 = vst [vmem:[#allocation6 + $0x10] sm:$0xff] %v882_v2  ;;  %v888_v8 = vld [vmem:[#allocation2 + $0x40] sm:$0xff]  ;;  %v889_v9 = vld [vmem:[#allocation2 + $0x48] sm:$0xff]  ;;  %v890_v10 = vld [vmem:[#allocation2 + $0x50] sm:$0xff] }
 0x2cb   :  { %901 = vst [vmem:[#allocation6 + $0x18] sm:$0xff] %v883_v3  ;;  %v891_v11 = vld [vmem:[#allocation2 + $0x58] sm:$0xff]  ;;  %v892_v12 = vld [vmem:[#allocation2 + $0x60] sm:$0xff]  ;;  %v893_v13 = vld [vmem:[#allocation2 + $0x68] sm:$0xff] }
 0x2cc   :  { %902 = vst [vmem:[#allocation6 + $0x20] sm:$0xff] %v884_v4  ;;  %v894_v14 = vld [vmem:[#allocation2 + $0x70] sm:$0xff]  ;;  %v895_v15 = vld [vmem:[#allocation2 + $0x78] sm:$0xff]  ;;  %v896_v16 = vld [vmem:[#allocation2 + $0x80] sm:$0xff] }
 0x2cd   :  { %903 = vst [vmem:[#allocation6 + $0x28] sm:$0xff] %v885_v5  ;;  %v897_v17 = vld [vmem:[#allocation2 + $0x88] sm:$0xff] }
 0x2ce   :  { %904 = vst [vmem:[#allocation6 + $0x30] sm:$0xff] %v886_v6 }
 0x2cf   :  { %905 = vst [vmem:[#allocation6 + $0x38] sm:$0xff] %v887_v7 }
 0x2d0   :  { %906 = vst [vmem:[#allocation6 + $0x40] sm:$0xff] %v888_v8 }
 0x2d1   :  { %907 = vst [vmem:[#allocation6 + $0x48] sm:$0xff] %v889_v9 }
 0x2d2   :  { %908 = vst [vmem:[#allocation6 + $0x50] sm:$0xff] %v890_v10 }
 0x2d3   :  { %909 = vst [vmem:[#allocation6 + $0x58] sm:$0xff] %v891_v11 }
 0x2d4   :  { %910 = vst [vmem:[#allocation6 + $0x60] sm:$0xff] %v892_v12 }
 0x2d5   :  { %911 = vst [vmem:[#allocation6 + $0x68] sm:$0xff] %v893_v13 }
 0x2d6   :  { %912 = vst [vmem:[#allocation6 + $0x70] sm:$0xff] %v894_v14 }
 0x2d7   :  { %913 = vst [vmem:[#allocation6 + $0x78] sm:$0xff] %v895_v15 }
 0x2d8   :  { %914 = vst [vmem:[#allocation6 + $0x80] sm:$0xff] %v896_v16 }
 0x2d9   :  { %915 = vst [vmem:[#allocation6 + $0x88] sm:$0xff] %v897_v17 }
 0x2da   :  { %928 = dma.vmem_to_hbm [thread:$0]  %s921_s10, 2304, %s923_s9, [#allocation7], %s2432_s20, %s2432_s20, %s2433_s24  }
 0x2db   :  { %2378 = dma.done.wait [#allocation7], 2304  }
 0x2dc   :  { %2379 = vsyncadd [#allocation7], 4294964992 }
 0x2dd   :  { %933 = vsyncpa [#allocation7], 1 }
 0x2de   :  { %934 = vsyncmov [#allocation3] }
 0x2e1   :  { %s935_s4 = vpop.sfrf %934 }
 0x2e2   :  { %p1131_p2 = scmp.ne.s32.totalorder %s935_s4, 0 }
 0x2e4   :  { %939 = shalt.err (%p1131_p2)  }

</bundles_post_ra>
